<compile_context>
chip_gen: v6e
topology: v6e:2x2x1
jax: 0.10.0
libtpu: 0.0.40
codegen_flags: <defaults>
</compile_context>

<pallas_src>
import functools

import jax
import jax.numpy as jnp
from jax import lax
from jax.experimental import pallas as pl
from jax.experimental.pallas import tpu as pltpu

_SOFTPLUS_THRESHOLD = 20.0  # torch.nn.functional.softplus default threshold


# ------------------------------------------------------------------ Mish epilogue
def _mish_residual(y, out_dtype):
    """y + tanh(softplus(y)) on an f32 tile, EUP-light form.

    With t = exp(min(y, 20)):
        tanh(log1p(t)) = ((1+t)^2 - 1) / ((1+t)^2 + 1) = 1 - 2 / (t^2 + 2t + 2)
    so  out = y + 1 - 2 / (t^2 + 2t + 2).
    For y > 20 the clamp makes 2/(t^2+2t+2) < 1e-17, i.e. out == y + 1, exactly what
    torch's softplus threshold (linear branch) followed by tanh gives in f32.
    denom is in [2, ~2.4e17]: no overflow, no NaN, for any finite input.
    """
    t = jnp.exp(jnp.minimum(y, _SOFTPLUS_THRESHOLD))
    denom = t * (t + 2.0) + 2.0
    r = pl.reciprocal(denom, approx=True)          # EUP vrcp (cheap slot)
    if jnp.dtype(out_dtype).itemsize >= 4:         # Newton step only where f32 accuracy matters
        r = r * (2.0 - denom * r)                  # VPU-only refinement
    return y + 1.0 - 2.0 * r


# ------------------------------------------------------------------------ kernel
def _cbm_kernel(x_ref, w_ref, b_ref, o_ref, *, kernel, row_tile, w_out):
    """One (batch, H row-tile) step of Conv+BN(+bias)+Mish, NCHW, stride 1.

    x_ref: (1, C_in, H_pad_ext, W_pad)  whole padded image of this batch element
    w_ref: (K*K, C_out, C_in)           BN-folded weights, tap-major (kh*K + kw)
    b_ref: (C_out, 1)                   BN-folded bias (f32)
    o_ref: (1, C_out, row_tile, W_out)  output row tile
    """
    h0 = pl.program_id(1) * row_tile           # first output row of this tile
    c_out = o_ref.shape[1]

    for j in range(row_tile):                  # static unroll (row_tile is capped)
        acc = jnp.zeros((c_out, w_out), jnp.float32)
        for tap in range(kernel * kernel):
            kh = tap // kernel
            kw = tap % kernel
            # (C_in, W_out) shifted input slab for this tap / output row.
            patch = x_ref[0, :, h0 + j + kh, pl.ds(kw, w_out)]
            acc = acc + jnp.dot(w_ref[tap], patch,
                                preferred_element_type=jnp.float32)
        y = acc + b_ref[...]                   # (C_out, W_out) + (C_out, 1)
        o_ref[0, :, j, :] = _mish_residual(y, o_ref.dtype).astype(o_ref.dtype)


# ------------------------------------------------------------------------ tiling
def _pick_row_tile(h_out, w_out, c_out, kernel, itemsize, *,
                   target_bytes=1 << 20, min_h_tiles=2):
    """Output rows per grid step: multiple of 8 sublanes (or == h_out when tiny)."""
    if h_out <= 8:
        return h_out
    row_bytes = max(w_out * c_out * itemsize, 1)
    th = max(8, ((target_bytes // row_bytes) // 8) * 8)
    # bound the Python-unrolled matmul count (row_tile * K*K dots per step)
    th = min(th, max(8, ((256 // (kernel * kernel)) // 8) * 8))
    # keep >= min_h_tiles grid steps along H (v7x megacore, DMA/compute overlap)
    th = min(th, max(8, ((pl.cdiv(h_out, min_h_tiles)) + 7) // 8 * 8))
    th = min(th, ((h_out + 7) // 8) * 8)
    return th


# ---------------------------------------------------------------------- fallback
def _block_cbm_xla(x, w_folded, bias, *, stride, pad):
    """XLA conv with bias + Mish expressed in jnp (fused into the conv epilogue)."""
    y = lax.conv_general_dilated(
        x, w_folded, (stride, stride), [(pad, pad), (pad, pad)],
        dimension_numbers=("NCHW", "OIHW", "NCHW"),
        precision=lax.Precision.HIGHEST)
    y = y + bias[None, :, None, None]
    yf = y.astype(jnp.float32)
    return (yf + jnp.tanh(jax.nn.softplus(yf))).astype(x.dtype)


# --------------------------------------------------------------------- block_CBM
def block_cbm(x, conv_w, bn_gamma, bn_beta, bn_mean, bn_var, *,
              stride: int = 1, eps: float = 1e-5) -> jax.Array:
    """Conv2d(bias=False) -> BatchNorm2d (inference stats) -> y + tanh(softplus(y)).

    BN is folded into the conv weights/bias (exact for inference-mode BN); conv, bias
    and activation run in a single Pallas kernel for the stride-1 path.
    """
    n, c_in, h, w = x.shape
    c_out, c_in_w, k, k2 = conv_w.shape
    assert c_in_w == c_in and k == k2
    p = k // 2

    # Fold inference BN into the conv (exact).
    scale = (bn_gamma.astype(jnp.float32) /
             jnp.sqrt(bn_var.astype(jnp.float32) + eps))
    w_folded = (conv_w.astype(jnp.float32) * scale[:, None, None, None]).astype(x.dtype)
    bias = (bn_beta.astype(jnp.float32) - bn_mean.astype(jnp.float32) * scale)

    h_out = (h + 2 * p - k) // stride + 1
    w_out = (w + 2 * p - k) // stride + 1

    if stride != 1:
        # TODO(synk): strided taps need lane-strided slices in-kernel; use XLA path.
        return _block_cbm_xla(x, w_folded, bias, stride=stride, pad=p)

    itemsize = jnp.dtype(x.dtype).itemsize
    th = _pick_row_tile(h_out, w_out, c_out, k, itemsize)
    nt = pl.cdiv(h_out, th)

    # Spatial zero-pad; extra bottom rows so every row tile (incl. the masked partial
    # last one) reads strictly in-bounds -> no OOB VMEM reads, no output slice copy.
    extra = nt * th - h_out
    h_pad = h + 2 * p + extra
    w_pad = w + 2 * p

    # VMEM budget: the whole padded image is resident per batch step (double buffered).
    img_bytes = c_in * h_pad * w_pad * itemsize
    out_tile_bytes = c_out * th * w_out * itemsize
    w_bytes = k * k * c_out * c_in * itemsize
    est = 2 * img_bytes + 2 * out_tile_bytes + w_bytes + 4 * c_out
    if est > (48 << 20):
        # TODO(synk): halo-tiled H (manual DMA) for very large feature maps.
        return _block_cbm_xla(x, w_folded, bias, stride=stride, pad=p)

    x_pad = jnp.pad(x, ((0, 0), (0, 0), (p, p + extra), (p, p)))
    w_taps = jnp.transpose(w_folded, (2, 3, 0, 1)).reshape(k * k, c_out, c_in)
    bias2d = bias.reshape(c_out, 1)

    params = dict(dimension_semantics=("parallel", "parallel"))
    if est > (12 << 20):  # only raise the scoped-VMEM limit when actually needed
        params["vmem_limit_bytes"] = min(int(est) + (4 << 20), 56 << 20)

    kern = functools.partial(_cbm_kernel, kernel=k, row_tile=th, w_out=w_out)
    return pl.pallas_call(
        kern,
        out_shape=jax.ShapeDtypeStruct((n, c_out, h_out, w_out), x.dtype),
        grid_spec=pltpu.PrefetchScalarGridSpec(
            num_scalar_prefetch=0,
            grid=(n, nt),
            in_specs=[
                # whole padded image per batch element; block index ignores the
                # H-tile axis -> fetched once per image, resident across row tiles
                pl.BlockSpec((1, c_in, h_pad, w_pad), lambda b, i: (b, 0, 0, 0)),
                pl.BlockSpec((k * k, c_out, c_in), lambda b, i: (0, 0, 0)),
                pl.BlockSpec((c_out, 1), lambda b, i: (0, 0)),
            ],
            out_specs=pl.BlockSpec((1, c_out, th, w_out), lambda b, i: (b, 0, i, 0)),
        ),
        compiler_params=pltpu.CompilerParams(**params),
    )(x_pad, w_taps, bias2d)


# ------------------------------------------------------------------- references
def _block_cbm_ref(x, conv_w, gamma, beta, mean, var, *, stride=1, eps=1e-5):
    k = conv_w.shape[-1]
    p = k // 2
    y = lax.conv_general_dilated(
        x, conv_w, (stride, stride), [(p, p), (p, p)],
        dimension_numbers=("NCHW", "OIHW", "NCHW"),
        precision=lax.Precision.HIGHEST)
    inv = 1.0 / jnp.sqrt(var + eps)
    y = (y - mean[None, :, None, None]) * (gamma * inv)[None, :, None, None] \
        + beta[None, :, None, None]
    return y + jnp.tanh(jax.nn.softplus(y))


# -------------------------------------------------------------------------- main
if __name__ == "__main__":
    key = jax.random.PRNGKey(0)
    ks = jax.random.split(key, 8)

    def make_params(k_param, c_in, c_out, k):
        kw_, kg, kb, km, kv = jax.random.split(k_param, 5)
        conv_w = jax.random.normal(kw_, (c_out, c_in, k, k), jnp.float32) \
            * (1.0 / (c_in * k * k) ** 0.5)
        gamma = 1.0 + 0.1 * jax.random.normal(kg, (c_out,), jnp.float32)
        beta = 0.1 * jax.random.normal(kb, (c_out,), jnp.float32)
        mean = 0.1 * jax.random.normal(km, (c_out,), jnp.float32)
        var = 1.0 + 0.1 * jax.random.uniform(kv, (c_out,), jnp.float32)
        return conv_w, gamma, beta, mean, var

    def check(x, prm, stride=1, tol=2e-3):
        # tol covers MXU f32 multi-pass vs XLA HIGHEST + the BN-fold reassociation
        y = jax.block_until_ready(block_cbm(x, *prm, stride=stride))
        y_ref = _block_cbm_ref(x, *prm, stride=stride)
        assert y.shape == y_ref.shape and y.dtype == x.dtype
        assert jnp.allclose(y, y_ref, atol=tol, rtol=tol), \
            float(jnp.max(jnp.abs(y - y_ref)))

    # 1) block_CBM(4 -> 8, kernel=3, stride=1) on (2, 4, 16, 16): main Pallas path,
    #    grid (2 batch, 2 row-tiles).
    x1 = jax.random.normal(ks[0], (2, 4, 16, 16), jnp.float32)
    check(x1, make_params(ks[1], 4, 8, 3))

    # 2) 1x1 conv (8 -> 16) on (1, 8, 16, 32): single-tap (K=1) path.
    x2 = 3.0 * jax.random.normal(ks[2], (1, 8, 16, 32), jnp.float32)
    check(x2, make_params(ks[3], 8, 16, 1))

    # 3) H not a multiple of the row tile (masked partial tile + extra bottom zero
    #    pad); scaled input pushes some conv outputs past the softplus clamp (>20).
    x3 = 8.0 * jax.random.normal(ks[4], (1, 3, 20, 24), jnp.float32)
    check(x3, make_params(ks[5], 3, 8, 3))

    # 4) stride=2 downsample block: XLA fallback path with fused Mish epilogue.
    x4 = jax.random.normal(ks[6], (1, 4, 16, 16), jnp.float32)
    check(x4, make_params(ks[7], 4, 8, 3), stride=2)

    print("KERNEL_OK")
</pallas_src>

<mosaic_0001>
module attributes {stable_mosaic.version = 11 : i64} {
  func.func @_cbm_kernel(%arg0: i32, %arg1: i32, %arg2: memref<1x4x18x18xf32, #tpu.memory_space<vmem>>, %arg3: memref<9x8x4xf32, #tpu.memory_space<vmem>>, %arg4: memref<8x1xf32, #tpu.memory_space<vmem>>, %arg5: memref<1x8x8x16xf32, #tpu.memory_space<vmem>>) attributes {dimension_semantics = [#tpu.dimension_semantics<parallel>, #tpu.dimension_semantics<parallel>], iteration_bounds = array<i64: 2, 2>, scalar_prefetch = 0 : i64, scratch_operands = 0 : i64, tpu.core_type = #tpu.core_type<tc>, window_params = [{transform_indices = @transform_0, window_bounds = array<i64: 1, 4, 18, 18>}, {pipeline_mode = #tpu.pipeline_mode<synchronous>, transform_indices = @transform_1, window_bounds = array<i64: 9, 8, 4>}, {pipeline_mode = #tpu.pipeline_mode<synchronous>, transform_indices = @transform_2, window_bounds = array<i64: 8, 1>}, {transform_indices = @transform_3, window_bounds = array<i64: 1, 8, 8, 16>}]} {
    %c8_i32 = arith.constant 8 : i32
    %0 = arith.muli %arg1, %c8_i32 : i32
    %cst = arith.constant 0.000000e+00 : f32
    %1 = vector.broadcast %cst : f32 to vector<8x16xf32>
    %c0_i32 = arith.constant 0 : i32
    %2 = arith.addi %0, %c0_i32 : i32
    %c0_i32_0 = arith.constant 0 : i32
    %3 = arith.addi %2, %c0_i32_0 : i32
    %c0 = arith.constant 0 : index
    %c0_1 = arith.constant 0 : index
    %4 = arith.index_cast %3 : i32 to index
    %c0_2 = arith.constant 0 : index
    %5 = vector.load %arg2[%c0, %c0_1, %4, %c0_2] : memref<1x4x18x18xf32, #tpu.memory_space<vmem>>, vector<1x4x1x16xf32>
    %6 = vector.shape_cast %5 : vector<1x4x1x16xf32> to vector<4x16xf32>
    %c0_3 = arith.constant 0 : index
    %c0_4 = arith.constant 0 : index
    %c0_5 = arith.constant 0 : index
    %7 = vector.load %arg3[%c0_3, %c0_4, %c0_5] : memref<9x8x4xf32, #tpu.memory_space<vmem>>, vector<1x8x4xf32>
    %8 = vector.shape_cast %7 : vector<1x8x4xf32> to vector<8x4xf32>
    %cst_6 = arith.constant dense<0.000000e+00> : vector<8x16xf32>
    %9 = tpu.matmul %8, %6, %cst_6 {dimension_numbers = #tpu.dot_dimension_numbers<[1], [0], [0], [1], [0, 0, 1, 1], [], []>} : vector<8x4xf32>, vector<4x16xf32>, vector<8x16xf32> -> vector<8x16xf32>
    %10 = arith.addf %1, %9 : vector<8x16xf32>
    %c0_i32_7 = arith.constant 0 : i32
    %11 = arith.addi %0, %c0_i32_7 : i32
    %c0_i32_8 = arith.constant 0 : i32
    %12 = arith.addi %11, %c0_i32_8 : i32
    %c0_9 = arith.constant 0 : index
    %c0_10 = arith.constant 0 : index
    %13 = arith.index_cast %12 : i32 to index
    %c1 = arith.constant 1 : index
    %14 = vector.load %arg2[%c0_9, %c0_10, %13, %c1] : memref<1x4x18x18xf32, #tpu.memory_space<vmem>>, vector<1x4x1x16xf32>
    %15 = vector.shape_cast %14 : vector<1x4x1x16xf32> to vector<4x16xf32>
    %c1_11 = arith.constant 1 : index
    %c0_12 = arith.constant 0 : index
    %c0_13 = arith.constant 0 : index
    %16 = vector.load %arg3[%c1_11, %c0_12, %c0_13] : memref<9x8x4xf32, #tpu.memory_space<vmem>>, vector<1x8x4xf32>
    %17 = vector.shape_cast %16 : vector<1x8x4xf32> to vector<8x4xf32>
    %cst_14 = arith.constant dense<0.000000e+00> : vector<8x16xf32>
    %18 = tpu.matmul %17, %15, %cst_14 {dimension_numbers = #tpu.dot_dimension_numbers<[1], [0], [0], [1], [0, 0, 1, 1], [], []>} : vector<8x4xf32>, vector<4x16xf32>, vector<8x16xf32> -> vector<8x16xf32>
    %19 = arith.addf %10, %18 : vector<8x16xf32>
    %c0_i32_15 = arith.constant 0 : i32
    %20 = arith.addi %0, %c0_i32_15 : i32
    %c0_i32_16 = arith.constant 0 : i32
    %21 = arith.addi %20, %c0_i32_16 : i32
    %c0_17 = arith.constant 0 : index
    %c0_18 = arith.constant 0 : index
    %22 = arith.index_cast %21 : i32 to index
    %c2 = arith.constant 2 : index
    %23 = vector.load %arg2[%c0_17, %c0_18, %22, %c2] : memref<1x4x18x18xf32, #tpu.memory_space<vmem>>, vector<1x4x1x16xf32>
    %24 = vector.shape_cast %23 : vector<1x4x1x16xf32> to vector<4x16xf32>
    %c2_19 = arith.constant 2 : index
    %c0_20 = arith.constant 0 : index
    %c0_21 = arith.constant 0 : index
    %25 = vector.load %arg3[%c2_19, %c0_20, %c0_21] : memref<9x8x4xf32, #tpu.memory_space<vmem>>, vector<1x8x4xf32>
    %26 = vector.shape_cast %25 : vector<1x8x4xf32> to vector<8x4xf32>
    %cst_22 = arith.constant dense<0.000000e+00> : vector<8x16xf32>
    %27 = tpu.matmul %26, %24, %cst_22 {dimension_numbers = #tpu.dot_dimension_numbers<[1], [0], [0], [1], [0, 0, 1, 1], [], []>} : vector<8x4xf32>, vector<4x16xf32>, vector<8x16xf32> -> vector<8x16xf32>
    %28 = arith.addf %19, %27 : vector<8x16xf32>
    %c0_i32_23 = arith.constant 0 : i32
    %29 = arith.addi %0, %c0_i32_23 : i32
    %c1_i32 = arith.constant 1 : i32
    %30 = arith.addi %29, %c1_i32 : i32
    %c0_24 = arith.constant 0 : index
    %c0_25 = arith.constant 0 : index
    %31 = arith.index_cast %30 : i32 to index
    %c0_26 = arith.constant 0 : index
    %32 = vector.load %arg2[%c0_24, %c0_25, %31, %c0_26] : memref<1x4x18x18xf32, #tpu.memory_space<vmem>>, vector<1x4x1x16xf32>
    %33 = vector.shape_cast %32 : vector<1x4x1x16xf32> to vector<4x16xf32>
    %c3 = arith.constant 3 : index
    %c0_27 = arith.constant 0 : index
    %c0_28 = arith.constant 0 : index
    %34 = vector.load %arg3[%c3, %c0_27, %c0_28] : memref<9x8x4xf32, #tpu.memory_space<vmem>>, vector<1x8x4xf32>
    %35 = vector.shape_cast %34 : vector<1x8x4xf32> to vector<8x4xf32>
    %cst_29 = arith.constant dense<0.000000e+00> : vector<8x16xf32>
    %36 = tpu.matmul %35, %33, %cst_29 {dimension_numbers = #tpu.dot_dimension_numbers<[1], [0], [0], [1], [0, 0, 1, 1], [], []>} : vector<8x4xf32>, vector<4x16xf32>, vector<8x16xf32> -> vector<8x16xf32>
    %37 = arith.addf %28, %36 : vector<8x16xf32>
    %c0_i32_30 = arith.constant 0 : i32
    %38 = arith.addi %0, %c0_i32_30 : i32
    %c1_i32_31 = arith.constant 1 : i32
    %39 = arith.addi %38, %c1_i32_31 : i32
    %c0_32 = arith.constant 0 : index
    %c0_33 = arith.constant 0 : index
    %40 = arith.index_cast %39 : i32 to index
    %c1_34 = arith.constant 1 : index
    %41 = vector.load %arg2[%c0_32, %c0_33, %40, %c1_34] : memref<1x4x18x18xf32, #tpu.memory_space<vmem>>, vector<1x4x1x16xf32>
    %42 = vector.shape_cast %41 : vector<1x4x1x16xf32> to vector<4x16xf32>
    %c4 = arith.constant 4 : index
    %c0_35 = arith.constant 0 : index
    %c0_36 = arith.constant 0 : index
    %43 = vector.load %arg3[%c4, %c0_35, %c0_36] : memref<9x8x4xf32, #tpu.memory_space<vmem>>, vector<1x8x4xf32>
    %44 = vector.shape_cast %43 : vector<1x8x4xf32> to vector<8x4xf32>
    %cst_37 = arith.constant dense<0.000000e+00> : vector<8x16xf32>
    %45 = tpu.matmul %44, %42, %cst_37 {dimension_numbers = #tpu.dot_dimension_numbers<[1], [0], [0], [1], [0, 0, 1, 1], [], []>} : vector<8x4xf32>, vector<4x16xf32>, vector<8x16xf32> -> vector<8x16xf32>
    %46 = arith.addf %37, %45 : vector<8x16xf32>
    %c0_i32_38 = arith.constant 0 : i32
    %47 = arith.addi %0, %c0_i32_38 : i32
    %c1_i32_39 = arith.constant 1 : i32
    %48 = arith.addi %47, %c1_i32_39 : i32
    %c0_40 = arith.constant 0 : index
    %c0_41 = arith.constant 0 : index
    %49 = arith.index_cast %48 : i32 to index
    %c2_42 = arith.constant 2 : index
    %50 = vector.load %arg2[%c0_40, %c0_41, %49, %c2_42] : memref<1x4x18x18xf32, #tpu.memory_space<vmem>>, vector<1x4x1x16xf32>
    %51 = vector.shape_cast %50 : vector<1x4x1x16xf32> to vector<4x16xf32>
    %c5 = arith.constant 5 : index
    %c0_43 = arith.constant 0 : index
    %c0_44 = arith.constant 0 : index
    %52 = vector.load %arg3[%c5, %c0_43, %c0_44] : memref<9x8x4xf32, #tpu.memory_space<vmem>>, vector<1x8x4xf32>
    %53 = vector.shape_cast %52 : vector<1x8x4xf32> to vector<8x4xf32>
    %cst_45 = arith.constant dense<0.000000e+00> : vector<8x16xf32>
    %54 = tpu.matmul %53, %51, %cst_45 {dimension_numbers = #tpu.dot_dimension_numbers<[1], [0], [0], [1], [0, 0, 1, 1], [], []>} : vector<8x4xf32>, vector<4x16xf32>, vector<8x16xf32> -> vector<8x16xf32>
    %55 = arith.addf %46, %54 : vector<8x16xf32>
    %c0_i32_46 = arith.constant 0 : i32
    %56 = arith.addi %0, %c0_i32_46 : i32
    %c2_i32 = arith.constant 2 : i32
    %57 = arith.addi %56, %c2_i32 : i32
    %c0_47 = arith.constant 0 : index
    %c0_48 = arith.constant 0 : index
    %58 = arith.index_cast %57 : i32 to index
    %c0_49 = arith.constant 0 : index
    %59 = vector.load %arg2[%c0_47, %c0_48, %58, %c0_49] : memref<1x4x18x18xf32, #tpu.memory_space<vmem>>, vector<1x4x1x16xf32>
    %60 = vector.shape_cast %59 : vector<1x4x1x16xf32> to vector<4x16xf32>
    %c6 = arith.constant 6 : index
    %c0_50 = arith.constant 0 : index
    %c0_51 = arith.constant 0 : index
    %61 = vector.load %arg3[%c6, %c0_50, %c0_51] : memref<9x8x4xf32, #tpu.memory_space<vmem>>, vector<1x8x4xf32>
    %62 = vector.shape_cast %61 : vector<1x8x4xf32> to vector<8x4xf32>
    %cst_52 = arith.constant dense<0.000000e+00> : vector<8x16xf32>
    %63 = tpu.matmul %62, %60, %cst_52 {dimension_numbers = #tpu.dot_dimension_numbers<[1], [0], [0], [1], [0, 0, 1, 1], [], []>} : vector<8x4xf32>, vector<4x16xf32>, vector<8x16xf32> -> vector<8x16xf32>
    %64 = arith.addf %55, %63 : vector<8x16xf32>
    %c0_i32_53 = arith.constant 0 : i32
    %65 = arith.addi %0, %c0_i32_53 : i32
    %c2_i32_54 = arith.constant 2 : i32
    %66 = arith.addi %65, %c2_i32_54 : i32
    %c0_55 = arith.constant 0 : index
    %c0_56 = arith.constant 0 : index
    %67 = arith.index_cast %66 : i32 to index
    %c1_57 = arith.constant 1 : index
    %68 = vector.load %arg2[%c0_55, %c0_56, %67, %c1_57] : memref<1x4x18x18xf32, #tpu.memory_space<vmem>>, vector<1x4x1x16xf32>
    %69 = vector.shape_cast %68 : vector<1x4x1x16xf32> to vector<4x16xf32>
    %c7 = arith.constant 7 : index
    %c0_58 = arith.constant 0 : index
    %c0_59 = arith.constant 0 : index
    %70 = vector.load %arg3[%c7, %c0_58, %c0_59] : memref<9x8x4xf32, #tpu.memory_space<vmem>>, vector<1x8x4xf32>
    %71 = vector.shape_cast %70 : vector<1x8x4xf32> to vector<8x4xf32>
    %cst_60 = arith.constant dense<0.000000e+00> : vector<8x16xf32>
    %72 = tpu.matmul %71, %69, %cst_60 {dimension_numbers = #tpu.dot_dimension_numbers<[1], [0], [0], [1], [0, 0, 1, 1], [], []>} : vector<8x4xf32>, vector<4x16xf32>, vector<8x16xf32> -> vector<8x16xf32>
    %73 = arith.addf %64, %72 : vector<8x16xf32>
    %c0_i32_61 = arith.constant 0 : i32
    %74 = arith.addi %0, %c0_i32_61 : i32
    %c2_i32_62 = arith.constant 2 : i32
    %75 = arith.addi %74, %c2_i32_62 : i32
    %c0_63 = arith.constant 0 : index
    %c0_64 = arith.constant 0 : index
    %76 = arith.index_cast %75 : i32 to index
    %c2_65 = arith.constant 2 : index
    %77 = vector.load %arg2[%c0_63, %c0_64, %76, %c2_65] : memref<1x4x18x18xf32, #tpu.memory_space<vmem>>, vector<1x4x1x16xf32>
    %78 = vector.shape_cast %77 : vector<1x4x1x16xf32> to vector<4x16xf32>
    %c8 = arith.constant 8 : index
    %c0_66 = arith.constant 0 : index
    %c0_67 = arith.constant 0 : index
    %79 = vector.load %arg3[%c8, %c0_66, %c0_67] : memref<9x8x4xf32, #tpu.memory_space<vmem>>, vector<1x8x4xf32>
    %80 = vector.shape_cast %79 : vector<1x8x4xf32> to vector<8x4xf32>
    %cst_68 = arith.constant dense<0.000000e+00> : vector<8x16xf32>
    %81 = tpu.matmul %80, %78, %cst_68 {dimension_numbers = #tpu.dot_dimension_numbers<[1], [0], [0], [1], [0, 0, 1, 1], [], []>} : vector<8x4xf32>, vector<4x16xf32>, vector<8x16xf32> -> vector<8x16xf32>
    %82 = arith.addf %73, %81 : vector<8x16xf32>
    %c0_69 = arith.constant 0 : index
    %c0_70 = arith.constant 0 : index
    %83 = vector.load %arg4[%c0_69, %c0_70] : memref<8x1xf32, #tpu.memory_space<vmem>>, vector<8x1xf32>
    %84 = vector.broadcast %83 : vector<8x1xf32> to vector<8x16xf32>
    %85 = arith.addf %82, %84 : vector<8x16xf32>
    %cst_71 = arith.constant 2.000000e+01 : f32
    %86 = vector.broadcast %cst_71 : f32 to vector<8x16xf32>
    %87 = arith.minimumf %85, %86 : vector<8x16xf32>
    %88 = math.exp %87 : vector<8x16xf32>
    %cst_72 = arith.constant 2.000000e+00 : f32
    %89 = vector.broadcast %cst_72 : f32 to vector<8x16xf32>
    %90 = arith.addf %88, %89 : vector<8x16xf32>
    %91 = arith.mulf %88, %90 : vector<8x16xf32>
    %cst_73 = arith.constant 2.000000e+00 : f32
    %92 = vector.broadcast %cst_73 : f32 to vector<8x16xf32>
    %93 = arith.addf %91, %92 : vector<8x16xf32>
    %94 = tpu.reciprocal %93 {approx = true} : vector<8x16xf32> -> vector<8x16xf32>
    %95 = arith.mulf %93, %94 : vector<8x16xf32>
    %cst_74 = arith.constant 2.000000e+00 : f32
    %96 = vector.broadcast %cst_74 : f32 to vector<8x16xf32>
    %97 = arith.subf %96, %95 : vector<8x16xf32>
    %98 = arith.mulf %94, %97 : vector<8x16xf32>
    %cst_75 = arith.constant 1.000000e+00 : f32
    %99 = vector.broadcast %cst_75 : f32 to vector<8x16xf32>
    %100 = arith.addf %85, %99 : vector<8x16xf32>
    %cst_76 = arith.constant 2.000000e+00 : f32
    %101 = vector.broadcast %cst_76 : f32 to vector<8x16xf32>
    %102 = arith.mulf %101, %98 : vector<8x16xf32>
    %103 = arith.subf %100, %102 : vector<8x16xf32>
    %c0_77 = arith.constant 0 : index
    %c0_78 = arith.constant 0 : index
    %c0_79 = arith.constant 0 : index
    %c0_80 = arith.constant 0 : index
    %104 = vector.load %arg5[%c0_77, %c0_78, %c0_79, %c0_80] : memref<1x8x8x16xf32, #tpu.memory_space<vmem>>, vector<1x8x1x16xf32>
    %105 = vector.shape_cast %104 : vector<1x8x1x16xf32> to vector<8x16xf32>
    %106 = vector.shape_cast %103 : vector<8x16xf32> to vector<1x8x1x16xf32>
    tpu.vector_store %arg5[%c0_77, %c0_78, %c0_79, %c0_80], %106 {strides = array<i32>} : memref<1x8x8x16xf32, #tpu.memory_space<vmem>>, vector<1x8x1x16xf32>,
    %cst_81 = arith.constant 0.000000e+00 : f32
    %107 = vector.broadcast %cst_81 : f32 to vector<8x16xf32>
    %c1_i32_82 = arith.constant 1 : i32
    %108 = arith.addi %0, %c1_i32_82 : i32
    %c0_i32_83 = arith.constant 0 : i32
    %109 = arith.addi %108, %c0_i32_83 : i32
    %c0_84 = arith.constant 0 : index
    %c0_85 = arith.constant 0 : index
    %110 = arith.index_cast %109 : i32 to index
    %c0_86 = arith.constant 0 : index
    %111 = vector.load %arg2[%c0_84, %c0_85, %110, %c0_86] : memref<1x4x18x18xf32, #tpu.memory_space<vmem>>, vector<1x4x1x16xf32>
    %112 = vector.shape_cast %111 : vector<1x4x1x16xf32> to vector<4x16xf32>
    %c0_87 = arith.constant 0 : index
    %c0_88 = arith.constant 0 : index
    %c0_89 = arith.constant 0 : index
    %113 = vector.load %arg3[%c0_87, %c0_88, %c0_89] : memref<9x8x4xf32, #tpu.memory_space<vmem>>, vector<1x8x4xf32>
    %114 = vector.shape_cast %113 : vector<1x8x4xf32> to vector<8x4xf32>
    %cst_90 = arith.constant dense<0.000000e+00> : vector<8x16xf32>
    %115 = tpu.matmul %114, %112, %cst_90 {dimension_numbers = #tpu.dot_dimension_numbers<[1], [0], [0], [1], [0, 0, 1, 1], [], []>} : vector<8x4xf32>, vector<4x16xf32>, vector<8x16xf32> -> vector<8x16xf32>
    %116 = arith.addf %107, %115 : vector<8x16xf32>
    %c1_i32_91 = arith.constant 1 : i32
    %117 = arith.addi %0, %c1_i32_91 : i32
    %c0_i32_92 = arith.constant 0 : i32
    %118 = arith.addi %117, %c0_i32_92 : i32
    %c0_93 = arith.constant 0 : index
    %c0_94 = arith.constant 0 : index
    %119 = arith.index_cast %118 : i32 to index
    %c1_95 = arith.constant 1 : index
    %120 = vector.load %arg2[%c0_93, %c0_94, %119, %c1_95] : memref<1x4x18x18xf32, #tpu.memory_space<vmem>>, vector<1x4x1x16xf32>
    %121 = vector.shape_cast %120 : vector<1x4x1x16xf32> to vector<4x16xf32>
    %c1_96 = arith.constant 1 : index
    %c0_97 = arith.constant 0 : index
    %c0_98 = arith.constant 0 : index
    %122 = vector.load %arg3[%c1_96, %c0_97, %c0_98] : memref<9x8x4xf32, #tpu.memory_space<vmem>>, vector<1x8x4xf32>
    %123 = vector.shape_cast %122 : vector<1x8x4xf32> to vector<8x4xf32>
    %cst_99 = arith.constant dense<0.000000e+00> : vector<8x16xf32>
    %124 = tpu.matmul %123, %121, %cst_99 {dimension_numbers = #tpu.dot_dimension_numbers<[1], [0], [0], [1], [0, 0, 1, 1], [], []>} : vector<8x4xf32>, vector<4x16xf32>, vector<8x16xf32> -> vector<8x16xf32>
    %125 = arith.addf %116, %124 : vector<8x16xf32>
    %c1_i32_100 = arith.constant 1 : i32
    %126 = arith.addi %0, %c1_i32_100 : i32
    %c0_i32_101 = arith.constant 0 : i32
    %127 = arith.addi %126, %c0_i32_101 : i32
    %c0_102 = arith.constant 0 : index
    %c0_103 = arith.constant 0 : index
    %128 = arith.index_cast %127 : i32 to index
    %c2_104 = arith.constant 2 : index
    %129 = vector.load %arg2[%c0_102, %c0_103, %128, %c2_104] : memref<1x4x18x18xf32, #tpu.memory_space<vmem>>, vector<1x4x1x16xf32>
    %130 = vector.shape_cast %129 : vector<1x4x1x16xf32> to vector<4x16xf32>
    %c2_105 = arith.constant 2 : index
    %c0_106 = arith.constant 0 : index
    %c0_107 = arith.constant 0 : index
    %131 = vector.load %arg3[%c2_105, %c0_106, %c0_107] : memref<9x8x4xf32, #tpu.memory_space<vmem>>, vector<1x8x4xf32>
    %132 = vector.shape_cast %131 : vector<1x8x4xf32> to vector<8x4xf32>
    %cst_108 = arith.constant dense<0.000000e+00> : vector<8x16xf32>
    %133 = tpu.matmul %132, %130, %cst_108 {dimension_numbers = #tpu.dot_dimension_numbers<[1], [0], [0], [1], [0, 0, 1, 1], [], []>} : vector<8x4xf32>, vector<4x16xf32>, vector<8x16xf32> -> vector<8x16xf32>
    %134 = arith.addf %125, %133 : vector<8x16xf32>
    %c1_i32_109 = arith.constant 1 : i32
    %135 = arith.addi %0, %c1_i32_109 : i32
    %c1_i32_110 = arith.constant 1 : i32
    %136 = arith.addi %135, %c1_i32_110 : i32
    %c0_111 = arith.constant 0 : index
    %c0_112 = arith.constant 0 : index
    %137 = arith.index_cast %136 : i32 to index
    %c0_113 = arith.constant 0 : index
    %138 = vector.load %arg2[%c0_111, %c0_112, %137, %c0_113] : memref<1x4x18x18xf32, #tpu.memory_space<vmem>>, vector<1x4x1x16xf32>
    %139 = vector.shape_cast %138 : vector<1x4x1x16xf32> to vector<4x16xf32>
    %c3_114 = arith.constant 3 : index
    %c0_115 = arith.constant 0 : index
    %c0_116 = arith.constant 0 : index
    %140 = vector.load %arg3[%c3_114, %c0_115, %c0_116] : memref<9x8x4xf32, #tpu.memory_space<vmem>>, vector<1x8x4xf32>
    %141 = vector.shape_cast %140 : vector<1x8x4xf32> to vector<8x4xf32>
    %cst_117 = arith.constant dense<0.000000e+00> : vector<8x16xf32>
    %142 = tpu.matmul %141, %139, %cst_117 {dimension_numbers = #tpu.dot_dimension_numbers<[1], [0], [0], [1], [0, 0, 1, 1], [], []>} : vector<8x4xf32>, vector<4x16xf32>, vector<8x16xf32> -> vector<8x16xf32>
    %143 = arith.addf %134, %142 : vector<8x16xf32>
    %c1_i32_118 = arith.constant 1 : i32
    %144 = arith.addi %0, %c1_i32_118 : i32
    %c1_i32_119 = arith.constant 1 : i32
    %145 = arith.addi %144, %c1_i32_119 : i32
    %c0_120 = arith.constant 0 : index
    %c0_121 = arith.constant 0 : index
    %146 = arith.index_cast %145 : i32 to index
    %c1_122 = arith.constant 1 : index
    %147 = vector.load %arg2[%c0_120, %c0_121, %146, %c1_122] : memref<1x4x18x18xf32, #tpu.memory_space<vmem>>, vector<1x4x1x16xf32>
    %148 = vector.shape_cast %147 : vector<1x4x1x16xf32> to vector<4x16xf32>
    %c4_123 = arith.constant 4 : index
    %c0_124 = arith.constant 0 : index
    %c0_125 = arith.constant 0 : index
    %149 = vector.load %arg3[%c4_123, %c0_124, %c0_125] : memref<9x8x4xf32, #tpu.memory_space<vmem>>, vector<1x8x4xf32>
    %150 = vector.shape_cast %149 : vector<1x8x4xf32> to vector<8x4xf32>
    %cst_126 = arith.constant dense<0.000000e+00> : vector<8x16xf32>
    %151 = tpu.matmul %150, %148, %cst_126 {dimension_numbers = #tpu.dot_dimension_numbers<[1], [0], [0], [1], [0, 0, 1, 1], [], []>} : vector<8x4xf32>, vector<4x16xf32>, vector<8x16xf32> -> vector<8x16xf32>
    %152 = arith.addf %143, %151 : vector<8x16xf32>
    %c1_i32_127 = arith.constant 1 : i32
    %153 = arith.addi %0, %c1_i32_127 : i32
    %c1_i32_128 = arith.constant 1 : i32
    %154 = arith.addi %153, %c1_i32_128 : i32
    %c0_129 = arith.constant 0 : index
    %c0_130 = arith.constant 0 : index
    %155 = arith.index_cast %154 : i32 to index
    %c2_131 = arith.constant 2 : index
    %156 = vector.load %arg2[%c0_129, %c0_130, %155, %c2_131] : memref<1x4x18x18xf32, #tpu.memory_space<vmem>>, vector<1x4x1x16xf32>
    %157 = vector.shape_cast %156 : vector<1x4x1x16xf32> to vector<4x16xf32>
    %c5_132 = arith.constant 5 : index
    %c0_133 = arith.constant 0 : index
    %c0_134 = arith.constant 0 : index
    %158 = vector.load %arg3[%c5_132, %c0_133, %c0_134] : memref<9x8x4xf32, #tpu.memory_space<vmem>>, vector<1x8x4xf32>
    %159 = vector.shape_cast %158 : vector<1x8x4xf32> to vector<8x4xf32>
    %cst_135 = arith.constant dense<0.000000e+00> : vector<8x16xf32>
    %160 = tpu.matmul %159, %157, %cst_135 {dimension_numbers = #tpu.dot_dimension_numbers<[1], [0], [0], [1], [0, 0, 1, 1], [], []>} : vector<8x4xf32>, vector<4x16xf32>, vector<8x16xf32> -> vector<8x16xf32>
    %161 = arith.addf %152, %160 : vector<8x16xf32>
    %c1_i32_136 = arith.constant 1 : i32
    %162 = arith.addi %0, %c1_i32_136 : i32
    %c2_i32_137 = arith.constant 2 : i32
    %163 = arith.addi %162, %c2_i32_137 : i32
    %c0_138 = arith.constant 0 : index
    %c0_139 = arith.constant 0 : index
    %164 = arith.index_cast %163 : i32 to index
    %c0_140 = arith.constant 0 : index
    %165 = vector.load %arg2[%c0_138, %c0_139, %164, %c0_140] : memref<1x4x18x18xf32, #tpu.memory_space<vmem>>, vector<1x4x1x16xf32>
    %166 = vector.shape_cast %165 : vector<1x4x1x16xf32> to vector<4x16xf32>
    %c6_141 = arith.constant 6 : index
    %c0_142 = arith.constant 0 : index
    %c0_143 = arith.constant 0 : index
    %167 = vector.load %arg3[%c6_141, %c0_142, %c0_143] : memref<9x8x4xf32, #tpu.memory_space<vmem>>, vector<1x8x4xf32>
    %168 = vector.shape_cast %167 : vector<1x8x4xf32> to vector<8x4xf32>
    %cst_144 = arith.constant dense<0.000000e+00> : vector<8x16xf32>
    %169 = tpu.matmul %168, %166, %cst_144 {dimension_numbers = #tpu.dot_dimension_numbers<[1], [0], [0], [1], [0, 0, 1, 1], [], []>} : vector<8x4xf32>, vector<4x16xf32>, vector<8x16xf32> -> vector<8x16xf32>
    %170 = arith.addf %161, %169 : vector<8x16xf32>
    %c1_i32_145 = arith.constant 1 : i32
    %171 = arith.addi %0, %c1_i32_145 : i32
    %c2_i32_146 = arith.constant 2 : i32
    %172 = arith.addi %171, %c2_i32_146 : i32
    %c0_147 = arith.constant 0 : index
    %c0_148 = arith.constant 0 : index
    %173 = arith.index_cast %172 : i32 to index
    %c1_149 = arith.constant 1 : index
    %174 = vector.load %arg2[%c0_147, %c0_148, %173, %c1_149] : memref<1x4x18x18xf32, #tpu.memory_space<vmem>>, vector<1x4x1x16xf32>
    %175 = vector.shape_cast %174 : vector<1x4x1x16xf32> to vector<4x16xf32>
    %c7_150 = arith.constant 7 : index
    %c0_151 = arith.constant 0 : index
    %c0_152 = arith.constant 0 : index
    %176 = vector.load %arg3[%c7_150, %c0_151, %c0_152] : memref<9x8x4xf32, #tpu.memory_space<vmem>>, vector<1x8x4xf32>
    %177 = vector.shape_cast %176 : vector<1x8x4xf32> to vector<8x4xf32>
    %cst_153 = arith.constant dense<0.000000e+00> : vector<8x16xf32>
    %178 = tpu.matmul %177, %175, %cst_153 {dimension_numbers = #tpu.dot_dimension_numbers<[1], [0], [0], [1], [0, 0, 1, 1], [], []>} : vector<8x4xf32>, vector<4x16xf32>, vector<8x16xf32> -> vector<8x16xf32>
    %179 = arith.addf %170, %178 : vector<8x16xf32>
    %c1_i32_154 = arith.constant 1 : i32
    %180 = arith.addi %0, %c1_i32_154 : i32
    %c2_i32_155 = arith.constant 2 : i32
    %181 = arith.addi %180, %c2_i32_155 : i32
    %c0_156 = arith.constant 0 : index
    %c0_157 = arith.constant 0 : index
    %182 = arith.index_cast %181 : i32 to index
    %c2_158 = arith.constant 2 : index
    %183 = vector.load %arg2[%c0_156, %c0_157, %182, %c2_158] : memref<1x4x18x18xf32, #tpu.memory_space<vmem>>, vector<1x4x1x16xf32>
    %184 = vector.shape_cast %183 : vector<1x4x1x16xf32> to vector<4x16xf32>
    %c8_159 = arith.constant 8 : index
    %c0_160 = arith.constant 0 : index
    %c0_161 = arith.constant 0 : index
    %185 = vector.load %arg3[%c8_159, %c0_160, %c0_161] : memref<9x8x4xf32, #tpu.memory_space<vmem>>, vector<1x8x4xf32>
    %186 = vector.shape_cast %185 : vector<1x8x4xf32> to vector<8x4xf32>
    %cst_162 = arith.constant dense<0.000000e+00> : vector<8x16xf32>
    %187 = tpu.matmul %186, %184, %cst_162 {dimension_numbers = #tpu.dot_dimension_numbers<[1], [0], [0], [1], [0, 0, 1, 1], [], []>} : vector<8x4xf32>, vector<4x16xf32>, vector<8x16xf32> -> vector<8x16xf32>
    %188 = arith.addf %179, %187 : vector<8x16xf32>
    %c0_163 = arith.constant 0 : index
    %c0_164 = arith.constant 0 : index
    %189 = vector.load %arg4[%c0_163, %c0_164] : memref<8x1xf32, #tpu.memory_space<vmem>>, vector<8x1xf32>
    %190 = vector.broadcast %189 : vector<8x1xf32> to vector<8x16xf32>
    %191 = arith.addf %188, %190 : vector<8x16xf32>
    %cst_165 = arith.constant 2.000000e+01 : f32
    %192 = vector.broadcast %cst_165 : f32 to vector<8x16xf32>
    %193 = arith.minimumf %191, %192 : vector<8x16xf32>
    %194 = math.exp %193 : vector<8x16xf32>
    %cst_166 = arith.constant 2.000000e+00 : f32
    %195 = vector.broadcast %cst_166 : f32 to vector<8x16xf32>
    %196 = arith.addf %194, %195 : vector<8x16xf32>
    %197 = arith.mulf %194, %196 : vector<8x16xf32>
    %cst_167 = arith.constant 2.000000e+00 : f32
    %198 = vector.broadcast %cst_167 : f32 to vector<8x16xf32>
    %199 = arith.addf %197, %198 : vector<8x16xf32>
    %200 = tpu.reciprocal %199 {approx = true} : vector<8x16xf32> -> vector<8x16xf32>
    %201 = arith.mulf %199, %200 : vector<8x16xf32>
    %cst_168 = arith.constant 2.000000e+00 : f32
    %202 = vector.broadcast %cst_168 : f32 to vector<8x16xf32>
    %203 = arith.subf %202, %201 : vector<8x16xf32>
    %204 = arith.mulf %200, %203 : vector<8x16xf32>
    %cst_169 = arith.constant 1.000000e+00 : f32
    %205 = vector.broadcast %cst_169 : f32 to vector<8x16xf32>
    %206 = arith.addf %191, %205 : vector<8x16xf32>
    %cst_170 = arith.constant 2.000000e+00 : f32
    %207 = vector.broadcast %cst_170 : f32 to vector<8x16xf32>
    %208 = arith.mulf %207, %204 : vector<8x16xf32>
    %209 = arith.subf %206, %208 : vector<8x16xf32>
    %c0_171 = arith.constant 0 : index
    %c0_172 = arith.constant 0 : index
    %c1_173 = arith.constant 1 : index
    %c0_174 = arith.constant 0 : index
    %210 = vector.load %arg5[%c0_171, %c0_172, %c1_173, %c0_174] : memref<1x8x8x16xf32, #tpu.memory_space<vmem>>, vector<1x8x1x16xf32>
    %211 = vector.shape_cast %210 : vector<1x8x1x16xf32> to vector<8x16xf32>
    %212 = vector.shape_cast %209 : vector<8x16xf32> to vector<1x8x1x16xf32>
    tpu.vector_store %arg5[%c0_171, %c0_172, %c1_173, %c0_174], %212 {strides = array<i32>} : memref<1x8x8x16xf32, #tpu.memory_space<vmem>>, vector<1x8x1x16xf32>,
    %cst_175 = arith.constant 0.000000e+00 : f32
    %213 = vector.broadcast %cst_175 : f32 to vector<8x16xf32>
    %c2_i32_176 = arith.constant 2 : i32
    %214 = arith.addi %0, %c2_i32_176 : i32
    %c0_i32_177 = arith.constant 0 : i32
    %215 = arith.addi %214, %c0_i32_177 : i32
    %c0_178 = arith.constant 0 : index
    %c0_179 = arith.constant 0 : index
    %216 = arith.index_cast %215 : i32 to index
    %c0_180 = arith.constant 0 : index
    %217 = vector.load %arg2[%c0_178, %c0_179, %216, %c0_180] : memref<1x4x18x18xf32, #tpu.memory_space<vmem>>, vector<1x4x1x16xf32>
    %218 = vector.shape_cast %217 : vector<1x4x1x16xf32> to vector<4x16xf32>
    %c0_181 = arith.constant 0 : index
    %c0_182 = arith.constant 0 : index
    %c0_183 = arith.constant 0 : index
    %219 = vector.load %arg3[%c0_181, %c0_182, %c0_183] : memref<9x8x4xf32, #tpu.memory_space<vmem>>, vector<1x8x4xf32>
    %220 = vector.shape_cast %219 : vector<1x8x4xf32> to vector<8x4xf32>
    %cst_184 = arith.constant dense<0.000000e+00> : vector<8x16xf32>
    %221 = tpu.matmul %220, %218, %cst_184 {dimension_numbers = #tpu.dot_dimension_numbers<[1], [0], [0], [1], [0, 0, 1, 1], [], []>} : vector<8x4xf32>, vector<4x16xf32>, vector<8x16xf32> -> vector<8x16xf32>
    %222 = arith.addf %213, %221 : vector<8x16xf32>
    %c2_i32_185 = arith.constant 2 : i32
    %223 = arith.addi %0, %c2_i32_185 : i32
    %c0_i32_186 = arith.constant 0 : i32
    %224 = arith.addi %223, %c0_i32_186 : i32
    %c0_187 = arith.constant 0 : index
    %c0_188 = arith.constant 0 : index
    %225 = arith.index_cast %224 : i32 to index
    %c1_189 = arith.constant 1 : index
    %226 = vector.load %arg2[%c0_187, %c0_188, %225, %c1_189] : memref<1x4x18x18xf32, #tpu.memory_space<vmem>>, vector<1x4x1x16xf32>
    %227 = vector.shape_cast %226 : vector<1x4x1x16xf32> to vector<4x16xf32>
    %c1_190 = arith.constant 1 : index
    %c0_191 = arith.constant 0 : index
    %c0_192 = arith.constant 0 : index
    %228 = vector.load %arg3[%c1_190, %c0_191, %c0_192] : memref<9x8x4xf32, #tpu.memory_space<vmem>>, vector<1x8x4xf32>
    %229 = vector.shape_cast %228 : vector<1x8x4xf32> to vector<8x4xf32>
    %cst_193 = arith.constant dense<0.000000e+00> : vector<8x16xf32>
    %230 = tpu.matmul %229, %227, %cst_193 {dimension_numbers = #tpu.dot_dimension_numbers<[1], [0], [0], [1], [0, 0, 1, 1], [], []>} : vector<8x4xf32>, vector<4x16xf32>, vector<8x16xf32> -> vector<8x16xf32>
    %231 = arith.addf %222, %230 : vector<8x16xf32>
    %c2_i32_194 = arith.constant 2 : i32
    %232 = arith.addi %0, %c2_i32_194 : i32
    %c0_i32_195 = arith.constant 0 : i32
    %233 = arith.addi %232, %c0_i32_195 : i32
    %c0_196 = arith.constant 0 : index
    %c0_197 = arith.constant 0 : index
    %234 = arith.index_cast %233 : i32 to index
    %c2_198 = arith.constant 2 : index
    %235 = vector.load %arg2[%c0_196, %c0_197, %234, %c2_198] : memref<1x4x18x18xf32, #tpu.memory_space<vmem>>, vector<1x4x1x16xf32>
    %236 = vector.shape_cast %235 : vector<1x4x1x16xf32> to vector<4x16xf32>
    %c2_199 = arith.constant 2 : index
    %c0_200 = arith.constant 0 : index
    %c0_201 = arith.constant 0 : index
    %237 = vector.load %arg3[%c2_199, %c0_200, %c0_201] : memref<9x8x4xf32, #tpu.memory_space<vmem>>, vector<1x8x4xf32>
    %238 = vector.shape_cast %237 : vector<1x8x4xf32> to vector<8x4xf32>
    %cst_202 = arith.constant dense<0.000000e+00> : vector<8x16xf32>
    %239 = tpu.matmul %238, %236, %cst_202 {dimension_numbers = #tpu.dot_dimension_numbers<[1], [0], [0], [1], [0, 0, 1, 1], [], []>} : vector<8x4xf32>, vector<4x16xf32>, vector<8x16xf32> -> vector<8x16xf32>
    %240 = arith.addf %231, %239 : vector<8x16xf32>
    %c2_i32_203 = arith.constant 2 : i32
    %241 = arith.addi %0, %c2_i32_203 : i32
    %c1_i32_204 = arith.constant 1 : i32
    %242 = arith.addi %241, %c1_i32_204 : i32
    %c0_205 = arith.constant 0 : index
    %c0_206 = arith.constant 0 : index
    %243 = arith.index_cast %242 : i32 to index
    %c0_207 = arith.constant 0 : index
    %244 = vector.load %arg2[%c0_205, %c0_206, %243, %c0_207] : memref<1x4x18x18xf32, #tpu.memory_space<vmem>>, vector<1x4x1x16xf32>
    %245 = vector.shape_cast %244 : vector<1x4x1x16xf32> to vector<4x16xf32>
    %c3_208 = arith.constant 3 : index
    %c0_209 = arith.constant 0 : index
    %c0_210 = arith.constant 0 : index
    %246 = vector.load %arg3[%c3_208, %c0_209, %c0_210] : memref<9x8x4xf32, #tpu.memory_space<vmem>>, vector<1x8x4xf32>
    %247 = vector.shape_cast %246 : vector<1x8x4xf32> to vector<8x4xf32>
    %cst_211 = arith.constant dense<0.000000e+00> : vector<8x16xf32>
    %248 = tpu.matmul %247, %245, %cst_211 {dimension_numbers = #tpu.dot_dimension_numbers<[1], [0], [0], [1], [0, 0, 1, 1], [], []>} : vector<8x4xf32>, vector<4x16xf32>, vector<8x16xf32> -> vector<8x16xf32>
    %249 = arith.addf %240, %248 : vector<8x16xf32>
    %c2_i32_212 = arith.constant 2 : i32
    %250 = arith.addi %0, %c2_i32_212 : i32
    %c1_i32_213 = arith.constant 1 : i32
    %251 = arith.addi %250, %c1_i32_213 : i32
    %c0_214 = arith.constant 0 : index
    %c0_215 = arith.constant 0 : index
    %252 = arith.index_cast %251 : i32 to index
    %c1_216 = arith.constant 1 : index
    %253 = vector.load %arg2[%c0_214, %c0_215, %252, %c1_216] : memref<1x4x18x18xf32, #tpu.memory_space<vmem>>, vector<1x4x1x16xf32>
    %254 = vector.shape_cast %253 : vector<1x4x1x16xf32> to vector<4x16xf32>
    %c4_217 = arith.constant 4 : index
    %c0_218 = arith.constant 0 : index
    %c0_219 = arith.constant 0 : index
    %255 = vector.load %arg3[%c4_217, %c0_218, %c0_219] : memref<9x8x4xf32, #tpu.memory_space<vmem>>, vector<1x8x4xf32>
    %256 = vector.shape_cast %255 : vector<1x8x4xf32> to vector<8x4xf32>
    %cst_220 = arith.constant dense<0.000000e+00> : vector<8x16xf32>
    %257 = tpu.matmul %256, %254, %cst_220 {dimension_numbers = #tpu.dot_dimension_numbers<[1], [0], [0], [1], [0, 0, 1, 1], [], []>} : vector<8x4xf32>, vector<4x16xf32>, vector<8x16xf32> -> vector<8x16xf32>
    %258 = arith.addf %249, %257 : vector<8x16xf32>
    %c2_i32_221 = arith.constant 2 : i32
    %259 = arith.addi %0, %c2_i32_221 : i32
    %c1_i32_222 = arith.constant 1 : i32
    %260 = arith.addi %259, %c1_i32_222 : i32
    %c0_223 = arith.constant 0 : index
    %c0_224 = arith.constant 0 : index
    %261 = arith.index_cast %260 : i32 to index
    %c2_225 = arith.constant 2 : index
    %262 = vector.load %arg2[%c0_223, %c0_224, %261, %c2_225] : memref<1x4x18x18xf32, #tpu.memory_space<vmem>>, vector<1x4x1x16xf32>
    %263 = vector.shape_cast %262 : vector<1x4x1x16xf32> to vector<4x16xf32>
    %c5_226 = arith.constant 5 : index
    %c0_227 = arith.constant 0 : index
    %c0_228 = arith.constant 0 : index
    %264 = vector.load %arg3[%c5_226, %c0_227, %c0_228] : memref<9x8x4xf32, #tpu.memory_space<vmem>>, vector<1x8x4xf32>
    %265 = vector.shape_cast %264 : vector<1x8x4xf32> to vector<8x4xf32>
    %cst_229 = arith.constant dense<0.000000e+00> : vector<8x16xf32>
    %266 = tpu.matmul %265, %263, %cst_229 {dimension_numbers = #tpu.dot_dimension_numbers<[1], [0], [0], [1], [0, 0, 1, 1], [], []>} : vector<8x4xf32>, vector<4x16xf32>, vector<8x16xf32> -> vector<8x16xf32>
    %267 = arith.addf %258, %266 : vector<8x16xf32>
    %c2_i32_230 = arith.constant 2 : i32
    %268 = arith.addi %0, %c2_i32_230 : i32
    %c2_i32_231 = arith.constant 2 : i32
    %269 = arith.addi %268, %c2_i32_231 : i32
    %c0_232 = arith.constant 0 : index
    %c0_233 = arith.constant 0 : index
    %270 = arith.index_cast %269 : i32 to index
    %c0_234 = arith.constant 0 : index
    %271 = vector.load %arg2[%c0_232, %c0_233, %270, %c0_234] : memref<1x4x18x18xf32, #tpu.memory_space<vmem>>, vector<1x4x1x16xf32>
    %272 = vector.shape_cast %271 : vector<1x4x1x16xf32> to vector<4x16xf32>
    %c6_235 = arith.constant 6 : index
    %c0_236 = arith.constant 0 : index
    %c0_237 = arith.constant 0 : index
    %273 = vector.load %arg3[%c6_235, %c0_236, %c0_237] : memref<9x8x4xf32, #tpu.memory_space<vmem>>, vector<1x8x4xf32>
    %274 = vector.shape_cast %273 : vector<1x8x4xf32> to vector<8x4xf32>
    %cst_238 = arith.constant dense<0.000000e+00> : vector<8x16xf32>
    %275 = tpu.matmul %274, %272, %cst_238 {dimension_numbers = #tpu.dot_dimension_numbers<[1], [0], [0], [1], [0, 0, 1, 1], [], []>} : vector<8x4xf32>, vector<4x16xf32>, vector<8x16xf32> -> vector<8x16xf32>
    %276 = arith.addf %267, %275 : vector<8x16xf32>
    %c2_i32_239 = arith.constant 2 : i32
    %277 = arith.addi %0, %c2_i32_239 : i32
    %c2_i32_240 = arith.constant 2 : i32
    %278 = arith.addi %277, %c2_i32_240 : i32
    %c0_241 = arith.constant 0 : index
    %c0_242 = arith.constant 0 : index
    %279 = arith.index_cast %278 : i32 to index
    %c1_243 = arith.constant 1 : index
    %280 = vector.load %arg2[%c0_241, %c0_242, %279, %c1_243] : memref<1x4x18x18xf32, #tpu.memory_space<vmem>>, vector<1x4x1x16xf32>
    %281 = vector.shape_cast %280 : vector<1x4x1x16xf32> to vector<4x16xf32>
    %c7_244 = arith.constant 7 : index
    %c0_245 = arith.constant 0 : index
    %c0_246 = arith.constant 0 : index
    %282 = vector.load %arg3[%c7_244, %c0_245, %c0_246] : memref<9x8x4xf32, #tpu.memory_space<vmem>>, vector<1x8x4xf32>
    %283 = vector.shape_cast %282 : vector<1x8x4xf32> to vector<8x4xf32>
    %cst_247 = arith.constant dense<0.000000e+00> : vector<8x16xf32>
    %284 = tpu.matmul %283, %281, %cst_247 {dimension_numbers = #tpu.dot_dimension_numbers<[1], [0], [0], [1], [0, 0, 1, 1], [], []>} : vector<8x4xf32>, vector<4x16xf32>, vector<8x16xf32> -> vector<8x16xf32>
    %285 = arith.addf %276, %284 : vector<8x16xf32>
    %c2_i32_248 = arith.constant 2 : i32
    %286 = arith.addi %0, %c2_i32_248 : i32
    %c2_i32_249 = arith.constant 2 : i32
    %287 = arith.addi %286, %c2_i32_249 : i32
    %c0_250 = arith.constant 0 : index
    %c0_251 = arith.constant 0 : index
    %288 = arith.index_cast %287 : i32 to index
    %c2_252 = arith.constant 2 : index
    %289 = vector.load %arg2[%c0_250, %c0_251, %288, %c2_252] : memref<1x4x18x18xf32, #tpu.memory_space<vmem>>, vector<1x4x1x16xf32>
    %290 = vector.shape_cast %289 : vector<1x4x1x16xf32> to vector<4x16xf32>
    %c8_253 = arith.constant 8 : index
    %c0_254 = arith.constant 0 : index
    %c0_255 = arith.constant 0 : index
    %291 = vector.load %arg3[%c8_253, %c0_254, %c0_255] : memref<9x8x4xf32, #tpu.memory_space<vmem>>, vector<1x8x4xf32>
    %292 = vector.shape_cast %291 : vector<1x8x4xf32> to vector<8x4xf32>
    %cst_256 = arith.constant dense<0.000000e+00> : vector<8x16xf32>
    %293 = tpu.matmul %292, %290, %cst_256 {dimension_numbers = #tpu.dot_dimension_numbers<[1], [0], [0], [1], [0, 0, 1, 1], [], []>} : vector<8x4xf32>, vector<4x16xf32>, vector<8x16xf32> -> vector<8x16xf32>
    %294 = arith.addf %285, %293 : vector<8x16xf32>
    %c0_257 = arith.constant 0 : index
    %c0_258 = arith.constant 0 : index
    %295 = vector.load %arg4[%c0_257, %c0_258] : memref<8x1xf32, #tpu.memory_space<vmem>>, vector<8x1xf32>
    %296 = vector.broadcast %295 : vector<8x1xf32> to vector<8x16xf32>
    %297 = arith.addf %294, %296 : vector<8x16xf32>
    %cst_259 = arith.constant 2.000000e+01 : f32
    %298 = vector.broadcast %cst_259 : f32 to vector<8x16xf32>
    %299 = arith.minimumf %297, %298 : vector<8x16xf32>
    %300 = math.exp %299 : vector<8x16xf32>
    %cst_260 = arith.constant 2.000000e+00 : f32
    %301 = vector.broadcast %cst_260 : f32 to vector<8x16xf32>
    %302 = arith.addf %300, %301 : vector<8x16xf32>
    %303 = arith.mulf %300, %302 : vector<8x16xf32>
    %cst_261 = arith.constant 2.000000e+00 : f32
    %304 = vector.broadcast %cst_261 : f32 to vector<8x16xf32>
    %305 = arith.addf %303, %304 : vector<8x16xf32>
    %306 = tpu.reciprocal %305 {approx = true} : vector<8x16xf32> -> vector<8x16xf32>
    %307 = arith.mulf %305, %306 : vector<8x16xf32>
    %cst_262 = arith.constant 2.000000e+00 : f32
    %308 = vector.broadcast %cst_262 : f32 to vector<8x16xf32>
    %309 = arith.subf %308, %307 : vector<8x16xf32>
    %310 = arith.mulf %306, %309 : vector<8x16xf32>
    %cst_263 = arith.constant 1.000000e+00 : f32
    %311 = vector.broadcast %cst_263 : f32 to vector<8x16xf32>
    %312 = arith.addf %297, %311 : vector<8x16xf32>
    %cst_264 = arith.constant 2.000000e+00 : f32
    %313 = vector.broadcast %cst_264 : f32 to vector<8x16xf32>
    %314 = arith.mulf %313, %310 : vector<8x16xf32>
    %315 = arith.subf %312, %314 : vector<8x16xf32>
    %c0_265 = arith.constant 0 : index
    %c0_266 = arith.constant 0 : index
    %c2_267 = arith.constant 2 : index
    %c0_268 = arith.constant 0 : index
    %316 = vector.load %arg5[%c0_265, %c0_266, %c2_267, %c0_268] : memref<1x8x8x16xf32, #tpu.memory_space<vmem>>, vector<1x8x1x16xf32>
    %317 = vector.shape_cast %316 : vector<1x8x1x16xf32> to vector<8x16xf32>
    %318 = vector.shape_cast %315 : vector<8x16xf32> to vector<1x8x1x16xf32>
    tpu.vector_store %arg5[%c0_265, %c0_266, %c2_267, %c0_268], %318 {strides = array<i32>} : memref<1x8x8x16xf32, #tpu.memory_space<vmem>>, vector<1x8x1x16xf32>,
    %cst_269 = arith.constant 0.000000e+00 : f32
    %319 = vector.broadcast %cst_269 : f32 to vector<8x16xf32>
    %c3_i32 = arith.constant 3 : i32
    %320 = arith.addi %0, %c3_i32 : i32
    %c0_i32_270 = arith.constant 0 : i32
    %321 = arith.addi %320, %c0_i32_270 : i32
    %c0_271 = arith.constant 0 : index
    %c0_272 = arith.constant 0 : index
    %322 = arith.index_cast %321 : i32 to index
    %c0_273 = arith.constant 0 : index
    %323 = vector.load %arg2[%c0_271, %c0_272, %322, %c0_273] : memref<1x4x18x18xf32, #tpu.memory_space<vmem>>, vector<1x4x1x16xf32>
    %324 = vector.shape_cast %323 : vector<1x4x1x16xf32> to vector<4x16xf32>
    %c0_274 = arith.constant 0 : index
    %c0_275 = arith.constant 0 : index
    %c0_276 = arith.constant 0 : index
    %325 = vector.load %arg3[%c0_274, %c0_275, %c0_276] : memref<9x8x4xf32, #tpu.memory_space<vmem>>, vector<1x8x4xf32>
    %326 = vector.shape_cast %325 : vector<1x8x4xf32> to vector<8x4xf32>
    %cst_277 = arith.constant dense<0.000000e+00> : vector<8x16xf32>
    %327 = tpu.matmul %326, %324, %cst_277 {dimension_numbers = #tpu.dot_dimension_numbers<[1], [0], [0], [1], [0, 0, 1, 1], [], []>} : vector<8x4xf32>, vector<4x16xf32>, vector<8x16xf32> -> vector<8x16xf32>
    %328 = arith.addf %319, %327 : vector<8x16xf32>
    %c3_i32_278 = arith.constant 3 : i32
    %329 = arith.addi %0, %c3_i32_278 : i32
    %c0_i32_279 = arith.constant 0 : i32
    %330 = arith.addi %329, %c0_i32_279 : i32
    %c0_280 = arith.constant 0 : index
    %c0_281 = arith.constant 0 : index
    %331 = arith.index_cast %330 : i32 to index
    %c1_282 = arith.constant 1 : index
    %332 = vector.load %arg2[%c0_280, %c0_281, %331, %c1_282] : memref<1x4x18x18xf32, #tpu.memory_space<vmem>>, vector<1x4x1x16xf32>
    %333 = vector.shape_cast %332 : vector<1x4x1x16xf32> to vector<4x16xf32>
    %c1_283 = arith.constant 1 : index
    %c0_284 = arith.constant 0 : index
    %c0_285 = arith.constant 0 : index
    %334 = vector.load %arg3[%c1_283, %c0_284, %c0_285] : memref<9x8x4xf32, #tpu.memory_space<vmem>>, vector<1x8x4xf32>
    %335 = vector.shape_cast %334 : vector<1x8x4xf32> to vector<8x4xf32>
    %cst_286 = arith.constant dense<0.000000e+00> : vector<8x16xf32>
    %336 = tpu.matmul %335, %333, %cst_286 {dimension_numbers = #tpu.dot_dimension_numbers<[1], [0], [0], [1], [0, 0, 1, 1], [], []>} : vector<8x4xf32>, vector<4x16xf32>, vector<8x16xf32> -> vector<8x16xf32>
    %337 = arith.addf %328, %336 : vector<8x16xf32>
    %c3_i32_287 = arith.constant 3 : i32
    %338 = arith.addi %0, %c3_i32_287 : i32
    %c0_i32_288 = arith.constant 0 : i32
    %339 = arith.addi %338, %c0_i32_288 : i32
    %c0_289 = arith.constant 0 : index
    %c0_290 = arith.constant 0 : index
    %340 = arith.index_cast %339 : i32 to index
    %c2_291 = arith.constant 2 : index
    %341 = vector.load %arg2[%c0_289, %c0_290, %340, %c2_291] : memref<1x4x18x18xf32, #tpu.memory_space<vmem>>, vector<1x4x1x16xf32>
    %342 = vector.shape_cast %341 : vector<1x4x1x16xf32> to vector<4x16xf32>
    %c2_292 = arith.constant 2 : index
    %c0_293 = arith.constant 0 : index
    %c0_294 = arith.constant 0 : index
    %343 = vector.load %arg3[%c2_292, %c0_293, %c0_294] : memref<9x8x4xf32, #tpu.memory_space<vmem>>, vector<1x8x4xf32>
    %344 = vector.shape_cast %343 : vector<1x8x4xf32> to vector<8x4xf32>
    %cst_295 = arith.constant dense<0.000000e+00> : vector<8x16xf32>
    %345 = tpu.matmul %344, %342, %cst_295 {dimension_numbers = #tpu.dot_dimension_numbers<[1], [0], [0], [1], [0, 0, 1, 1], [], []>} : vector<8x4xf32>, vector<4x16xf32>, vector<8x16xf32> -> vector<8x16xf32>
    %346 = arith.addf %337, %345 : vector<8x16xf32>
    %c3_i32_296 = arith.constant 3 : i32
    %347 = arith.addi %0, %c3_i32_296 : i32
    %c1_i32_297 = arith.constant 1 : i32
    %348 = arith.addi %347, %c1_i32_297 : i32
    %c0_298 = arith.constant 0 : index
    %c0_299 = arith.constant 0 : index
    %349 = arith.index_cast %348 : i32 to index
    %c0_300 = arith.constant 0 : index
    %350 = vector.load %arg2[%c0_298, %c0_299, %349, %c0_300] : memref<1x4x18x18xf32, #tpu.memory_space<vmem>>, vector<1x4x1x16xf32>
    %351 = vector.shape_cast %350 : vector<1x4x1x16xf32> to vector<4x16xf32>
    %c3_301 = arith.constant 3 : index
    %c0_302 = arith.constant 0 : index
    %c0_303 = arith.constant 0 : index
    %352 = vector.load %arg3[%c3_301, %c0_302, %c0_303] : memref<9x8x4xf32, #tpu.memory_space<vmem>>, vector<1x8x4xf32>
    %353 = vector.shape_cast %352 : vector<1x8x4xf32> to vector<8x4xf32>
    %cst_304 = arith.constant dense<0.000000e+00> : vector<8x16xf32>
    %354 = tpu.matmul %353, %351, %cst_304 {dimension_numbers = #tpu.dot_dimension_numbers<[1], [0], [0], [1], [0, 0, 1, 1], [], []>} : vector<8x4xf32>, vector<4x16xf32>, vector<8x16xf32> -> vector<8x16xf32>
    %355 = arith.addf %346, %354 : vector<8x16xf32>
    %c3_i32_305 = arith.constant 3 : i32
    %356 = arith.addi %0, %c3_i32_305 : i32
    %c1_i32_306 = arith.constant 1 : i32
    %357 = arith.addi %356, %c1_i32_306 : i32
    %c0_307 = arith.constant 0 : index
    %c0_308 = arith.constant 0 : index
    %358 = arith.index_cast %357 : i32 to index
    %c1_309 = arith.constant 1 : index
    %359 = vector.load %arg2[%c0_307, %c0_308, %358, %c1_309] : memref<1x4x18x18xf32, #tpu.memory_space<vmem>>, vector<1x4x1x16xf32>
    %360 = vector.shape_cast %359 : vector<1x4x1x16xf32> to vector<4x16xf32>
    %c4_310 = arith.constant 4 : index
    %c0_311 = arith.constant 0 : index
    %c0_312 = arith.constant 0 : index
    %361 = vector.load %arg3[%c4_310, %c0_311, %c0_312] : memref<9x8x4xf32, #tpu.memory_space<vmem>>, vector<1x8x4xf32>
    %362 = vector.shape_cast %361 : vector<1x8x4xf32> to vector<8x4xf32>
    %cst_313 = arith.constant dense<0.000000e+00> : vector<8x16xf32>
    %363 = tpu.matmul %362, %360, %cst_313 {dimension_numbers = #tpu.dot_dimension_numbers<[1], [0], [0], [1], [0, 0, 1, 1], [], []>} : vector<8x4xf32>, vector<4x16xf32>, vector<8x16xf32> -> vector<8x16xf32>
    %364 = arith.addf %355, %363 : vector<8x16xf32>
    %c3_i32_314 = arith.constant 3 : i32
    %365 = arith.addi %0, %c3_i32_314 : i32
    %c1_i32_315 = arith.constant 1 : i32
    %366 = arith.addi %365, %c1_i32_315 : i32
    %c0_316 = arith.constant 0 : index
    %c0_317 = arith.constant 0 : index
    %367 = arith.index_cast %366 : i32 to index
    %c2_318 = arith.constant 2 : index
    %368 = vector.load %arg2[%c0_316, %c0_317, %367, %c2_318] : memref<1x4x18x18xf32, #tpu.memory_space<vmem>>, vector<1x4x1x16xf32>
    %369 = vector.shape_cast %368 : vector<1x4x1x16xf32> to vector<4x16xf32>
    %c5_319 = arith.constant 5 : index
    %c0_320 = arith.constant 0 : index
    %c0_321 = arith.constant 0 : index
    %370 = vector.load %arg3[%c5_319, %c0_320, %c0_321] : memref<9x8x4xf32, #tpu.memory_space<vmem>>, vector<1x8x4xf32>
    %371 = vector.shape_cast %370 : vector<1x8x4xf32> to vector<8x4xf32>
    %cst_322 = arith.constant dense<0.000000e+00> : vector<8x16xf32>
    %372 = tpu.matmul %371, %369, %cst_322 {dimension_numbers = #tpu.dot_dimension_numbers<[1], [0], [0], [1], [0, 0, 1, 1], [], []>} : vector<8x4xf32>, vector<4x16xf32>, vector<8x16xf32> -> vector<8x16xf32>
    %373 = arith.addf %364, %372 : vector<8x16xf32>
    %c3_i32_323 = arith.constant 3 : i32
    %374 = arith.addi %0, %c3_i32_323 : i32
    %c2_i32_324 = arith.constant 2 : i32
    %375 = arith.addi %374, %c2_i32_324 : i32
    %c0_325 = arith.constant 0 : index
    %c0_326 = arith.constant 0 : index
    %376 = arith.index_cast %375 : i32 to index
    %c0_327 = arith.constant 0 : index
    %377 = vector.load %arg2[%c0_325, %c0_326, %376, %c0_327] : memref<1x4x18x18xf32, #tpu.memory_space<vmem>>, vector<1x4x1x16xf32>
    %378 = vector.shape_cast %377 : vector<1x4x1x16xf32> to vector<4x16xf32>
    %c6_328 = arith.constant 6 : index
    %c0_329 = arith.constant 0 : index
    %c0_330 = arith.constant 0 : index
    %379 = vector.load %arg3[%c6_328, %c0_329, %c0_330] : memref<9x8x4xf32, #tpu.memory_space<vmem>>, vector<1x8x4xf32>
    %380 = vector.shape_cast %379 : vector<1x8x4xf32> to vector<8x4xf32>
    %cst_331 = arith.constant dense<0.000000e+00> : vector<8x16xf32>
    %381 = tpu.matmul %380, %378, %cst_331 {dimension_numbers = #tpu.dot_dimension_numbers<[1], [0], [0], [1], [0, 0, 1, 1], [], []>} : vector<8x4xf32>, vector<4x16xf32>, vector<8x16xf32> -> vector<8x16xf32>
    %382 = arith.addf %373, %381 : vector<8x16xf32>
    %c3_i32_332 = arith.constant 3 : i32
    %383 = arith.addi %0, %c3_i32_332 : i32
    %c2_i32_333 = arith.constant 2 : i32
    %384 = arith.addi %383, %c2_i32_333 : i32
    %c0_334 = arith.constant 0 : index
    %c0_335 = arith.constant 0 : index
    %385 = arith.index_cast %384 : i32 to index
    %c1_336 = arith.constant 1 : index
    %386 = vector.load %arg2[%c0_334, %c0_335, %385, %c1_336] : memref<1x4x18x18xf32, #tpu.memory_space<vmem>>, vector<1x4x1x16xf32>
    %387 = vector.shape_cast %386 : vector<1x4x1x16xf32> to vector<4x16xf32>
    %c7_337 = arith.constant 7 : index
    %c0_338 = arith.constant 0 : index
    %c0_339 = arith.constant 0 : index
    %388 = vector.load %arg3[%c7_337, %c0_338, %c0_339] : memref<9x8x4xf32, #tpu.memory_space<vmem>>, vector<1x8x4xf32>
    %389 = vector.shape_cast %388 : vector<1x8x4xf32> to vector<8x4xf32>
    %cst_340 = arith.constant dense<0.000000e+00> : vector<8x16xf32>
    %390 = tpu.matmul %389, %387, %cst_340 {dimension_numbers = #tpu.dot_dimension_numbers<[1], [0], [0], [1], [0, 0, 1, 1], [], []>} : vector<8x4xf32>, vector<4x16xf32>, vector<8x16xf32> -> vector<8x16xf32>
    %391 = arith.addf %382, %390 : vector<8x16xf32>
    %c3_i32_341 = arith.constant 3 : i32
    %392 = arith.addi %0, %c3_i32_341 : i32
    %c2_i32_342 = arith.constant 2 : i32
    %393 = arith.addi %392, %c2_i32_342 : i32
    %c0_343 = arith.constant 0 : index
    %c0_344 = arith.constant 0 : index
    %394 = arith.index_cast %393 : i32 to index
    %c2_345 = arith.constant 2 : index
    %395 = vector.load %arg2[%c0_343, %c0_344, %394, %c2_345] : memref<1x4x18x18xf32, #tpu.memory_space<vmem>>, vector<1x4x1x16xf32>
    %396 = vector.shape_cast %395 : vector<1x4x1x16xf32> to vector<4x16xf32>
    %c8_346 = arith.constant 8 : index
    %c0_347 = arith.constant 0 : index
    %c0_348 = arith.constant 0 : index
    %397 = vector.load %arg3[%c8_346, %c0_347, %c0_348] : memref<9x8x4xf32, #tpu.memory_space<vmem>>, vector<1x8x4xf32>
    %398 = vector.shape_cast %397 : vector<1x8x4xf32> to vector<8x4xf32>
    %cst_349 = arith.constant dense<0.000000e+00> : vector<8x16xf32>
    %399 = tpu.matmul %398, %396, %cst_349 {dimension_numbers = #tpu.dot_dimension_numbers<[1], [0], [0], [1], [0, 0, 1, 1], [], []>} : vector<8x4xf32>, vector<4x16xf32>, vector<8x16xf32> -> vector<8x16xf32>
    %400 = arith.addf %391, %399 : vector<8x16xf32>
    %c0_350 = arith.constant 0 : index
    %c0_351 = arith.constant 0 : index
    %401 = vector.load %arg4[%c0_350, %c0_351] : memref<8x1xf32, #tpu.memory_space<vmem>>, vector<8x1xf32>
    %402 = vector.broadcast %401 : vector<8x1xf32> to vector<8x16xf32>
    %403 = arith.addf %400, %402 : vector<8x16xf32>
    %cst_352 = arith.constant 2.000000e+01 : f32
    %404 = vector.broadcast %cst_352 : f32 to vector<8x16xf32>
    %405 = arith.minimumf %403, %404 : vector<8x16xf32>
    %406 = math.exp %405 : vector<8x16xf32>
    %cst_353 = arith.constant 2.000000e+00 : f32
    %407 = vector.broadcast %cst_353 : f32 to vector<8x16xf32>
    %408 = arith.addf %406, %407 : vector<8x16xf32>
    %409 = arith.mulf %406, %408 : vector<8x16xf32>
    %cst_354 = arith.constant 2.000000e+00 : f32
    %410 = vector.broadcast %cst_354 : f32 to vector<8x16xf32>
    %411 = arith.addf %409, %410 : vector<8x16xf32>
    %412 = tpu.reciprocal %411 {approx = true} : vector<8x16xf32> -> vector<8x16xf32>
    %413 = arith.mulf %411, %412 : vector<8x16xf32>
    %cst_355 = arith.constant 2.000000e+00 : f32
    %414 = vector.broadcast %cst_355 : f32 to vector<8x16xf32>
    %415 = arith.subf %414, %413 : vector<8x16xf32>
    %416 = arith.mulf %412, %415 : vector<8x16xf32>
    %cst_356 = arith.constant 1.000000e+00 : f32
    %417 = vector.broadcast %cst_356 : f32 to vector<8x16xf32>
    %418 = arith.addf %403, %417 : vector<8x16xf32>
    %cst_357 = arith.constant 2.000000e+00 : f32
    %419 = vector.broadcast %cst_357 : f32 to vector<8x16xf32>
    %420 = arith.mulf %419, %416 : vector<8x16xf32>
    %421 = arith.subf %418, %420 : vector<8x16xf32>
    %c0_358 = arith.constant 0 : index
    %c0_359 = arith.constant 0 : index
    %c3_360 = arith.constant 3 : index
    %c0_361 = arith.constant 0 : index
    %422 = vector.load %arg5[%c0_358, %c0_359, %c3_360, %c0_361] : memref<1x8x8x16xf32, #tpu.memory_space<vmem>>, vector<1x8x1x16xf32>
    %423 = vector.shape_cast %422 : vector<1x8x1x16xf32> to vector<8x16xf32>
    %424 = vector.shape_cast %421 : vector<8x16xf32> to vector<1x8x1x16xf32>
    tpu.vector_store %arg5[%c0_358, %c0_359, %c3_360, %c0_361], %424 {strides = array<i32>} : memref<1x8x8x16xf32, #tpu.memory_space<vmem>>, vector<1x8x1x16xf32>,
    %cst_362 = arith.constant 0.000000e+00 : f32
    %425 = vector.broadcast %cst_362 : f32 to vector<8x16xf32>
    %c4_i32 = arith.constant 4 : i32
    %426 = arith.addi %0, %c4_i32 : i32
    %c0_i32_363 = arith.constant 0 : i32
    %427 = arith.addi %426, %c0_i32_363 : i32
    %c0_364 = arith.constant 0 : index
    %c0_365 = arith.constant 0 : index
    %428 = arith.index_cast %427 : i32 to index
    %c0_366 = arith.constant 0 : index
    %429 = vector.load %arg2[%c0_364, %c0_365, %428, %c0_366] : memref<1x4x18x18xf32, #tpu.memory_space<vmem>>, vector<1x4x1x16xf32>
    %430 = vector.shape_cast %429 : vector<1x4x1x16xf32> to vector<4x16xf32>
    %c0_367 = arith.constant 0 : index
    %c0_368 = arith.constant 0 : index
    %c0_369 = arith.constant 0 : index
    %431 = vector.load %arg3[%c0_367, %c0_368, %c0_369] : memref<9x8x4xf32, #tpu.memory_space<vmem>>, vector<1x8x4xf32>
    %432 = vector.shape_cast %431 : vector<1x8x4xf32> to vector<8x4xf32>
    %cst_370 = arith.constant dense<0.000000e+00> : vector<8x16xf32>
    %433 = tpu.matmul %432, %430, %cst_370 {dimension_numbers = #tpu.dot_dimension_numbers<[1], [0], [0], [1], [0, 0, 1, 1], [], []>} : vector<8x4xf32>, vector<4x16xf32>, vector<8x16xf32> -> vector<8x16xf32>
    %434 = arith.addf %425, %433 : vector<8x16xf32>
    %c4_i32_371 = arith.constant 4 : i32
    %435 = arith.addi %0, %c4_i32_371 : i32
    %c0_i32_372 = arith.constant 0 : i32
    %436 = arith.addi %435, %c0_i32_372 : i32
    %c0_373 = arith.constant 0 : index
    %c0_374 = arith.constant 0 : index
    %437 = arith.index_cast %436 : i32 to index
    %c1_375 = arith.constant 1 : index
    %438 = vector.load %arg2[%c0_373, %c0_374, %437, %c1_375] : memref<1x4x18x18xf32, #tpu.memory_space<vmem>>, vector<1x4x1x16xf32>
    %439 = vector.shape_cast %438 : vector<1x4x1x16xf32> to vector<4x16xf32>
    %c1_376 = arith.constant 1 : index
    %c0_377 = arith.constant 0 : index
    %c0_378 = arith.constant 0 : index
    %440 = vector.load %arg3[%c1_376, %c0_377, %c0_378] : memref<9x8x4xf32, #tpu.memory_space<vmem>>, vector<1x8x4xf32>
    %441 = vector.shape_cast %440 : vector<1x8x4xf32> to vector<8x4xf32>
    %cst_379 = arith.constant dense<0.000000e+00> : vector<8x16xf32>
    %442 = tpu.matmul %441, %439, %cst_379 {dimension_numbers = #tpu.dot_dimension_numbers<[1], [0], [0], [1], [0, 0, 1, 1], [], []>} : vector<8x4xf32>, vector<4x16xf32>, vector<8x16xf32> -> vector<8x16xf32>
    %443 = arith.addf %434, %442 : vector<8x16xf32>
    %c4_i32_380 = arith.constant 4 : i32
    %444 = arith.addi %0, %c4_i32_380 : i32
    %c0_i32_381 = arith.constant 0 : i32
    %445 = arith.addi %444, %c0_i32_381 : i32
    %c0_382 = arith.constant 0 : index
    %c0_383 = arith.constant 0 : index
    %446 = arith.index_cast %445 : i32 to index
    %c2_384 = arith.constant 2 : index
    %447 = vector.load %arg2[%c0_382, %c0_383, %446, %c2_384] : memref<1x4x18x18xf32, #tpu.memory_space<vmem>>, vector<1x4x1x16xf32>
    %448 = vector.shape_cast %447 : vector<1x4x1x16xf32> to vector<4x16xf32>
    %c2_385 = arith.constant 2 : index
    %c0_386 = arith.constant 0 : index
    %c0_387 = arith.constant 0 : index
    %449 = vector.load %arg3[%c2_385, %c0_386, %c0_387] : memref<9x8x4xf32, #tpu.memory_space<vmem>>, vector<1x8x4xf32>
    %450 = vector.shape_cast %449 : vector<1x8x4xf32> to vector<8x4xf32>
    %cst_388 = arith.constant dense<0.000000e+00> : vector<8x16xf32>
    %451 = tpu.matmul %450, %448, %cst_388 {dimension_numbers = #tpu.dot_dimension_numbers<[1], [0], [0], [1], [0, 0, 1, 1], [], []>} : vector<8x4xf32>, vector<4x16xf32>, vector<8x16xf32> -> vector<8x16xf32>
    %452 = arith.addf %443, %451 : vector<8x16xf32>
    %c4_i32_389 = arith.constant 4 : i32
    %453 = arith.addi %0, %c4_i32_389 : i32
    %c1_i32_390 = arith.constant 1 : i32
    %454 = arith.addi %453, %c1_i32_390 : i32
    %c0_391 = arith.constant 0 : index
    %c0_392 = arith.constant 0 : index
    %455 = arith.index_cast %454 : i32 to index
    %c0_393 = arith.constant 0 : index
    %456 = vector.load %arg2[%c0_391, %c0_392, %455, %c0_393] : memref<1x4x18x18xf32, #tpu.memory_space<vmem>>, vector<1x4x1x16xf32>
    %457 = vector.shape_cast %456 : vector<1x4x1x16xf32> to vector<4x16xf32>
    %c3_394 = arith.constant 3 : index
    %c0_395 = arith.constant 0 : index
    %c0_396 = arith.constant 0 : index
    %458 = vector.load %arg3[%c3_394, %c0_395, %c0_396] : memref<9x8x4xf32, #tpu.memory_space<vmem>>, vector<1x8x4xf32>
    %459 = vector.shape_cast %458 : vector<1x8x4xf32> to vector<8x4xf32>
    %cst_397 = arith.constant dense<0.000000e+00> : vector<8x16xf32>
    %460 = tpu.matmul %459, %457, %cst_397 {dimension_numbers = #tpu.dot_dimension_numbers<[1], [0], [0], [1], [0, 0, 1, 1], [], []>} : vector<8x4xf32>, vector<4x16xf32>, vector<8x16xf32> -> vector<8x16xf32>
    %461 = arith.addf %452, %460 : vector<8x16xf32>
    %c4_i32_398 = arith.constant 4 : i32
    %462 = arith.addi %0, %c4_i32_398 : i32
    %c1_i32_399 = arith.constant 1 : i32
    %463 = arith.addi %462, %c1_i32_399 : i32
    %c0_400 = arith.constant 0 : index
    %c0_401 = arith.constant 0 : index
    %464 = arith.index_cast %463 : i32 to index
    %c1_402 = arith.constant 1 : index
    %465 = vector.load %arg2[%c0_400, %c0_401, %464, %c1_402] : memref<1x4x18x18xf32, #tpu.memory_space<vmem>>, vector<1x4x1x16xf32>
    %466 = vector.shape_cast %465 : vector<1x4x1x16xf32> to vector<4x16xf32>
    %c4_403 = arith.constant 4 : index
    %c0_404 = arith.constant 0 : index
    %c0_405 = arith.constant 0 : index
    %467 = vector.load %arg3[%c4_403, %c0_404, %c0_405] : memref<9x8x4xf32, #tpu.memory_space<vmem>>, vector<1x8x4xf32>
    %468 = vector.shape_cast %467 : vector<1x8x4xf32> to vector<8x4xf32>
    %cst_406 = arith.constant dense<0.000000e+00> : vector<8x16xf32>
    %469 = tpu.matmul %468, %466, %cst_406 {dimension_numbers = #tpu.dot_dimension_numbers<[1], [0], [0], [1], [0, 0, 1, 1], [], []>} : vector<8x4xf32>, vector<4x16xf32>, vector<8x16xf32> -> vector<8x16xf32>
    %470 = arith.addf %461, %469 : vector<8x16xf32>
    %c4_i32_407 = arith.constant 4 : i32
    %471 = arith.addi %0, %c4_i32_407 : i32
    %c1_i32_408 = arith.constant 1 : i32
    %472 = arith.addi %471, %c1_i32_408 : i32
    %c0_409 = arith.constant 0 : index
    %c0_410 = arith.constant 0 : index
    %473 = arith.index_cast %472 : i32 to index
    %c2_411 = arith.constant 2 : index
    %474 = vector.load %arg2[%c0_409, %c0_410, %473, %c2_411] : memref<1x4x18x18xf32, #tpu.memory_space<vmem>>, vector<1x4x1x16xf32>
    %475 = vector.shape_cast %474 : vector<1x4x1x16xf32> to vector<4x16xf32>
    %c5_412 = arith.constant 5 : index
    %c0_413 = arith.constant 0 : index
    %c0_414 = arith.constant 0 : index
    %476 = vector.load %arg3[%c5_412, %c0_413, %c0_414] : memref<9x8x4xf32, #tpu.memory_space<vmem>>, vector<1x8x4xf32>
    %477 = vector.shape_cast %476 : vector<1x8x4xf32> to vector<8x4xf32>
    %cst_415 = arith.constant dense<0.000000e+00> : vector<8x16xf32>
    %478 = tpu.matmul %477, %475, %cst_415 {dimension_numbers = #tpu.dot_dimension_numbers<[1], [0], [0], [1], [0, 0, 1, 1], [], []>} : vector<8x4xf32>, vector<4x16xf32>, vector<8x16xf32> -> vector<8x16xf32>
    %479 = arith.addf %470, %478 : vector<8x16xf32>
    %c4_i32_416 = arith.constant 4 : i32
    %480 = arith.addi %0, %c4_i32_416 : i32
    %c2_i32_417 = arith.constant 2 : i32
    %481 = arith.addi %480, %c2_i32_417 : i32
    %c0_418 = arith.constant 0 : index
    %c0_419 = arith.constant 0 : index
    %482 = arith.index_cast %481 : i32 to index
    %c0_420 = arith.constant 0 : index
    %483 = vector.load %arg2[%c0_418, %c0_419, %482, %c0_420] : memref<1x4x18x18xf32, #tpu.memory_space<vmem>>, vector<1x4x1x16xf32>
    %484 = vector.shape_cast %483 : vector<1x4x1x16xf32> to vector<4x16xf32>
    %c6_421 = arith.constant 6 : index
    %c0_422 = arith.constant 0 : index
    %c0_423 = arith.constant 0 : index
    %485 = vector.load %arg3[%c6_421, %c0_422, %c0_423] : memref<9x8x4xf32, #tpu.memory_space<vmem>>, vector<1x8x4xf32>
    %486 = vector.shape_cast %485 : vector<1x8x4xf32> to vector<8x4xf32>
    %cst_424 = arith.constant dense<0.000000e+00> : vector<8x16xf32>
    %487 = tpu.matmul %486, %484, %cst_424 {dimension_numbers = #tpu.dot_dimension_numbers<[1], [0], [0], [1], [0, 0, 1, 1], [], []>} : vector<8x4xf32>, vector<4x16xf32>, vector<8x16xf32> -> vector<8x16xf32>
    %488 = arith.addf %479, %487 : vector<8x16xf32>
    %c4_i32_425 = arith.constant 4 : i32
    %489 = arith.addi %0, %c4_i32_425 : i32
    %c2_i32_426 = arith.constant 2 : i32
    %490 = arith.addi %489, %c2_i32_426 : i32
    %c0_427 = arith.constant 0 : index
    %c0_428 = arith.constant 0 : index
    %491 = arith.index_cast %490 : i32 to index
    %c1_429 = arith.constant 1 : index
    %492 = vector.load %arg2[%c0_427, %c0_428, %491, %c1_429] : memref<1x4x18x18xf32, #tpu.memory_space<vmem>>, vector<1x4x1x16xf32>
    %493 = vector.shape_cast %492 : vector<1x4x1x16xf32> to vector<4x16xf32>
    %c7_430 = arith.constant 7 : index
    %c0_431 = arith.constant 0 : index
    %c0_432 = arith.constant 0 : index
    %494 = vector.load %arg3[%c7_430, %c0_431, %c0_432] : memref<9x8x4xf32, #tpu.memory_space<vmem>>, vector<1x8x4xf32>
    %495 = vector.shape_cast %494 : vector<1x8x4xf32> to vector<8x4xf32>
    %cst_433 = arith.constant dense<0.000000e+00> : vector<8x16xf32>
    %496 = tpu.matmul %495, %493, %cst_433 {dimension_numbers = #tpu.dot_dimension_numbers<[1], [0], [0], [1], [0, 0, 1, 1], [], []>} : vector<8x4xf32>, vector<4x16xf32>, vector<8x16xf32> -> vector<8x16xf32>
    %497 = arith.addf %488, %496 : vector<8x16xf32>
    %c4_i32_434 = arith.constant 4 : i32
    %498 = arith.addi %0, %c4_i32_434 : i32
    %c2_i32_435 = arith.constant 2 : i32
    %499 = arith.addi %498, %c2_i32_435 : i32
    %c0_436 = arith.constant 0 : index
    %c0_437 = arith.constant 0 : index
    %500 = arith.index_cast %499 : i32 to index
    %c2_438 = arith.constant 2 : index
    %501 = vector.load %arg2[%c0_436, %c0_437, %500, %c2_438] : memref<1x4x18x18xf32, #tpu.memory_space<vmem>>, vector<1x4x1x16xf32>
    %502 = vector.shape_cast %501 : vector<1x4x1x16xf32> to vector<4x16xf32>
    %c8_439 = arith.constant 8 : index
    %c0_440 = arith.constant 0 : index
    %c0_441 = arith.constant 0 : index
    %503 = vector.load %arg3[%c8_439, %c0_440, %c0_441] : memref<9x8x4xf32, #tpu.memory_space<vmem>>, vector<1x8x4xf32>
    %504 = vector.shape_cast %503 : vector<1x8x4xf32> to vector<8x4xf32>
    %cst_442 = arith.constant dense<0.000000e+00> : vector<8x16xf32>
    %505 = tpu.matmul %504, %502, %cst_442 {dimension_numbers = #tpu.dot_dimension_numbers<[1], [0], [0], [1], [0, 0, 1, 1], [], []>} : vector<8x4xf32>, vector<4x16xf32>, vector<8x16xf32> -> vector<8x16xf32>
    %506 = arith.addf %497, %505 : vector<8x16xf32>
    %c0_443 = arith.constant 0 : index
    %c0_444 = arith.constant 0 : index
    %507 = vector.load %arg4[%c0_443, %c0_444] : memref<8x1xf32, #tpu.memory_space<vmem>>, vector<8x1xf32>
    %508 = vector.broadcast %507 : vector<8x1xf32> to vector<8x16xf32>
    %509 = arith.addf %506, %508 : vector<8x16xf32>
    %cst_445 = arith.constant 2.000000e+01 : f32
    %510 = vector.broadcast %cst_445 : f32 to vector<8x16xf32>
    %511 = arith.minimumf %509, %510 : vector<8x16xf32>
    %512 = math.exp %511 : vector<8x16xf32>
    %cst_446 = arith.constant 2.000000e+00 : f32
    %513 = vector.broadcast %cst_446 : f32 to vector<8x16xf32>
    %514 = arith.addf %512, %513 : vector<8x16xf32>
    %515 = arith.mulf %512, %514 : vector<8x16xf32>
    %cst_447 = arith.constant 2.000000e+00 : f32
    %516 = vector.broadcast %cst_447 : f32 to vector<8x16xf32>
    %517 = arith.addf %515, %516 : vector<8x16xf32>
    %518 = tpu.reciprocal %517 {approx = true} : vector<8x16xf32> -> vector<8x16xf32>
    %519 = arith.mulf %517, %518 : vector<8x16xf32>
    %cst_448 = arith.constant 2.000000e+00 : f32
    %520 = vector.broadcast %cst_448 : f32 to vector<8x16xf32>
    %521 = arith.subf %520, %519 : vector<8x16xf32>
    %522 = arith.mulf %518, %521 : vector<8x16xf32>
    %cst_449 = arith.constant 1.000000e+00 : f32
    %523 = vector.broadcast %cst_449 : f32 to vector<8x16xf32>
    %524 = arith.addf %509, %523 : vector<8x16xf32>
    %cst_450 = arith.constant 2.000000e+00 : f32
    %525 = vector.broadcast %cst_450 : f32 to vector<8x16xf32>
    %526 = arith.mulf %525, %522 : vector<8x16xf32>
    %527 = arith.subf %524, %526 : vector<8x16xf32>
    %c0_451 = arith.constant 0 : index
    %c0_452 = arith.constant 0 : index
    %c4_453 = arith.constant 4 : index
    %c0_454 = arith.constant 0 : index
    %528 = vector.load %arg5[%c0_451, %c0_452, %c4_453, %c0_454] : memref<1x8x8x16xf32, #tpu.memory_space<vmem>>, vector<1x8x1x16xf32>
    %529 = vector.shape_cast %528 : vector<1x8x1x16xf32> to vector<8x16xf32>
    %530 = vector.shape_cast %527 : vector<8x16xf32> to vector<1x8x1x16xf32>
    tpu.vector_store %arg5[%c0_451, %c0_452, %c4_453, %c0_454], %530 {strides = array<i32>} : memref<1x8x8x16xf32, #tpu.memory_space<vmem>>, vector<1x8x1x16xf32>,
    %cst_455 = arith.constant 0.000000e+00 : f32
    %531 = vector.broadcast %cst_455 : f32 to vector<8x16xf32>
    %c5_i32 = arith.constant 5 : i32
    %532 = arith.addi %0, %c5_i32 : i32
    %c0_i32_456 = arith.constant 0 : i32
    %533 = arith.addi %532, %c0_i32_456 : i32
    %c0_457 = arith.constant 0 : index
    %c0_458 = arith.constant 0 : index
    %534 = arith.index_cast %533 : i32 to index
    %c0_459 = arith.constant 0 : index
    %535 = vector.load %arg2[%c0_457, %c0_458, %534, %c0_459] : memref<1x4x18x18xf32, #tpu.memory_space<vmem>>, vector<1x4x1x16xf32>
    %536 = vector.shape_cast %535 : vector<1x4x1x16xf32> to vector<4x16xf32>
    %c0_460 = arith.constant 0 : index
    %c0_461 = arith.constant 0 : index
    %c0_462 = arith.constant 0 : index
    %537 = vector.load %arg3[%c0_460, %c0_461, %c0_462] : memref<9x8x4xf32, #tpu.memory_space<vmem>>, vector<1x8x4xf32>
    %538 = vector.shape_cast %537 : vector<1x8x4xf32> to vector<8x4xf32>
    %cst_463 = arith.constant dense<0.000000e+00> : vector<8x16xf32>
    %539 = tpu.matmul %538, %536, %cst_463 {dimension_numbers = #tpu.dot_dimension_numbers<[1], [0], [0], [1], [0, 0, 1, 1], [], []>} : vector<8x4xf32>, vector<4x16xf32>, vector<8x16xf32> -> vector<8x16xf32>
    %540 = arith.addf %531, %539 : vector<8x16xf32>
    %c5_i32_464 = arith.constant 5 : i32
    %541 = arith.addi %0, %c5_i32_464 : i32
    %c0_i32_465 = arith.constant 0 : i32
    %542 = arith.addi %541, %c0_i32_465 : i32
    %c0_466 = arith.constant 0 : index
    %c0_467 = arith.constant 0 : index
    %543 = arith.index_cast %542 : i32 to index
    %c1_468 = arith.constant 1 : index
    %544 = vector.load %arg2[%c0_466, %c0_467, %543, %c1_468] : memref<1x4x18x18xf32, #tpu.memory_space<vmem>>, vector<1x4x1x16xf32>
    %545 = vector.shape_cast %544 : vector<1x4x1x16xf32> to vector<4x16xf32>
    %c1_469 = arith.constant 1 : index
    %c0_470 = arith.constant 0 : index
    %c0_471 = arith.constant 0 : index
    %546 = vector.load %arg3[%c1_469, %c0_470, %c0_471] : memref<9x8x4xf32, #tpu.memory_space<vmem>>, vector<1x8x4xf32>
    %547 = vector.shape_cast %546 : vector<1x8x4xf32> to vector<8x4xf32>
    %cst_472 = arith.constant dense<0.000000e+00> : vector<8x16xf32>
    %548 = tpu.matmul %547, %545, %cst_472 {dimension_numbers = #tpu.dot_dimension_numbers<[1], [0], [0], [1], [0, 0, 1, 1], [], []>} : vector<8x4xf32>, vector<4x16xf32>, vector<8x16xf32> -> vector<8x16xf32>
    %549 = arith.addf %540, %548 : vector<8x16xf32>
    %c5_i32_473 = arith.constant 5 : i32
    %550 = arith.addi %0, %c5_i32_473 : i32
    %c0_i32_474 = arith.constant 0 : i32
    %551 = arith.addi %550, %c0_i32_474 : i32
    %c0_475 = arith.constant 0 : index
    %c0_476 = arith.constant 0 : index
    %552 = arith.index_cast %551 : i32 to index
    %c2_477 = arith.constant 2 : index
    %553 = vector.load %arg2[%c0_475, %c0_476, %552, %c2_477] : memref<1x4x18x18xf32, #tpu.memory_space<vmem>>, vector<1x4x1x16xf32>
    %554 = vector.shape_cast %553 : vector<1x4x1x16xf32> to vector<4x16xf32>
    %c2_478 = arith.constant 2 : index
    %c0_479 = arith.constant 0 : index
    %c0_480 = arith.constant 0 : index
    %555 = vector.load %arg3[%c2_478, %c0_479, %c0_480] : memref<9x8x4xf32, #tpu.memory_space<vmem>>, vector<1x8x4xf32>
    %556 = vector.shape_cast %555 : vector<1x8x4xf32> to vector<8x4xf32>
    %cst_481 = arith.constant dense<0.000000e+00> : vector<8x16xf32>
    %557 = tpu.matmul %556, %554, %cst_481 {dimension_numbers = #tpu.dot_dimension_numbers<[1], [0], [0], [1], [0, 0, 1, 1], [], []>} : vector<8x4xf32>, vector<4x16xf32>, vector<8x16xf32> -> vector<8x16xf32>
    %558 = arith.addf %549, %557 : vector<8x16xf32>
    %c5_i32_482 = arith.constant 5 : i32
    %559 = arith.addi %0, %c5_i32_482 : i32
    %c1_i32_483 = arith.constant 1 : i32
    %560 = arith.addi %559, %c1_i32_483 : i32
    %c0_484 = arith.constant 0 : index
    %c0_485 = arith.constant 0 : index
    %561 = arith.index_cast %560 : i32 to index
    %c0_486 = arith.constant 0 : index
    %562 = vector.load %arg2[%c0_484, %c0_485, %561, %c0_486] : memref<1x4x18x18xf32, #tpu.memory_space<vmem>>, vector<1x4x1x16xf32>
    %563 = vector.shape_cast %562 : vector<1x4x1x16xf32> to vector<4x16xf32>
    %c3_487 = arith.constant 3 : index
    %c0_488 = arith.constant 0 : index
    %c0_489 = arith.constant 0 : index
    %564 = vector.load %arg3[%c3_487, %c0_488, %c0_489] : memref<9x8x4xf32, #tpu.memory_space<vmem>>, vector<1x8x4xf32>
    %565 = vector.shape_cast %564 : vector<1x8x4xf32> to vector<8x4xf32>
    %cst_490 = arith.constant dense<0.000000e+00> : vector<8x16xf32>
    %566 = tpu.matmul %565, %563, %cst_490 {dimension_numbers = #tpu.dot_dimension_numbers<[1], [0], [0], [1], [0, 0, 1, 1], [], []>} : vector<8x4xf32>, vector<4x16xf32>, vector<8x16xf32> -> vector<8x16xf32>
    %567 = arith.addf %558, %566 : vector<8x16xf32>
    %c5_i32_491 = arith.constant 5 : i32
    %568 = arith.addi %0, %c5_i32_491 : i32
    %c1_i32_492 = arith.constant 1 : i32
    %569 = arith.addi %568, %c1_i32_492 : i32
    %c0_493 = arith.constant 0 : index
    %c0_494 = arith.constant 0 : index
    %570 = arith.index_cast %569 : i32 to index
    %c1_495 = arith.constant 1 : index
    %571 = vector.load %arg2[%c0_493, %c0_494, %570, %c1_495] : memref<1x4x18x18xf32, #tpu.memory_space<vmem>>, vector<1x4x1x16xf32>
    %572 = vector.shape_cast %571 : vector<1x4x1x16xf32> to vector<4x16xf32>
    %c4_496 = arith.constant 4 : index
    %c0_497 = arith.constant 0 : index
    %c0_498 = arith.constant 0 : index
    %573 = vector.load %arg3[%c4_496, %c0_497, %c0_498] : memref<9x8x4xf32, #tpu.memory_space<vmem>>, vector<1x8x4xf32>
    %574 = vector.shape_cast %573 : vector<1x8x4xf32> to vector<8x4xf32>
    %cst_499 = arith.constant dense<0.000000e+00> : vector<8x16xf32>
    %575 = tpu.matmul %574, %572, %cst_499 {dimension_numbers = #tpu.dot_dimension_numbers<[1], [0], [0], [1], [0, 0, 1, 1], [], []>} : vector<8x4xf32>, vector<4x16xf32>, vector<8x16xf32> -> vector<8x16xf32>
    %576 = arith.addf %567, %575 : vector<8x16xf32>
    %c5_i32_500 = arith.constant 5 : i32
    %577 = arith.addi %0, %c5_i32_500 : i32
    %c1_i32_501 = arith.constant 1 : i32
    %578 = arith.addi %577, %c1_i32_501 : i32
    %c0_502 = arith.constant 0 : index
    %c0_503 = arith.constant 0 : index
    %579 = arith.index_cast %578 : i32 to index
    %c2_504 = arith.constant 2 : index
    %580 = vector.load %arg2[%c0_502, %c0_503, %579, %c2_504] : memref<1x4x18x18xf32, #tpu.memory_space<vmem>>, vector<1x4x1x16xf32>
    %581 = vector.shape_cast %580 : vector<1x4x1x16xf32> to vector<4x16xf32>
    %c5_505 = arith.constant 5 : index
    %c0_506 = arith.constant 0 : index
    %c0_507 = arith.constant 0 : index
    %582 = vector.load %arg3[%c5_505, %c0_506, %c0_507] : memref<9x8x4xf32, #tpu.memory_space<vmem>>, vector<1x8x4xf32>
    %583 = vector.shape_cast %582 : vector<1x8x4xf32> to vector<8x4xf32>
    %cst_508 = arith.constant dense<0.000000e+00> : vector<8x16xf32>
    %584 = tpu.matmul %583, %581, %cst_508 {dimension_numbers = #tpu.dot_dimension_numbers<[1], [0], [0], [1], [0, 0, 1, 1], [], []>} : vector<8x4xf32>, vector<4x16xf32>, vector<8x16xf32> -> vector<8x16xf32>
    %585 = arith.addf %576, %584 : vector<8x16xf32>
    %c5_i32_509 = arith.constant 5 : i32
    %586 = arith.addi %0, %c5_i32_509 : i32
    %c2_i32_510 = arith.constant 2 : i32
    %587 = arith.addi %586, %c2_i32_510 : i32
    %c0_511 = arith.constant 0 : index
    %c0_512 = arith.constant 0 : index
    %588 = arith.index_cast %587 : i32 to index
    %c0_513 = arith.constant 0 : index
    %589 = vector.load %arg2[%c0_511, %c0_512, %588, %c0_513] : memref<1x4x18x18xf32, #tpu.memory_space<vmem>>, vector<1x4x1x16xf32>
    %590 = vector.shape_cast %589 : vector<1x4x1x16xf32> to vector<4x16xf32>
    %c6_514 = arith.constant 6 : index
    %c0_515 = arith.constant 0 : index
    %c0_516 = arith.constant 0 : index
    %591 = vector.load %arg3[%c6_514, %c0_515, %c0_516] : memref<9x8x4xf32, #tpu.memory_space<vmem>>, vector<1x8x4xf32>
    %592 = vector.shape_cast %591 : vector<1x8x4xf32> to vector<8x4xf32>
    %cst_517 = arith.constant dense<0.000000e+00> : vector<8x16xf32>
    %593 = tpu.matmul %592, %590, %cst_517 {dimension_numbers = #tpu.dot_dimension_numbers<[1], [0], [0], [1], [0, 0, 1, 1], [], []>} : vector<8x4xf32>, vector<4x16xf32>, vector<8x16xf32> -> vector<8x16xf32>
    %594 = arith.addf %585, %593 : vector<8x16xf32>
    %c5_i32_518 = arith.constant 5 : i32
    %595 = arith.addi %0, %c5_i32_518 : i32
    %c2_i32_519 = arith.constant 2 : i32
    %596 = arith.addi %595, %c2_i32_519 : i32
    %c0_520 = arith.constant 0 : index
    %c0_521 = arith.constant 0 : index
    %597 = arith.index_cast %596 : i32 to index
    %c1_522 = arith.constant 1 : index
    %598 = vector.load %arg2[%c0_520, %c0_521, %597, %c1_522] : memref<1x4x18x18xf32, #tpu.memory_space<vmem>>, vector<1x4x1x16xf32>
    %599 = vector.shape_cast %598 : vector<1x4x1x16xf32> to vector<4x16xf32>
    %c7_523 = arith.constant 7 : index
    %c0_524 = arith.constant 0 : index
    %c0_525 = arith.constant 0 : index
    %600 = vector.load %arg3[%c7_523, %c0_524, %c0_525] : memref<9x8x4xf32, #tpu.memory_space<vmem>>, vector<1x8x4xf32>
    %601 = vector.shape_cast %600 : vector<1x8x4xf32> to vector<8x4xf32>
    %cst_526 = arith.constant dense<0.000000e+00> : vector<8x16xf32>
    %602 = tpu.matmul %601, %599, %cst_526 {dimension_numbers = #tpu.dot_dimension_numbers<[1], [0], [0], [1], [0, 0, 1, 1], [], []>} : vector<8x4xf32>, vector<4x16xf32>, vector<8x16xf32> -> vector<8x16xf32>
    %603 = arith.addf %594, %602 : vector<8x16xf32>
    %c5_i32_527 = arith.constant 5 : i32
    %604 = arith.addi %0, %c5_i32_527 : i32
    %c2_i32_528 = arith.constant 2 : i32
    %605 = arith.addi %604, %c2_i32_528 : i32
    %c0_529 = arith.constant 0 : index
    %c0_530 = arith.constant 0 : index
    %606 = arith.index_cast %605 : i32 to index
    %c2_531 = arith.constant 2 : index
    %607 = vector.load %arg2[%c0_529, %c0_530, %606, %c2_531] : memref<1x4x18x18xf32, #tpu.memory_space<vmem>>, vector<1x4x1x16xf32>
    %608 = vector.shape_cast %607 : vector<1x4x1x16xf32> to vector<4x16xf32>
    %c8_532 = arith.constant 8 : index
    %c0_533 = arith.constant 0 : index
    %c0_534 = arith.constant 0 : index
    %609 = vector.load %arg3[%c8_532, %c0_533, %c0_534] : memref<9x8x4xf32, #tpu.memory_space<vmem>>, vector<1x8x4xf32>
    %610 = vector.shape_cast %609 : vector<1x8x4xf32> to vector<8x4xf32>
    %cst_535 = arith.constant dense<0.000000e+00> : vector<8x16xf32>
    %611 = tpu.matmul %610, %608, %cst_535 {dimension_numbers = #tpu.dot_dimension_numbers<[1], [0], [0], [1], [0, 0, 1, 1], [], []>} : vector<8x4xf32>, vector<4x16xf32>, vector<8x16xf32> -> vector<8x16xf32>
    %612 = arith.addf %603, %611 : vector<8x16xf32>
    %c0_536 = arith.constant 0 : index
    %c0_537 = arith.constant 0 : index
    %613 = vector.load %arg4[%c0_536, %c0_537] : memref<8x1xf32, #tpu.memory_space<vmem>>, vector<8x1xf32>
    %614 = vector.broadcast %613 : vector<8x1xf32> to vector<8x16xf32>
    %615 = arith.addf %612, %614 : vector<8x16xf32>
    %cst_538 = arith.constant 2.000000e+01 : f32
    %616 = vector.broadcast %cst_538 : f32 to vector<8x16xf32>
    %617 = arith.minimumf %615, %616 : vector<8x16xf32>
    %618 = math.exp %617 : vector<8x16xf32>
    %cst_539 = arith.constant 2.000000e+00 : f32
    %619 = vector.broadcast %cst_539 : f32 to vector<8x16xf32>
    %620 = arith.addf %618, %619 : vector<8x16xf32>
    %621 = arith.mulf %618, %620 : vector<8x16xf32>
    %cst_540 = arith.constant 2.000000e+00 : f32
    %622 = vector.broadcast %cst_540 : f32 to vector<8x16xf32>
    %623 = arith.addf %621, %622 : vector<8x16xf32>
    %624 = tpu.reciprocal %623 {approx = true} : vector<8x16xf32> -> vector<8x16xf32>
    %625 = arith.mulf %623, %624 : vector<8x16xf32>
    %cst_541 = arith.constant 2.000000e+00 : f32
    %626 = vector.broadcast %cst_541 : f32 to vector<8x16xf32>
    %627 = arith.subf %626, %625 : vector<8x16xf32>
    %628 = arith.mulf %624, %627 : vector<8x16xf32>
    %cst_542 = arith.constant 1.000000e+00 : f32
    %629 = vector.broadcast %cst_542 : f32 to vector<8x16xf32>
    %630 = arith.addf %615, %629 : vector<8x16xf32>
    %cst_543 = arith.constant 2.000000e+00 : f32
    %631 = vector.broadcast %cst_543 : f32 to vector<8x16xf32>
    %632 = arith.mulf %631, %628 : vector<8x16xf32>
    %633 = arith.subf %630, %632 : vector<8x16xf32>
    %c0_544 = arith.constant 0 : index
    %c0_545 = arith.constant 0 : index
    %c5_546 = arith.constant 5 : index
    %c0_547 = arith.constant 0 : index
    %634 = vector.load %arg5[%c0_544, %c0_545, %c5_546, %c0_547] : memref<1x8x8x16xf32, #tpu.memory_space<vmem>>, vector<1x8x1x16xf32>
    %635 = vector.shape_cast %634 : vector<1x8x1x16xf32> to vector<8x16xf32>
    %636 = vector.shape_cast %633 : vector<8x16xf32> to vector<1x8x1x16xf32>
    tpu.vector_store %arg5[%c0_544, %c0_545, %c5_546, %c0_547], %636 {strides = array<i32>} : memref<1x8x8x16xf32, #tpu.memory_space<vmem>>, vector<1x8x1x16xf32>,
    %cst_548 = arith.constant 0.000000e+00 : f32
    %637 = vector.broadcast %cst_548 : f32 to vector<8x16xf32>
    %c6_i32 = arith.constant 6 : i32
    %638 = arith.addi %0, %c6_i32 : i32
    %c0_i32_549 = arith.constant 0 : i32
    %639 = arith.addi %638, %c0_i32_549 : i32
    %c0_550 = arith.constant 0 : index
    %c0_551 = arith.constant 0 : index
    %640 = arith.index_cast %639 : i32 to index
    %c0_552 = arith.constant 0 : index
    %641 = vector.load %arg2[%c0_550, %c0_551, %640, %c0_552] : memref<1x4x18x18xf32, #tpu.memory_space<vmem>>, vector<1x4x1x16xf32>
    %642 = vector.shape_cast %641 : vector<1x4x1x16xf32> to vector<4x16xf32>
    %c0_553 = arith.constant 0 : index
    %c0_554 = arith.constant 0 : index
    %c0_555 = arith.constant 0 : index
    %643 = vector.load %arg3[%c0_553, %c0_554, %c0_555] : memref<9x8x4xf32, #tpu.memory_space<vmem>>, vector<1x8x4xf32>
    %644 = vector.shape_cast %643 : vector<1x8x4xf32> to vector<8x4xf32>
    %cst_556 = arith.constant dense<0.000000e+00> : vector<8x16xf32>
    %645 = tpu.matmul %644, %642, %cst_556 {dimension_numbers = #tpu.dot_dimension_numbers<[1], [0], [0], [1], [0, 0, 1, 1], [], []>} : vector<8x4xf32>, vector<4x16xf32>, vector<8x16xf32> -> vector<8x16xf32>
    %646 = arith.addf %637, %645 : vector<8x16xf32>
    %c6_i32_557 = arith.constant 6 : i32
    %647 = arith.addi %0, %c6_i32_557 : i32
    %c0_i32_558 = arith.constant 0 : i32
    %648 = arith.addi %647, %c0_i32_558 : i32
    %c0_559 = arith.constant 0 : index
    %c0_560 = arith.constant 0 : index
    %649 = arith.index_cast %648 : i32 to index
    %c1_561 = arith.constant 1 : index
    %650 = vector.load %arg2[%c0_559, %c0_560, %649, %c1_561] : memref<1x4x18x18xf32, #tpu.memory_space<vmem>>, vector<1x4x1x16xf32>
    %651 = vector.shape_cast %650 : vector<1x4x1x16xf32> to vector<4x16xf32>
    %c1_562 = arith.constant 1 : index
    %c0_563 = arith.constant 0 : index
    %c0_564 = arith.constant 0 : index
    %652 = vector.load %arg3[%c1_562, %c0_563, %c0_564] : memref<9x8x4xf32, #tpu.memory_space<vmem>>, vector<1x8x4xf32>
    %653 = vector.shape_cast %652 : vector<1x8x4xf32> to vector<8x4xf32>
    %cst_565 = arith.constant dense<0.000000e+00> : vector<8x16xf32>
    %654 = tpu.matmul %653, %651, %cst_565 {dimension_numbers = #tpu.dot_dimension_numbers<[1], [0], [0], [1], [0, 0, 1, 1], [], []>} : vector<8x4xf32>, vector<4x16xf32>, vector<8x16xf32> -> vector<8x16xf32>
    %655 = arith.addf %646, %654 : vector<8x16xf32>
    %c6_i32_566 = arith.constant 6 : i32
    %656 = arith.addi %0, %c6_i32_566 : i32
    %c0_i32_567 = arith.constant 0 : i32
    %657 = arith.addi %656, %c0_i32_567 : i32
    %c0_568 = arith.constant 0 : index
    %c0_569 = arith.constant 0 : index
    %658 = arith.index_cast %657 : i32 to index
    %c2_570 = arith.constant 2 : index
    %659 = vector.load %arg2[%c0_568, %c0_569, %658, %c2_570] : memref<1x4x18x18xf32, #tpu.memory_space<vmem>>, vector<1x4x1x16xf32>
    %660 = vector.shape_cast %659 : vector<1x4x1x16xf32> to vector<4x16xf32>
    %c2_571 = arith.constant 2 : index
    %c0_572 = arith.constant 0 : index
    %c0_573 = arith.constant 0 : index
    %661 = vector.load %arg3[%c2_571, %c0_572, %c0_573] : memref<9x8x4xf32, #tpu.memory_space<vmem>>, vector<1x8x4xf32>
    %662 = vector.shape_cast %661 : vector<1x8x4xf32> to vector<8x4xf32>
    %cst_574 = arith.constant dense<0.000000e+00> : vector<8x16xf32>
    %663 = tpu.matmul %662, %660, %cst_574 {dimension_numbers = #tpu.dot_dimension_numbers<[1], [0], [0], [1], [0, 0, 1, 1], [], []>} : vector<8x4xf32>, vector<4x16xf32>, vector<8x16xf32> -> vector<8x16xf32>
    %664 = arith.addf %655, %663 : vector<8x16xf32>
    %c6_i32_575 = arith.constant 6 : i32
    %665 = arith.addi %0, %c6_i32_575 : i32
    %c1_i32_576 = arith.constant 1 : i32
    %666 = arith.addi %665, %c1_i32_576 : i32
    %c0_577 = arith.constant 0 : index
    %c0_578 = arith.constant 0 : index
    %667 = arith.index_cast %666 : i32 to index
    %c0_579 = arith.constant 0 : index
    %668 = vector.load %arg2[%c0_577, %c0_578, %667, %c0_579] : memref<1x4x18x18xf32, #tpu.memory_space<vmem>>, vector<1x4x1x16xf32>
    %669 = vector.shape_cast %668 : vector<1x4x1x16xf32> to vector<4x16xf32>
    %c3_580 = arith.constant 3 : index
    %c0_581 = arith.constant 0 : index
    %c0_582 = arith.constant 0 : index
    %670 = vector.load %arg3[%c3_580, %c0_581, %c0_582] : memref<9x8x4xf32, #tpu.memory_space<vmem>>, vector<1x8x4xf32>
    %671 = vector.shape_cast %670 : vector<1x8x4xf32> to vector<8x4xf32>
    %cst_583 = arith.constant dense<0.000000e+00> : vector<8x16xf32>
    %672 = tpu.matmul %671, %669, %cst_583 {dimension_numbers = #tpu.dot_dimension_numbers<[1], [0], [0], [1], [0, 0, 1, 1], [], []>} : vector<8x4xf32>, vector<4x16xf32>, vector<8x16xf32> -> vector<8x16xf32>
    %673 = arith.addf %664, %672 : vector<8x16xf32>
    %c6_i32_584 = arith.constant 6 : i32
    %674 = arith.addi %0, %c6_i32_584 : i32
    %c1_i32_585 = arith.constant 1 : i32
    %675 = arith.addi %674, %c1_i32_585 : i32
    %c0_586 = arith.constant 0 : index
    %c0_587 = arith.constant 0 : index
    %676 = arith.index_cast %675 : i32 to index
    %c1_588 = arith.constant 1 : index
    %677 = vector.load %arg2[%c0_586, %c0_587, %676, %c1_588] : memref<1x4x18x18xf32, #tpu.memory_space<vmem>>, vector<1x4x1x16xf32>
    %678 = vector.shape_cast %677 : vector<1x4x1x16xf32> to vector<4x16xf32>
    %c4_589 = arith.constant 4 : index
    %c0_590 = arith.constant 0 : index
    %c0_591 = arith.constant 0 : index
    %679 = vector.load %arg3[%c4_589, %c0_590, %c0_591] : memref<9x8x4xf32, #tpu.memory_space<vmem>>, vector<1x8x4xf32>
    %680 = vector.shape_cast %679 : vector<1x8x4xf32> to vector<8x4xf32>
    %cst_592 = arith.constant dense<0.000000e+00> : vector<8x16xf32>
    %681 = tpu.matmul %680, %678, %cst_592 {dimension_numbers = #tpu.dot_dimension_numbers<[1], [0], [0], [1], [0, 0, 1, 1], [], []>} : vector<8x4xf32>, vector<4x16xf32>, vector<8x16xf32> -> vector<8x16xf32>
    %682 = arith.addf %673, %681 : vector<8x16xf32>
    %c6_i32_593 = arith.constant 6 : i32
    %683 = arith.addi %0, %c6_i32_593 : i32
    %c1_i32_594 = arith.constant 1 : i32
    %684 = arith.addi %683, %c1_i32_594 : i32
    %c0_595 = arith.constant 0 : index
    %c0_596 = arith.constant 0 : index
    %685 = arith.index_cast %684 : i32 to index
    %c2_597 = arith.constant 2 : index
    %686 = vector.load %arg2[%c0_595, %c0_596, %685, %c2_597] : memref<1x4x18x18xf32, #tpu.memory_space<vmem>>, vector<1x4x1x16xf32>
    %687 = vector.shape_cast %686 : vector<1x4x1x16xf32> to vector<4x16xf32>
    %c5_598 = arith.constant 5 : index
    %c0_599 = arith.constant 0 : index
    %c0_600 = arith.constant 0 : index
    %688 = vector.load %arg3[%c5_598, %c0_599, %c0_600] : memref<9x8x4xf32, #tpu.memory_space<vmem>>, vector<1x8x4xf32>
    %689 = vector.shape_cast %688 : vector<1x8x4xf32> to vector<8x4xf32>
    %cst_601 = arith.constant dense<0.000000e+00> : vector<8x16xf32>
    %690 = tpu.matmul %689, %687, %cst_601 {dimension_numbers = #tpu.dot_dimension_numbers<[1], [0], [0], [1], [0, 0, 1, 1], [], []>} : vector<8x4xf32>, vector<4x16xf32>, vector<8x16xf32> -> vector<8x16xf32>
    %691 = arith.addf %682, %690 : vector<8x16xf32>
    %c6_i32_602 = arith.constant 6 : i32
    %692 = arith.addi %0, %c6_i32_602 : i32
    %c2_i32_603 = arith.constant 2 : i32
    %693 = arith.addi %692, %c2_i32_603 : i32
    %c0_604 = arith.constant 0 : index
    %c0_605 = arith.constant 0 : index
    %694 = arith.index_cast %693 : i32 to index
    %c0_606 = arith.constant 0 : index
    %695 = vector.load %arg2[%c0_604, %c0_605, %694, %c0_606] : memref<1x4x18x18xf32, #tpu.memory_space<vmem>>, vector<1x4x1x16xf32>
    %696 = vector.shape_cast %695 : vector<1x4x1x16xf32> to vector<4x16xf32>
    %c6_607 = arith.constant 6 : index
    %c0_608 = arith.constant 0 : index
    %c0_609 = arith.constant 0 : index
    %697 = vector.load %arg3[%c6_607, %c0_608, %c0_609] : memref<9x8x4xf32, #tpu.memory_space<vmem>>, vector<1x8x4xf32>
    %698 = vector.shape_cast %697 : vector<1x8x4xf32> to vector<8x4xf32>
    %cst_610 = arith.constant dense<0.000000e+00> : vector<8x16xf32>
    %699 = tpu.matmul %698, %696, %cst_610 {dimension_numbers = #tpu.dot_dimension_numbers<[1], [0], [0], [1], [0, 0, 1, 1], [], []>} : vector<8x4xf32>, vector<4x16xf32>, vector<8x16xf32> -> vector<8x16xf32>
    %700 = arith.addf %691, %699 : vector<8x16xf32>
    %c6_i32_611 = arith.constant 6 : i32
    %701 = arith.addi %0, %c6_i32_611 : i32
    %c2_i32_612 = arith.constant 2 : i32
    %702 = arith.addi %701, %c2_i32_612 : i32
    %c0_613 = arith.constant 0 : index
    %c0_614 = arith.constant 0 : index
    %703 = arith.index_cast %702 : i32 to index
    %c1_615 = arith.constant 1 : index
    %704 = vector.load %arg2[%c0_613, %c0_614, %703, %c1_615] : memref<1x4x18x18xf32, #tpu.memory_space<vmem>>, vector<1x4x1x16xf32>
    %705 = vector.shape_cast %704 : vector<1x4x1x16xf32> to vector<4x16xf32>
    %c7_616 = arith.constant 7 : index
    %c0_617 = arith.constant 0 : index
    %c0_618 = arith.constant 0 : index
    %706 = vector.load %arg3[%c7_616, %c0_617, %c0_618] : memref<9x8x4xf32, #tpu.memory_space<vmem>>, vector<1x8x4xf32>
    %707 = vector.shape_cast %706 : vector<1x8x4xf32> to vector<8x4xf32>
    %cst_619 = arith.constant dense<0.000000e+00> : vector<8x16xf32>
    %708 = tpu.matmul %707, %705, %cst_619 {dimension_numbers = #tpu.dot_dimension_numbers<[1], [0], [0], [1], [0, 0, 1, 1], [], []>} : vector<8x4xf32>, vector<4x16xf32>, vector<8x16xf32> -> vector<8x16xf32>
    %709 = arith.addf %700, %708 : vector<8x16xf32>
    %c6_i32_620 = arith.constant 6 : i32
    %710 = arith.addi %0, %c6_i32_620 : i32
    %c2_i32_621 = arith.constant 2 : i32
    %711 = arith.addi %710, %c2_i32_621 : i32
    %c0_622 = arith.constant 0 : index
    %c0_623 = arith.constant 0 : index
    %712 = arith.index_cast %711 : i32 to index
    %c2_624 = arith.constant 2 : index
    %713 = vector.load %arg2[%c0_622, %c0_623, %712, %c2_624] : memref<1x4x18x18xf32, #tpu.memory_space<vmem>>, vector<1x4x1x16xf32>
    %714 = vector.shape_cast %713 : vector<1x4x1x16xf32> to vector<4x16xf32>
    %c8_625 = arith.constant 8 : index
    %c0_626 = arith.constant 0 : index
    %c0_627 = arith.constant 0 : index
    %715 = vector.load %arg3[%c8_625, %c0_626, %c0_627] : memref<9x8x4xf32, #tpu.memory_space<vmem>>, vector<1x8x4xf32>
    %716 = vector.shape_cast %715 : vector<1x8x4xf32> to vector<8x4xf32>
    %cst_628 = arith.constant dense<0.000000e+00> : vector<8x16xf32>
    %717 = tpu.matmul %716, %714, %cst_628 {dimension_numbers = #tpu.dot_dimension_numbers<[1], [0], [0], [1], [0, 0, 1, 1], [], []>} : vector<8x4xf32>, vector<4x16xf32>, vector<8x16xf32> -> vector<8x16xf32>
    %718 = arith.addf %709, %717 : vector<8x16xf32>
    %c0_629 = arith.constant 0 : index
    %c0_630 = arith.constant 0 : index
    %719 = vector.load %arg4[%c0_629, %c0_630] : memref<8x1xf32, #tpu.memory_space<vmem>>, vector<8x1xf32>
    %720 = vector.broadcast %719 : vector<8x1xf32> to vector<8x16xf32>
    %721 = arith.addf %718, %720 : vector<8x16xf32>
    %cst_631 = arith.constant 2.000000e+01 : f32
    %722 = vector.broadcast %cst_631 : f32 to vector<8x16xf32>
    %723 = arith.minimumf %721, %722 : vector<8x16xf32>
    %724 = math.exp %723 : vector<8x16xf32>
    %cst_632 = arith.constant 2.000000e+00 : f32
    %725 = vector.broadcast %cst_632 : f32 to vector<8x16xf32>
    %726 = arith.addf %724, %725 : vector<8x16xf32>
    %727 = arith.mulf %724, %726 : vector<8x16xf32>
    %cst_633 = arith.constant 2.000000e+00 : f32
    %728 = vector.broadcast %cst_633 : f32 to vector<8x16xf32>
    %729 = arith.addf %727, %728 : vector<8x16xf32>
    %730 = tpu.reciprocal %729 {approx = true} : vector<8x16xf32> -> vector<8x16xf32>
    %731 = arith.mulf %729, %730 : vector<8x16xf32>
    %cst_634 = arith.constant 2.000000e+00 : f32
    %732 = vector.broadcast %cst_634 : f32 to vector<8x16xf32>
    %733 = arith.subf %732, %731 : vector<8x16xf32>
    %734 = arith.mulf %730, %733 : vector<8x16xf32>
    %cst_635 = arith.constant 1.000000e+00 : f32
    %735 = vector.broadcast %cst_635 : f32 to vector<8x16xf32>
    %736 = arith.addf %721, %735 : vector<8x16xf32>
    %cst_636 = arith.constant 2.000000e+00 : f32
    %737 = vector.broadcast %cst_636 : f32 to vector<8x16xf32>
    %738 = arith.mulf %737, %734 : vector<8x16xf32>
    %739 = arith.subf %736, %738 : vector<8x16xf32>
    %c0_637 = arith.constant 0 : index
    %c0_638 = arith.constant 0 : index
    %c6_639 = arith.constant 6 : index
    %c0_640 = arith.constant 0 : index
    %740 = vector.load %arg5[%c0_637, %c0_638, %c6_639, %c0_640] : memref<1x8x8x16xf32, #tpu.memory_space<vmem>>, vector<1x8x1x16xf32>
    %741 = vector.shape_cast %740 : vector<1x8x1x16xf32> to vector<8x16xf32>
    %742 = vector.shape_cast %739 : vector<8x16xf32> to vector<1x8x1x16xf32>
    tpu.vector_store %arg5[%c0_637, %c0_638, %c6_639, %c0_640], %742 {strides = array<i32>} : memref<1x8x8x16xf32, #tpu.memory_space<vmem>>, vector<1x8x1x16xf32>,
    %cst_641 = arith.constant 0.000000e+00 : f32
    %743 = vector.broadcast %cst_641 : f32 to vector<8x16xf32>
    %c7_i32 = arith.constant 7 : i32
    %744 = arith.addi %0, %c7_i32 : i32
    %c0_i32_642 = arith.constant 0 : i32
    %745 = arith.addi %744, %c0_i32_642 : i32
    %c0_643 = arith.constant 0 : index
    %c0_644 = arith.constant 0 : index
    %746 = arith.index_cast %745 : i32 to index
    %c0_645 = arith.constant 0 : index
    %747 = vector.load %arg2[%c0_643, %c0_644, %746, %c0_645] : memref<1x4x18x18xf32, #tpu.memory_space<vmem>>, vector<1x4x1x16xf32>
    %748 = vector.shape_cast %747 : vector<1x4x1x16xf32> to vector<4x16xf32>
    %c0_646 = arith.constant 0 : index
    %c0_647 = arith.constant 0 : index
    %c0_648 = arith.constant 0 : index
    %749 = vector.load %arg3[%c0_646, %c0_647, %c0_648] : memref<9x8x4xf32, #tpu.memory_space<vmem>>, vector<1x8x4xf32>
    %750 = vector.shape_cast %749 : vector<1x8x4xf32> to vector<8x4xf32>
    %cst_649 = arith.constant dense<0.000000e+00> : vector<8x16xf32>
    %751 = tpu.matmul %750, %748, %cst_649 {dimension_numbers = #tpu.dot_dimension_numbers<[1], [0], [0], [1], [0, 0, 1, 1], [], []>} : vector<8x4xf32>, vector<4x16xf32>, vector<8x16xf32> -> vector<8x16xf32>
    %752 = arith.addf %743, %751 : vector<8x16xf32>
    %c7_i32_650 = arith.constant 7 : i32
    %753 = arith.addi %0, %c7_i32_650 : i32
    %c0_i32_651 = arith.constant 0 : i32
    %754 = arith.addi %753, %c0_i32_651 : i32
    %c0_652 = arith.constant 0 : index
    %c0_653 = arith.constant 0 : index
    %755 = arith.index_cast %754 : i32 to index
    %c1_654 = arith.constant 1 : index
    %756 = vector.load %arg2[%c0_652, %c0_653, %755, %c1_654] : memref<1x4x18x18xf32, #tpu.memory_space<vmem>>, vector<1x4x1x16xf32>
    %757 = vector.shape_cast %756 : vector<1x4x1x16xf32> to vector<4x16xf32>
    %c1_655 = arith.constant 1 : index
    %c0_656 = arith.constant 0 : index
    %c0_657 = arith.constant 0 : index
    %758 = vector.load %arg3[%c1_655, %c0_656, %c0_657] : memref<9x8x4xf32, #tpu.memory_space<vmem>>, vector<1x8x4xf32>
    %759 = vector.shape_cast %758 : vector<1x8x4xf32> to vector<8x4xf32>
    %cst_658 = arith.constant dense<0.000000e+00> : vector<8x16xf32>
    %760 = tpu.matmul %759, %757, %cst_658 {dimension_numbers = #tpu.dot_dimension_numbers<[1], [0], [0], [1], [0, 0, 1, 1], [], []>} : vector<8x4xf32>, vector<4x16xf32>, vector<8x16xf32> -> vector<8x16xf32>
    %761 = arith.addf %752, %760 : vector<8x16xf32>
    %c7_i32_659 = arith.constant 7 : i32
    %762 = arith.addi %0, %c7_i32_659 : i32
    %c0_i32_660 = arith.constant 0 : i32
    %763 = arith.addi %762, %c0_i32_660 : i32
    %c0_661 = arith.constant 0 : index
    %c0_662 = arith.constant 0 : index
    %764 = arith.index_cast %763 : i32 to index
    %c2_663 = arith.constant 2 : index
    %765 = vector.load %arg2[%c0_661, %c0_662, %764, %c2_663] : memref<1x4x18x18xf32, #tpu.memory_space<vmem>>, vector<1x4x1x16xf32>
    %766 = vector.shape_cast %765 : vector<1x4x1x16xf32> to vector<4x16xf32>
    %c2_664 = arith.constant 2 : index
    %c0_665 = arith.constant 0 : index
    %c0_666 = arith.constant 0 : index
    %767 = vector.load %arg3[%c2_664, %c0_665, %c0_666] : memref<9x8x4xf32, #tpu.memory_space<vmem>>, vector<1x8x4xf32>
    %768 = vector.shape_cast %767 : vector<1x8x4xf32> to vector<8x4xf32>
    %cst_667 = arith.constant dense<0.000000e+00> : vector<8x16xf32>
    %769 = tpu.matmul %768, %766, %cst_667 {dimension_numbers = #tpu.dot_dimension_numbers<[1], [0], [0], [1], [0, 0, 1, 1], [], []>} : vector<8x4xf32>, vector<4x16xf32>, vector<8x16xf32> -> vector<8x16xf32>
    %770 = arith.addf %761, %769 : vector<8x16xf32>
    %c7_i32_668 = arith.constant 7 : i32
    %771 = arith.addi %0, %c7_i32_668 : i32
    %c1_i32_669 = arith.constant 1 : i32
    %772 = arith.addi %771, %c1_i32_669 : i32
    %c0_670 = arith.constant 0 : index
    %c0_671 = arith.constant 0 : index
    %773 = arith.index_cast %772 : i32 to index
    %c0_672 = arith.constant 0 : index
    %774 = vector.load %arg2[%c0_670, %c0_671, %773, %c0_672] : memref<1x4x18x18xf32, #tpu.memory_space<vmem>>, vector<1x4x1x16xf32>
    %775 = vector.shape_cast %774 : vector<1x4x1x16xf32> to vector<4x16xf32>
    %c3_673 = arith.constant 3 : index
    %c0_674 = arith.constant 0 : index
    %c0_675 = arith.constant 0 : index
    %776 = vector.load %arg3[%c3_673, %c0_674, %c0_675] : memref<9x8x4xf32, #tpu.memory_space<vmem>>, vector<1x8x4xf32>
    %777 = vector.shape_cast %776 : vector<1x8x4xf32> to vector<8x4xf32>
    %cst_676 = arith.constant dense<0.000000e+00> : vector<8x16xf32>
    %778 = tpu.matmul %777, %775, %cst_676 {dimension_numbers = #tpu.dot_dimension_numbers<[1], [0], [0], [1], [0, 0, 1, 1], [], []>} : vector<8x4xf32>, vector<4x16xf32>, vector<8x16xf32> -> vector<8x16xf32>
    %779 = arith.addf %770, %778 : vector<8x16xf32>
    %c7_i32_677 = arith.constant 7 : i32
    %780 = arith.addi %0, %c7_i32_677 : i32
    %c1_i32_678 = arith.constant 1 : i32
    %781 = arith.addi %780, %c1_i32_678 : i32
    %c0_679 = arith.constant 0 : index
    %c0_680 = arith.constant 0 : index
    %782 = arith.index_cast %781 : i32 to index
    %c1_681 = arith.constant 1 : index
    %783 = vector.load %arg2[%c0_679, %c0_680, %782, %c1_681] : memref<1x4x18x18xf32, #tpu.memory_space<vmem>>, vector<1x4x1x16xf32>
    %784 = vector.shape_cast %783 : vector<1x4x1x16xf32> to vector<4x16xf32>
    %c4_682 = arith.constant 4 : index
    %c0_683 = arith.constant 0 : index
    %c0_684 = arith.constant 0 : index
    %785 = vector.load %arg3[%c4_682, %c0_683, %c0_684] : memref<9x8x4xf32, #tpu.memory_space<vmem>>, vector<1x8x4xf32>
    %786 = vector.shape_cast %785 : vector<1x8x4xf32> to vector<8x4xf32>
    %cst_685 = arith.constant dense<0.000000e+00> : vector<8x16xf32>
    %787 = tpu.matmul %786, %784, %cst_685 {dimension_numbers = #tpu.dot_dimension_numbers<[1], [0], [0], [1], [0, 0, 1, 1], [], []>} : vector<8x4xf32>, vector<4x16xf32>, vector<8x16xf32> -> vector<8x16xf32>
    %788 = arith.addf %779, %787 : vector<8x16xf32>
    %c7_i32_686 = arith.constant 7 : i32
    %789 = arith.addi %0, %c7_i32_686 : i32
    %c1_i32_687 = arith.constant 1 : i32
    %790 = arith.addi %789, %c1_i32_687 : i32
    %c0_688 = arith.constant 0 : index
    %c0_689 = arith.constant 0 : index
    %791 = arith.index_cast %790 : i32 to index
    %c2_690 = arith.constant 2 : index
    %792 = vector.load %arg2[%c0_688, %c0_689, %791, %c2_690] : memref<1x4x18x18xf32, #tpu.memory_space<vmem>>, vector<1x4x1x16xf32>
    %793 = vector.shape_cast %792 : vector<1x4x1x16xf32> to vector<4x16xf32>
    %c5_691 = arith.constant 5 : index
    %c0_692 = arith.constant 0 : index
    %c0_693 = arith.constant 0 : index
    %794 = vector.load %arg3[%c5_691, %c0_692, %c0_693] : memref<9x8x4xf32, #tpu.memory_space<vmem>>, vector<1x8x4xf32>
    %795 = vector.shape_cast %794 : vector<1x8x4xf32> to vector<8x4xf32>
    %cst_694 = arith.constant dense<0.000000e+00> : vector<8x16xf32>
    %796 = tpu.matmul %795, %793, %cst_694 {dimension_numbers = #tpu.dot_dimension_numbers<[1], [0], [0], [1], [0, 0, 1, 1], [], []>} : vector<8x4xf32>, vector<4x16xf32>, vector<8x16xf32> -> vector<8x16xf32>
    %797 = arith.addf %788, %796 : vector<8x16xf32>
    %c7_i32_695 = arith.constant 7 : i32
    %798 = arith.addi %0, %c7_i32_695 : i32
    %c2_i32_696 = arith.constant 2 : i32
    %799 = arith.addi %798, %c2_i32_696 : i32
    %c0_697 = arith.constant 0 : index
    %c0_698 = arith.constant 0 : index
    %800 = arith.index_cast %799 : i32 to index
    %c0_699 = arith.constant 0 : index
    %801 = vector.load %arg2[%c0_697, %c0_698, %800, %c0_699] : memref<1x4x18x18xf32, #tpu.memory_space<vmem>>, vector<1x4x1x16xf32>
    %802 = vector.shape_cast %801 : vector<1x4x1x16xf32> to vector<4x16xf32>
    %c6_700 = arith.constant 6 : index
    %c0_701 = arith.constant 0 : index
    %c0_702 = arith.constant 0 : index
    %803 = vector.load %arg3[%c6_700, %c0_701, %c0_702] : memref<9x8x4xf32, #tpu.memory_space<vmem>>, vector<1x8x4xf32>
    %804 = vector.shape_cast %803 : vector<1x8x4xf32> to vector<8x4xf32>
    %cst_703 = arith.constant dense<0.000000e+00> : vector<8x16xf32>
    %805 = tpu.matmul %804, %802, %cst_703 {dimension_numbers = #tpu.dot_dimension_numbers<[1], [0], [0], [1], [0, 0, 1, 1], [], []>} : vector<8x4xf32>, vector<4x16xf32>, vector<8x16xf32> -> vector<8x16xf32>
    %806 = arith.addf %797, %805 : vector<8x16xf32>
    %c7_i32_704 = arith.constant 7 : i32
    %807 = arith.addi %0, %c7_i32_704 : i32
    %c2_i32_705 = arith.constant 2 : i32
    %808 = arith.addi %807, %c2_i32_705 : i32
    %c0_706 = arith.constant 0 : index
    %c0_707 = arith.constant 0 : index
    %809 = arith.index_cast %808 : i32 to index
    %c1_708 = arith.constant 1 : index
    %810 = vector.load %arg2[%c0_706, %c0_707, %809, %c1_708] : memref<1x4x18x18xf32, #tpu.memory_space<vmem>>, vector<1x4x1x16xf32>
    %811 = vector.shape_cast %810 : vector<1x4x1x16xf32> to vector<4x16xf32>
    %c7_709 = arith.constant 7 : index
    %c0_710 = arith.constant 0 : index
    %c0_711 = arith.constant 0 : index
    %812 = vector.load %arg3[%c7_709, %c0_710, %c0_711] : memref<9x8x4xf32, #tpu.memory_space<vmem>>, vector<1x8x4xf32>
    %813 = vector.shape_cast %812 : vector<1x8x4xf32> to vector<8x4xf32>
    %cst_712 = arith.constant dense<0.000000e+00> : vector<8x16xf32>
    %814 = tpu.matmul %813, %811, %cst_712 {dimension_numbers = #tpu.dot_dimension_numbers<[1], [0], [0], [1], [0, 0, 1, 1], [], []>} : vector<8x4xf32>, vector<4x16xf32>, vector<8x16xf32> -> vector<8x16xf32>
    %815 = arith.addf %806, %814 : vector<8x16xf32>
    %c7_i32_713 = arith.constant 7 : i32
    %816 = arith.addi %0, %c7_i32_713 : i32
    %c2_i32_714 = arith.constant 2 : i32
    %817 = arith.addi %816, %c2_i32_714 : i32
    %c0_715 = arith.constant 0 : index
    %c0_716 = arith.constant 0 : index
    %818 = arith.index_cast %817 : i32 to index
    %c2_717 = arith.constant 2 : index
    %819 = vector.load %arg2[%c0_715, %c0_716, %818, %c2_717] : memref<1x4x18x18xf32, #tpu.memory_space<vmem>>, vector<1x4x1x16xf32>
    %820 = vector.shape_cast %819 : vector<1x4x1x16xf32> to vector<4x16xf32>
    %c8_718 = arith.constant 8 : index
    %c0_719 = arith.constant 0 : index
    %c0_720 = arith.constant 0 : index
    %821 = vector.load %arg3[%c8_718, %c0_719, %c0_720] : memref<9x8x4xf32, #tpu.memory_space<vmem>>, vector<1x8x4xf32>
    %822 = vector.shape_cast %821 : vector<1x8x4xf32> to vector<8x4xf32>
    %cst_721 = arith.constant dense<0.000000e+00> : vector<8x16xf32>
    %823 = tpu.matmul %822, %820, %cst_721 {dimension_numbers = #tpu.dot_dimension_numbers<[1], [0], [0], [1], [0, 0, 1, 1], [], []>} : vector<8x4xf32>, vector<4x16xf32>, vector<8x16xf32> -> vector<8x16xf32>
    %824 = arith.addf %815, %823 : vector<8x16xf32>
    %c0_722 = arith.constant 0 : index
    %c0_723 = arith.constant 0 : index
    %825 = vector.load %arg4[%c0_722, %c0_723] : memref<8x1xf32, #tpu.memory_space<vmem>>, vector<8x1xf32>
    %826 = vector.broadcast %825 : vector<8x1xf32> to vector<8x16xf32>
    %827 = arith.addf %824, %826 : vector<8x16xf32>
    %cst_724 = arith.constant 2.000000e+01 : f32
    %828 = vector.broadcast %cst_724 : f32 to vector<8x16xf32>
    %829 = arith.minimumf %827, %828 : vector<8x16xf32>
    %830 = math.exp %829 : vector<8x16xf32>
    %cst_725 = arith.constant 2.000000e+00 : f32
    %831 = vector.broadcast %cst_725 : f32 to vector<8x16xf32>
    %832 = arith.addf %830, %831 : vector<8x16xf32>
    %833 = arith.mulf %830, %832 : vector<8x16xf32>
    %cst_726 = arith.constant 2.000000e+00 : f32
    %834 = vector.broadcast %cst_726 : f32 to vector<8x16xf32>
    %835 = arith.addf %833, %834 : vector<8x16xf32>
    %836 = tpu.reciprocal %835 {approx = true} : vector<8x16xf32> -> vector<8x16xf32>
    %837 = arith.mulf %835, %836 : vector<8x16xf32>
    %cst_727 = arith.constant 2.000000e+00 : f32
    %838 = vector.broadcast %cst_727 : f32 to vector<8x16xf32>
    %839 = arith.subf %838, %837 : vector<8x16xf32>
    %840 = arith.mulf %836, %839 : vector<8x16xf32>
    %cst_728 = arith.constant 1.000000e+00 : f32
    %841 = vector.broadcast %cst_728 : f32 to vector<8x16xf32>
    %842 = arith.addf %827, %841 : vector<8x16xf32>
    %cst_729 = arith.constant 2.000000e+00 : f32
    %843 = vector.broadcast %cst_729 : f32 to vector<8x16xf32>
    %844 = arith.mulf %843, %840 : vector<8x16xf32>
    %845 = arith.subf %842, %844 : vector<8x16xf32>
    %c0_730 = arith.constant 0 : index
    %c0_731 = arith.constant 0 : index
    %c7_732 = arith.constant 7 : index
    %c0_733 = arith.constant 0 : index
    %846 = vector.load %arg5[%c0_730, %c0_731, %c7_732, %c0_733] : memref<1x8x8x16xf32, #tpu.memory_space<vmem>>, vector<1x8x1x16xf32>
    %847 = vector.shape_cast %846 : vector<1x8x1x16xf32> to vector<8x16xf32>
    %848 = vector.shape_cast %845 : vector<8x16xf32> to vector<1x8x1x16xf32>
    tpu.vector_store %arg5[%c0_730, %c0_731, %c7_732, %c0_733], %848 {strides = array<i32>} : memref<1x8x8x16xf32, #tpu.memory_space<vmem>>, vector<1x8x1x16xf32>,
    return
  }
  func.func @transform_0(%arg0: i32, %arg1: i32) -> (i32, i32, i32, i32) {
    %c0_i32 = arith.constant 0 : i32
    %c0_i32_0 = arith.constant 0 : i32
    %c0_i32_1 = arith.constant 0 : i32
    %c0_i32_2 = arith.constant 0 : i32
    return %arg0, %c0_i32, %c0_i32_0, %c0_i32_1 : i32, i32, i32, i32
  }
  func.func @transform_1(%arg0: i32, %arg1: i32) -> (i32, i32, i32) {
    %c0_i32 = arith.constant 0 : i32
    %c0_i32_0 = arith.constant 0 : i32
    %c0_i32_1 = arith.constant 0 : i32
    %c0_i32_2 = arith.constant 0 : i32
    return %c0_i32, %c0_i32_0, %c0_i32_1 : i32, i32, i32
  }
  func.func @transform_2(%arg0: i32, %arg1: i32) -> (i32, i32) {
    %c0_i32 = arith.constant 0 : i32
    %c0_i32_0 = arith.constant 0 : i32
    %c0_i32_1 = arith.constant 0 : i32
    return %c0_i32, %c0_i32_0 : i32, i32
  }
  func.func @transform_3(%arg0: i32, %arg1: i32) -> (i32, i32, i32, i32) {
    %c0_i32 = arith.constant 0 : i32
    %c0_i32_0 = arith.constant 0 : i32
    %c0_i32_1 = arith.constant 0 : i32
    return %arg0, %c0_i32, %arg1, %c0_i32_0 : i32, i32, i32, i32
  }
}

</mosaic_0001>

<bundles_post_ra>
// kernel: tpu_custom_call.1
= control target key start
LH: loop header
LB: loop body
LE: loop exit
PB: predicated region body
PF: predicated region fallthrough
CT: control target
= control target key end

     0   :  { %8 = vsyncpa [#allocation3], 0  ;;  %s9247_s0 = inlined_call_operand.vmem [shape: f32[2,4,18,18], index: 0, kind: input, shape index: {}]   ;;  %s9248_s1 = inlined_call_operand.vmem [shape: f32[9,8,4], index: 1, kind: input, shape index: {}]   ;;  %s9249_s2 = inlined_call_operand.vmem [shape: f32[8,1], index: 2, kind: input, shape index: {}]   ;;  %s9250_s3 = inlined_call_operand.hbm [shape: f32[2,8,16,16], index: 3, kind: output, shape index: {}]  }
   0x1   :  { %10 = vsyncpa [#allocation3 + $0x1], 0  ;;  %s8051_s12 = smov 0   ;;  %s8053_s13 = smov 0  }
   0x2   :  { %s8055_s14 = smov 0   ;;  %s8057_s15 = smov 0  }
   0x3   :  { %s8059_s16 = smov 0   ;;  %s8061_s17 = smov 0  }
   0x4   :  { %s8063_s18 = smov 0   ;;  %s8065_s19 = smov 0  }
   0x5 LB: > { %s6984_s20 = sadd.s32 4294967295, %s8019_s19   ;;  %s6985_s21 = sadd.s32 4294967294, %s8019_s19   ;;  %s8019_s19 = sphi %s8065_s19, %s16_s19   ;;  %s8015_s18 = sphi %s8063_s18, %s9259_s18   ;;  %s8011_s17 = sphi %s8061_s17, %s9258_s17   ;;  %s8007_s16 = sphi %s8059_s16, %s9257_s16   ;;  %s8003_s15 = sphi %s8057_s15, %s9256_s15   ;;  %s7999_s14 = sphi %s8055_s14, %s9255_s14   ;;  %s7995_s13 = sphi %s8053_s13, %s9254_s13   ;;  %s7991_s12 = sphi %s8051_s12, %s9253_s12  }
   0x6   : > { %s25_s22 = sadd.s32 1, %s8011_s17  ;;  %s28_s23 = sadd.s32 1, %s8015_s18 }
   0x7   : > { %p26_p0 = scmp.ge.s32.totalorder %s25_s22, 2  ;;  %p115_p1 = scmp.ne.s32.totalorder %s7999_s14, %s7995_s13 }
   0x8   : > { %p116_p2 = scmp.eq.s32.totalorder %s6984_s20, 3  ;;  %p121_p5 = scmp.ne.s32.totalorder %s7995_s13, %s7991_s12 }
   0x9   : > { %s9261_s22 = smov (%p26_p0, %s25_s22), 0  ;;  %s9263_s23 = smov (!%p26_p0, %s28_s23), %s8015_s18 }
   0xa   : > { %s101_s24 = ssub.s32 %s8011_s17, %s9261_s22  ;;  %p8102_p3 = por %p116_p2, %p115_p1 }
   0xb   : > { %p30_p4 = scmp.ge.s32.totalorder %s9263_s23, 2  ;;  %p122_p6 = scmp.eq.s32.totalorder %s6985_s21, 3 }
   0xc   : > { %p6988_p7 = scmp.ge.s32.totalorder %s8019_s19, 1  ;;  %p154_p9 = scmp.lt.s32.totalorder %s8019_s19, 5 }
   0xd   : > { %s9265_s23 = smov (%p30_p4, %s9263_s23), 0  ;;  %p8111_p8 = por %p122_p6, %p121_p5 }
   0xe   : > { %s100_s27 = ssub.s32 %s8015_s18, %s9265_s23  ;;  %s105_s28 = sadd.s32 1, %s7999_s14 }
   0xf   : > { %s102_s29 = sor.u32 %s101_s24, %s100_s27  ;;  %p155_p10 = pnand %p6988_p7, %p154_p9 }
  0x10   : > { %p103_p11 = scmp.eq.s32.totalorder %s102_s29, 0  ;;  %p178_p12 = scmp.lt.s32.totalorder (!%p155_p10), %s8007_s16, 1 }
  0x11   : > { %158 = sbr.rel (%p155_p10) target bundleno = 562 (0x232), region = 32  ;;  %s6991_s6 = sshll.u32 (!%p155_p10), %s8003_s15, 3 }
  0x12   : > { %s8120_s30 = scalar_select %p103_p11, %s7999_s14, %s105_s28  }
  0x13   : > { %s8023_s21 = smov (!%p155_p10), 127   ;;  %s8024_s28 = smov (!%p155_p10), 126  }
  0x14   : > { %s7302_s20 = sshll.u32 (!%p155_p10), %s8007_s16, 4 }
  0x16   : > { %v8021_v0 = vmov 0.0   ;;  %s179_s4 = scalar_select %p178_p12, %s8007_s16, 1  ;;  %vm8022_vm0 = vmmov 0   ;;  %vm197_vm1 = vcmask 1041409   ;;  %vm200_vm2 = vcmask 1042434   ;;  %v8152_v20 = vld [vmem:[%s9248_s1] sm:$0xff] }
  0x17   : > { %7450 = vmatprep.subr.mxu0 %v8021_v0  ;;  %7455 = vmatprep.subr.mxu1 %v8021_v0  ;;  %vm203_vm3 = vcmask 1043459   ;;  %vm211_vm4 = vcmask 1043456   ;;  %vm207_vm5 = vcmask 31744   ;;  %v8176_v38 = vld [vmem:[%s9248_s1 + $0x18] sm:$0xff]  ;;  %vm1025_vm6 = vcmask 122880  }
  0x18   : > { %7452 = vmatprep.mubr.msk.f32.mxu0 %vm8022_vm0, %v8021_v0  ;;  %7457 = vmatprep.mubr.msk.f32.mxu1 %vm8022_vm0, %v8021_v0  ;;  %s7810_s5 = smul.u32 96, %s179_s4 }
  0x1a   : > { %s182_s9 = scalar_lea.vmem %s9247_s0, %s7810_s5  ;;  %s8027_s5 = smov [#allocation2]  }
  0x1b   : > { %s8134_s10 = scalar_lea.vmem %s182_s9, %s6991_s6  ;;  %s175_s9 = sand.u32 1, %s7995_s13  }
  0x1c   : > { %v185_v1 = vld [vmem:[%s8134_s10] sm:$0x1]  ;;  %v186_v2 = vld [vmem:[%s8134_s10 + $0x18] sm:$0x1]  ;;  %v187_v3 = vld [vmem:[%s8134_s10 + $0x30] sm:$0x1] }
  0x1d   : > { %v188_v4 = vld [vmem:[%s8134_s10 + $0x48] sm:$0x1]  ;;  %v196_v5 = vrot.slane %v186_v2, 7  ;;  %v199_v6 = vrot.slane %v187_v3, 6  ;;  %v7001_v7 = vld [vmem:[%s8134_s10 + $0x1] sm:$0x1] }
  0x1e   : > { %v202_v8 = vrot.slane %v188_v4, 5  ;;  %v7002_v9 = vld [vmem:[%s8134_s10 + $0x19] sm:$0x1]  ;;  %v7003_v10 = vld [vmem:[%s8134_s10 + $0x31] sm:$0x1]  ;;  %s9196_s29 = scalar_lea.sflag [#allocation3], %s175_s9 }
  0x1f   : > { %v198_v11 = vsel %vm197_vm1, %v196_v5, %v185_v1  ;;  %v7004_v12 = vld [vmem:[%s8134_s10 + $0x49] sm:$0x1]  ;;  %v451_v13 = vrot.slane %v7002_v9, 7  ;;  %v453_v14 = vrot.slane %v7003_v10, 6  ;;  %v7015_v15 = vld [vmem:[%s8134_s10 + $0x2] sm:$0x1] }
  0x20   : > { %v201_v16 = vsel %vm200_vm2, %v199_v6, %v198_v11  ;;  %v455_v17 = vrot.slane %v7004_v12, 5  ;;  %v7016_v18 = vld [vmem:[%s8134_s10 + $0x1a] sm:$0x1]  ;;  %v7017_v19 = vld [vmem:[%s8134_s10 + $0x32] sm:$0x1]  ;;  %s7931_s6 = sshll.u32 %s8027_s5, 4  ;;  %s7932_s6 = int_to_ptr.vmem [resolvable:$false] %s7931_s6 }
  0x21   : > { %v204_v21 = vsel %vm203_vm3, %v202_v8, %v201_v16  ;;  %v452_v22 = vsel %vm197_vm1, %v451_v13, %v7001_v7  ;;  %v7018_v23 = vld [vmem:[%s8134_s10 + $0x4a] sm:$0x1]  ;;  %v705_v24 = vrot.slane %v7016_v18, 7  ;;  %v707_v25 = vrot.slane %v7017_v19, 6  ;;  %v7028_v27 = vld [vmem:[%s8134_s10 + $0x1] sm:$0x1] }
  0x22   : > { %205 = vrot.lane.b32.xlu0 %v204_v21, %s8023_s21  ;;  %v454_v26 = vsel %vm200_vm2, %v453_v14, %v452_v22  ;;  %v7029_v28 = vld [vmem:[%s8134_s10 + $0x19] sm:$0x1]  ;;  %v7030_v29 = vld [vmem:[%s8134_s10 + $0x31] sm:$0x1]  ;;  %7456 = vmatpush3.msk.msra.mxu1 %vm211_vm4, %v204_v21  ;;  %v709_v32 = vrot.slane %v7018_v23, 5  ;;  %s7933_s7 = scalar_lea.vmem %s7932_s6, 2048 }
  0x23   : > { %v456_v30 = vsel %vm203_vm3, %v455_v17, %v454_v26  ;;  %v706_v31 = vsel %vm197_vm1, %v705_v24, %v7015_v15  ;;  %v1044_v33 = vrot.slane %v7029_v28, 7  ;;  %7458 = vmatmul.mubr.msk.f32.vlgmr.msra.gmra.mxu1 %vm207_vm5, %v8152_v20  ;;  %7465 = vmatprep.subr.mxu1 %v8021_v0  ;;  %v7031_v35 = vld [vmem:[%s8134_s10 + $0x49] sm:$0x1]  ;;  %v1046_v36 = vrot.slane %v7030_v29, 6  ;;  %v7041_v37 = vld [vmem:[%s8134_s10 + $0x1a] sm:$0x1] }
  0x24   : > { %535 = vrot.lane.b32.xlu1 %v456_v30, %s8023_s21  ;;  %v708_v34 = vsel %vm200_vm2, %v707_v25, %v706_v31  ;;  %7466 = vmatpush3.msk.msra.mxu1 %vm211_vm4, %v456_v30  ;;  %v7042_v40 = vld [vmem:[%s8134_s10 + $0x32] sm:$0x1]  ;;  %v1290_v41 = vrot.slane %v7041_v37, 7  ;;  %v7040_v42 = vld [vmem:[%s8134_s10 + $0x2] sm:$0x1]  ;;  %v1048_v45 = vrot.slane %v7031_v35, 5 }
  0x25   : > { %v1045_v39 = vsel %vm197_vm1, %v1044_v33, %v7028_v27  ;;  %7467 = vmatprep.mubr.msk.f32.mxu1 %vm8022_vm0, %v8021_v0  ;;  %7475 = vmatprep.subr.mxu1 %v8021_v0  ;;  %v7055_v43 = vld [vmem:[%s8134_s10 + $0x1b] sm:$0x1]  ;;  %v8187_v44 = vsel %vm203_vm3, %v709_v32, %v708_v34  ;;  %v7043_v47 = vld [vmem:[%s8134_s10 + $0x4a] sm:$0x1]  ;;  %v1292_v48 = vrot.slane %v7042_v40, 6 }
  0x26   : > { %361 = vrot.lane.b32.xlu0 %v204_v21, %s8024_s28  ;;  %v1047_v46 = vsel %vm200_vm2, %v1046_v36, %v1045_v39  ;;  %v1291_v49 = vsel %vm197_vm1, %v1290_v41, %v7040_v42  ;;  %v7056_v50 = vld [vmem:[%s8134_s10 + $0x33] sm:$0x1]  ;;  %v1541_v51 = vrot.slane %v7055_v43, 7  ;;  %v7054_v52 = vld [vmem:[%s8134_s10 + $0x3] sm:$0x1]  ;;  %v1294_v55 = vrot.slane %v7043_v47, 5 }
  0x27   : > { %7468 = vmatmul.mubr.msk.f32.vlgmr.msra.gmra.mxu1 %vm207_vm5, %v8176_v38  ;;  %v7068_v53 = vld [vmem:[%s8134_s10 + $0x1a] sm:$0x1]  ;;  %v8203_v54 = vsel %vm203_vm3, %v1048_v45, %v1047_v46  ;;  %v1293_v56 = vsel %vm200_vm2, %v1292_v48, %v1291_v49  ;;  %v7057_v57 = vld [vmem:[%s8134_s10 + $0x4b] sm:$0x1]  ;;  %v1543_v58 = vrot.slane %v7056_v50, 6 }
  0x28   : > { %615 = vrot.lane.b32.xlu1 %v456_v30, %s8024_s28  ;;  %7477 = vmatprep.mubr.msk.f32.mxu1 %vm8022_vm0, %v8021_v0  ;;  %v1542_v59 = vsel %vm197_vm1, %v1541_v51, %v7054_v52  ;;  %v7069_v60 = vld [vmem:[%s8134_s10 + $0x32] sm:$0x1]  ;;  %v1877_v61 = vrot.slane %v7068_v53, 7  ;;  %v7067_v62 = vld [vmem:[%s8134_s10 + $0x2] sm:$0x1]  ;;  %v8216_v1 = vsel %vm203_vm3, %v1294_v55, %v1293_v56  ;;  %v1545_v2 = vrot.slane %v7057_v57, 5 }
  0x29   : > { %v7080_v63 = vld [vmem:[%s8134_s10 + $0x1b] sm:$0x1]  ;;  %v1544_v3 = vsel %vm200_vm2, %v1543_v58, %v1542_v59  ;;  %v7070_v4 = vld [vmem:[%s8134_s10 + $0x4a] sm:$0x1]  ;;  %v1879_v5 = vrot.slane %v7069_v60, 6 }
  0x2a   : > { %789 = vrot.lane.b32.xlu0 %v8187_v44, %s8023_s21  ;;  %v1878_v6 = vsel %vm197_vm1, %v1877_v61, %v7067_v62  ;;  %v7081_v7 = vld [vmem:[%s8134_s10 + $0x33] sm:$0x1]  ;;  %v2123_v8 = vrot.slane %v7080_v63, 7  ;;  %v7094_v9 = vld [vmem:[%s8134_s10 + $0x1c] sm:$0x1]  ;;  %v8230_v12 = vsel %vm203_vm3, %v1545_v2, %v1544_v3  ;;  %v1881_v13 = vrot.slane %v7070_v4, 5 }
  0x2b   : > { %v7079_v10 = vld [vmem:[%s8134_s10 + $0x3] sm:$0x1]  ;;  %v7107_v11 = vld [vmem:[%s8134_s10 + $0x1b] sm:$0x1]  ;;  %v1880_v14 = vsel %vm200_vm2, %v1879_v5, %v1878_v6  ;;  %v7082_v15 = vld [vmem:[%s8134_s10 + $0x4b] sm:$0x1] }
  0x2c   : > { %869 = vrot.lane.b32.xlu1 %v8187_v44, %s8024_s28  ;;  %v2125_v16 = vrot.slane %v7081_v7, 6  ;;  %v7095_v17 = vld [vmem:[%s8134_s10 + $0x34] sm:$0x1]  ;;  %v2374_v18 = vrot.slane %v7094_v9, 7  ;;  %v2124_v19 = vsel %vm197_vm1, %v2123_v8, %v7079_v10  ;;  %v7093_v21 = vld [vmem:[%s8134_s10 + $0x4] sm:$0x1]  ;;  %v8245_v26 = vsel %vm203_vm3, %v1881_v13, %v1880_v14 }
  0x2d   : > { %v7108_v22 = vld [vmem:[%s8134_s10 + $0x33] sm:$0x1]  ;;  %v2710_v23 = vrot.slane %v7107_v11, 7  ;;  %v7106_v24 = vld [vmem:[%s8134_s10 + $0x3] sm:$0x1]  ;;  %v2127_v27 = vrot.slane %v7082_v15, 5 }
  0x2e   : > { %1050 = vrot.lane.b32.xlu0 %v8203_v54, %s8023_s21  ;;  %v7119_v25 = vld [vmem:[%s8134_s10 + $0x1c] sm:$0x1]  ;;  %v7096_v28 = vld [vmem:[%s8134_s10 + $0x4c] sm:$0x1]  ;;  %v2376_v29 = vrot.slane %v7095_v17, 6  ;;  %v2126_v31 = vsel %vm200_vm2, %v2125_v16, %v2124_v19  ;;  %v2375_v32 = vsel %vm197_vm1, %v2374_v18, %v7093_v21  ;;  %v2712_v33 = vrot.slane %v7108_v22, 6 }
  0x2f   : > { %v7109_v30 = vld [vmem:[%s8134_s10 + $0x4b] sm:$0x1]  ;;  %v7120_v34 = vld [vmem:[%s8134_s10 + $0x34] sm:$0x1]  ;;  %v8255_v35 = vld [vmem:[%s8134_s10 + $0x4c] sm:$0x1]  ;;  %v2711_v36 = vsel %vm197_vm1, %v2710_v23, %v7106_v24  ;;  %v8262_v42 = vsel %vm203_vm3, %v2127_v27, %v2126_v31 }
  0x30   : > { %1203 = vrot.lane.b32.xlu1 %v8203_v54, %s8024_s28  ;;  %v2956_v37 = vrot.slane %v7119_v25, 7  ;;  %v2378_v39 = vrot.slane %v7096_v28, 5  ;;  %v2714_v40 = vrot.slane %v7109_v30, 5  ;;  %v7118_v41 = vld [vmem:[%s8134_s10 + $0x4] sm:$0x1]  ;;  %v2377_v43 = vsel %vm200_vm2, %v2376_v29, %v2375_v32 }
  0x31   : > { %v2958_v45 = vrot.slane %v7120_v34, 6  ;;  %v2960_v46 = vrot.slane %v8255_v35, 5  ;;  %v7133_v47 = vld [vmem:[%s8134_s10 + $0x1d] sm:$0x1]  ;;  %v8268_v48 = vld [vmem:[%s8134_s10 + $0x35] sm:$0x1]  ;;  %v2713_v49 = vsel %vm200_vm2, %v2712_v33, %v2711_v36 }
  0x32   : > { %1373 = vrot.lane.b32.xlu0 %v8216_v1, %s8023_s21  ;;  %v7196_v50 = vld [vmem:[%s8134_s10 + $0x6] sm:$0x1]  ;;  %v7197_v51 = vld [vmem:[%s8134_s10 + $0x1e] sm:$0x1]  ;;  %v7198_v52 = vld [vmem:[%s8134_s10 + $0x36] sm:$0x1]  ;;  %v2957_v53 = vsel %vm197_vm1, %v2956_v37, %v7118_v41  ;;  %v8286_v61 = vsel %vm203_vm3, %v2378_v39, %v2377_v43  ;;  %v8291_v4 = vsel %vm203_vm3, %v2714_v40, %v2713_v49 }
  0x33   : > { %v7132_v55 = vld [vmem:[%s8134_s10 + $0x5] sm:$0x1]  ;;  %v8279_v56 = vld [vmem:[%s8134_s10 + $0x4d] sm:$0x1]  ;;  %v7199_v57 = vld [vmem:[%s8134_s10 + $0x4e] sm:$0x1]  ;;  %v2959_v11 = vsel %vm200_vm2, %v2958_v45, %v2957_v53 }
  0x34   : > { %1452 = vrot.lane.b32.xlu1 %v8216_v1, %s8024_s28  ;;  %v4622_v58 = vrot.slane %v7197_v51, 7  ;;  %v4624_v59 = vrot.slane %v7198_v52, 6  ;;  %v7210_v60 = vld [vmem:[%s8134_s10 + $0x7] sm:$0x1]  ;;  %v3207_v62 = vrot.slane %v7133_v47, 7  ;;  %v4626_v63 = vrot.slane %v7199_v57, 5 }
  0x35   : > { %v7211_v2 = vld [vmem:[%s8134_s10 + $0x1f] sm:$0x1]  ;;  %v7212_v3 = vld [vmem:[%s8134_s10 + $0x37] sm:$0x1]  ;;  %v8294_v5 = vld [vmem:[%s8134_s10 + $0x1c] sm:$0x1]  ;;  %v8335_v43 = vsel %vm203_vm3, %v2960_v46, %v2959_v11 }
  0x36   : > { %1624 = vrot.lane.b32.xlu0 %v8230_v12, %s8023_s21  ;;  %v4623_v6 = vsel %vm197_vm1, %v4622_v58, %v7196_v50  ;;  %v7213_v7 = vld [vmem:[%s8134_s10 + $0x4f] sm:$0x1]  ;;  %v4873_v8 = vrot.slane %v7211_v2, 7  ;;  %v4875_v9 = vrot.slane %v7212_v3, 6  ;;  %v7223_v10 = vld [vmem:[%s8134_s10 + $0x6] sm:$0x1]  ;;  %v3208_v27 = vsel %vm197_vm1, %v3207_v62, %v7132_v55 }
  0x37   : > { %v3209_v13 = vrot.slane %v8268_v48, 6  ;;  %v4625_v14 = vsel %vm200_vm2, %v4624_v59, %v4623_v6  ;;  %v4877_v15 = vrot.slane %v7213_v7, 5  ;;  %v7224_v16 = vld [vmem:[%s8134_s10 + $0x1e] sm:$0x1]  ;;  %v7225_v17 = vld [vmem:[%s8134_s10 + $0x36] sm:$0x1] }
  0x38   : > { %1703 = vrot.lane.b32.xlu1 %v8230_v12, %s8024_s28  ;;  %v8307_v18 = vld [vmem:[%s8134_s10 + $0x34] sm:$0x1]  ;;  %v8310_v19 = vsel %vm203_vm3, %v4626_v63, %v4625_v14  ;;  %v4874_v21 = vsel %vm197_vm1, %v4873_v8, %v7210_v60  ;;  %v7226_v22 = vld [vmem:[%s8134_s10 + $0x4e] sm:$0x1]  ;;  %v5209_v23 = vrot.slane %v7224_v16, 7  ;;  %v5211_v24 = vrot.slane %v7225_v17, 6 }
  0x39   : > { %v7235_v25 = vld [vmem:[%s8134_s10 + $0x7] sm:$0x1]  ;;  %v3211_v28 = vrot.slane %v8279_v56, 5  ;;  %v4876_v29 = vsel %vm200_vm2, %v4875_v9, %v4874_v21  ;;  %v5213_v30 = vrot.slane %v7226_v22, 5  ;;  %v7236_v31 = vld [vmem:[%s8134_s10 + $0x1f] sm:$0x1]  ;;  %v3210_v58 = vsel %vm200_vm2, %v3209_v13, %v3208_v27 }
  0x3a   : > { %1883 = vrot.lane.b32.xlu0 %v8245_v26, %s8023_s21  ;;  %v7237_v32 = vld [vmem:[%s8134_s10 + $0x37] sm:$0x1]  ;;  %v7145_v33 = vld [vmem:[%s8134_s10 + $0x4] sm:$0x1]  ;;  %v8324_v34 = vld [vmem:[%s8134_s10 + $0x1d] sm:$0x1]  ;;  %v8327_v35 = vsel %vm203_vm3, %v4877_v15, %v4876_v29  ;;  %v5210_v36 = vsel %vm197_vm1, %v5209_v23, %v7223_v10 }
  0x3b   : > { %v7238_v37 = vld [vmem:[%s8134_s10 + $0x4f] sm:$0x1]  ;;  %v5455_v39 = vrot.slane %v7236_v31, 7  ;;  %v5457_v40 = vrot.slane %v7237_v32, 6  ;;  %v7249_v41 = vld [vmem:[%s8134_s10 + $0x8] sm:$0x1]  ;;  %v5212_v47 = vsel %vm200_vm2, %v5211_v24, %v5210_v36 }
  0x3c   : > { %2036 = vrot.lane.b32.xlu1 %v8245_v26, %s8024_s28  ;;  %v3543_v45 = vrot.slane %v8294_v5, 7  ;;  %v5459_v48 = vrot.slane %v7238_v37, 5  ;;  %v7250_v49 = vld [vmem:[%s8134_s10 + $0x20] sm:$0x1]  ;;  %v7251_v50 = vld [vmem:[%s8134_s10 + $0x38] sm:$0x1]  ;;  %v8345_v52 = vsel %vm203_vm3, %v5213_v30, %v5212_v47  ;;  %v8382_v30 = vsel %vm203_vm3, %v3211_v28, %v3210_v58 }
  0x3d   : > { %v8342_v51 = vld [vmem:[%s8134_s10 + $0x4c] sm:$0x1]  ;;  %v5456_v53 = vsel %vm197_vm1, %v5455_v39, %v7235_v25  ;;  %v7252_v46 = vld [vmem:[%s8134_s10 + $0x50] sm:$0x1]  ;;  %v5706_v55 = vrot.slane %v7250_v49, 7  ;;  %v5708_v56 = vrot.slane %v7251_v50, 6 }
  0x3e   : > { %2206 = vrot.lane.b32.xlu0 %v8262_v42, %s8023_s21  ;;  %v7262_v57 = vld [vmem:[%s8134_s10 + $0x7] sm:$0x1]  ;;  %v3545_v59 = vrot.slane %v8307_v18, 6  ;;  %v5458_v60 = vsel %vm200_vm2, %v5457_v40, %v5456_v53  ;;  %v5710_v62 = vrot.slane %v7252_v46, 5  ;;  %v7263_v63 = vld [vmem:[%s8134_s10 + $0x1f] sm:$0x1]  ;;  %v3544_v11 = vsel %vm197_vm1, %v3543_v45, %v7145_v33 }
  0x3f   : > { %v7264_v2 = vld [vmem:[%s8134_s10 + $0x37] sm:$0x1]  ;;  %v7159_v3 = vld [vmem:[%s8134_s10 + $0x35] sm:$0x1]  ;;  %v8359_v5 = vsel %vm203_vm3, %v5459_v48, %v5458_v60  ;;  %v5707_v6 = vsel %vm197_vm1, %v5706_v55, %v7249_v41  ;;  %v7265_v7 = vld [vmem:[%s8134_s10 + $0x4f] sm:$0x1] }
  0x40   : > { %2285 = vrot.lane.b32.xlu1 %v8262_v42, %s8024_s28  ;;  %v6042_v8 = vrot.slane %v7263_v63, 7  ;;  %v6044_v9 = vrot.slane %v7264_v2, 6  ;;  %v7274_v10 = vld [vmem:[%s8134_s10 + $0x8] sm:$0x1]  ;;  %v7157_v13 = vld [vmem:[%s8134_s10 + $0x5] sm:$0x1]  ;;  %v5709_v16 = vsel %vm200_vm2, %v5708_v56, %v5707_v6  ;;  %v3546_v28 = vsel %vm200_vm2, %v3545_v59, %v3544_v11 }
  0x41   : > { %v3789_v14 = vrot.slane %v8324_v34, 7  ;;  %v7172_v15 = vld [vmem:[%s8134_s10 + $0x1e] sm:$0x1]  ;;  %v6046_v17 = vrot.slane %v7265_v7, 5  ;;  %v7275_v18 = vld [vmem:[%s8134_s10 + $0x20] sm:$0x1]  ;;  %v8374_v22 = vsel %vm203_vm3, %v5710_v62, %v5709_v16 }
  0x42   : > { %2457 = vrot.lane.b32.xlu0 %v8286_v61, %s8023_s21  ;;  %v7276_v21 = vld [vmem:[%s8134_s10 + $0x38] sm:$0x1]  ;;  %v6043_v23 = vsel %vm197_vm1, %v6042_v8, %v7262_v57  ;;  %v7277_v24 = vld [vmem:[%s8134_s10 + $0x50] sm:$0x1]  ;;  %v6288_v25 = vrot.slane %v7275_v18, 7  ;;  %v3547_v31 = vrot.slane %v8342_v51, 5 }
  0x43   : > { %v6290_v27 = vrot.slane %v7276_v21, 6  ;;  %v7288_v29 = vld [vmem:[%s8134_s10 + $0x9] sm:$0x1]  ;;  %v6045_v32 = vsel %vm200_vm2, %v6044_v9, %v6043_v23  ;;  %v6292_v33 = vrot.slane %v7277_v24, 5  ;;  %v7289_v34 = vld [vmem:[%s8134_s10 + $0x21] sm:$0x1]  ;;  %v3790_v51 = vsel %vm197_vm1, %v3789_v14, %v7157_v13 }
  0x44   : > { %2536 = vrot.lane.b32.xlu1 %v8286_v61, %s8024_s28  ;;  %v7290_v36 = vld [vmem:[%s8134_s10 + $0x39] sm:$0x1]  ;;  %v8389_v37 = vsel %vm203_vm3, %v6046_v17, %v6045_v32  ;;  %v6289_v39 = vsel %vm197_vm1, %v6288_v25, %v7274_v10  ;;  %v7291_v40 = vld [vmem:[%s8134_s10 + $0x51] sm:$0x1]  ;;  %v6539_v41 = vrot.slane %v7289_v34, 7  ;;  %v3791_v48 = vrot.slane %v7159_v3, 6 }
  0x45   : > { %v6541_v45 = vrot.slane %v7290_v36, 6  ;;  %v7160_v47 = vld [vmem:[%s8134_s10 + $0x4d] sm:$0x1]  ;;  %v6291_v49 = vsel %vm200_vm2, %v6290_v27, %v6289_v39  ;;  %v6543_v50 = vrot.slane %v7291_v40, 5  ;;  %v7173_v53 = vld [vmem:[%s8134_s10 + $0x36] sm:$0x1]  ;;  %v8410_v60 = vsel %vm203_vm3, %v3547_v31, %v3546_v28 }
  0x46   : > { %2716 = vrot.lane.b32.xlu0 %v8291_v4, %s8023_s21  ;;  %v4040_v46 = vrot.slane %v7172_v15, 7  ;;  %v8401_v55 = vsel %vm203_vm3, %v6292_v33, %v6291_v49  ;;  %v6540_v56 = vsel %vm197_vm1, %v6539_v41, %v7288_v29  ;;  %v7171_v57 = vld [vmem:[%s8134_s10 + $0x6] sm:$0x1]  ;;  %v7185_v58 = vld [vmem:[%s8134_s10 + $0x1d] sm:$0x1]  ;;  %v3793_v62 = vrot.slane %v7160_v47, 5 }
  0x47   : > { %v6542_v59 = vsel %vm200_vm2, %v6541_v45, %v6540_v56  ;;  %v3792_v2 = vsel %vm200_vm2, %v3791_v48, %v3790_v51  ;;  %v7174_v3 = vld [vmem:[%s8134_s10 + $0x4e] sm:$0x1]  ;;  %v4042_v6 = vrot.slane %v7173_v53, 6  ;;  %v7186_v8 = vld [vmem:[%s8134_s10 + $0x35] sm:$0x1]  ;;  %v4376_v9 = vrot.slane %v7185_v58, 7 }
  0x48   : > { %2869 = vrot.lane.b32.xlu1 %v8291_v4, %s8024_s28  ;;  %v8413_v63 = vsel %vm203_vm3, %v6543_v50, %v6542_v59  ;;  %v4041_v7 = vsel %vm197_vm1, %v4040_v46, %v7171_v57  ;;  %v7184_v10 = vld [vmem:[%s8134_s10 + $0x5] sm:$0x1]  ;;  %v8425_v11 = vsel %vm203_vm3, %v3793_v62, %v3792_v2  ;;  %v4044_v13 = vrot.slane %v7174_v3, 5  ;;  %v7187_v15 = vld [vmem:[%s8134_s10 + $0x4d] sm:$0x1]  ;;  %v8500_v33 = vld [vmem:[%s9248_s1 + $0x10] sm:$0xff] }
  0x49   : > { %v4043_v14 = vsel %vm200_vm2, %v4042_v6, %v4041_v7  ;;  %v4378_v16 = vrot.slane %v7186_v8, 6  ;;  %v4377_v17 = vsel %vm197_vm1, %v4376_v9, %v7184_v10  ;;  %v4380_v21 = vrot.slane %v7187_v15, 5  ;;  %v947_v27 = vld [vmem:[%s9249_s2] sm:$0xff]  ;;  %v8489_v29 = vld [vmem:[%s9248_s1 + $0x8] sm:$0xff]  ;;  %v8530_v28 = vld [vmem:[%s9248_s1 + $0x38] sm:$0xff]  ;;  %s6989_s10 = sshll.u32 %s175_s9, 6 }
  0x4a   : > { %3039 = vrot.lane.b32.xlu0 %v8335_v43, %s8023_s21  ;;  %v8435_v18 = vsel %vm203_vm3, %v4044_v13, %v4043_v14  ;;  %v8025_v25 = vmov 0   ;;  %v8509_v39 = vld [vmem:[%s9248_s1 + $0x28] sm:$0xff]  ;;  %v8517_v40 = vld [vmem:[%s9248_s1 + $0x20] sm:$0xff]  ;;  %v8539_v47 = vld [vmem:[%s9248_s1 + $0x30] sm:$0xff]  ;;  %s8989_s11 = scalar_lea.vmem [#allocation2], %s6989_s10 }
  0x4b   : > { %v4379_v23 = vsel %vm200_vm2, %v4378_v16, %v4377_v17  ;;  %7891 = vset.pattern.permute.xlu0 %v8025_v25  ;;  %7892 = vset.pattern.permute.xlu1 %v8025_v25  ;;  %v8812_v15 = vld [vmem:[%s9248_s1] sm:$0xff] }
  0x4c   : > { %3118 = vrot.lane.b32.xlu1 %v8335_v43, %s8024_s28  ;;  %v8443_v24 = vsel %vm203_vm3, %v4380_v21, %v4379_v23 }
  0x4e   : > { %3290 = vrot.lane.b32.xlu0 %v8382_v30, %s8023_s21 }
  0x50   : > { %3369 = vrot.lane.b32.xlu1 %v8382_v30, %s8024_s28 }
  0x52   : > { %3549 = vrot.lane.b32.xlu0 %v8410_v60, %s8023_s21 }
  0x54   : > { %3702 = vrot.lane.b32.xlu1 %v8410_v60, %s8024_s28 }
  0x56   : > { %3872 = vrot.lane.b32.xlu0 %v8425_v11, %s8023_s21 }
  0x58   : > { %3951 = vrot.lane.b32.xlu1 %v8425_v11, %s8024_s28 }
  0x5a   : > { %4123 = vrot.lane.b32.xlu0 %v8435_v18, %s8023_s21 }
  0x5c   : > { %4202 = vrot.lane.b32.xlu1 %v8435_v18, %s8024_s28 }
  0x5e   : > { %4382 = vrot.lane.b32.xlu0 %v8443_v24, %s8023_s21 }
  0x60   : > { %4535 = vrot.lane.b32.xlu1 %v8443_v24, %s8024_s28 }
  0x62   : > { %4705 = vrot.lane.b32.xlu0 %v8310_v19, %s8023_s21 }
  0x64   : > { %4784 = vrot.lane.b32.xlu1 %v8310_v19, %s8024_s28 }
  0x66   : > { %4956 = vrot.lane.b32.xlu0 %v8327_v35, %s8023_s21 }
  0x68   : > { %5035 = vrot.lane.b32.xlu1 %v8327_v35, %s8024_s28 }
  0x6a   : > { %5215 = vrot.lane.b32.xlu0 %v8345_v52, %s8023_s21 }
  0x6c   : > { %5368 = vrot.lane.b32.xlu1 %v8345_v52, %s8024_s28 }
  0x6e   : > { %5538 = vrot.lane.b32.xlu0 %v8359_v5, %s8023_s21 }
  0x70   : > { %5617 = vrot.lane.b32.xlu1 %v8359_v5, %s8024_s28 }
  0x72   : > { %5789 = vrot.lane.b32.xlu0 %v8374_v22, %s8023_s21 }
  0x74   : > { %5868 = vrot.lane.b32.xlu1 %v8374_v22, %s8024_s28 }
  0x76   : > { %6048 = vrot.lane.b32.xlu0 %v8389_v37, %s8023_s21 }
  0x78   : > { %6201 = vrot.lane.b32.xlu1 %v8389_v37, %s8024_s28 }
  0x7a   : > { %6371 = vrot.lane.b32.xlu0 %v8401_v55, %s8023_s21 }
  0x7c   : > { %6450 = vrot.lane.b32.xlu1 %v8401_v55, %s8024_s28 }
  0x7e   : > { %6622 = vrot.lane.b32.xlu0 %v8413_v63, %s8023_s21  ;;  %s6877_s21 = sadd.s32 %s8003_s15, %s7302_s20  ;;  %s6880_s15 = sshll.u32 %s8989_s11, 4  ;;  %s9184_s15 = int_to_ptr.vmem [resolvable:$true] %s6880_s15 }
  0x7f   : > { %s7303_s24 = sshll.u32 %s6877_s21, 7  ;;  %s7927_s4 = scalar_lea.vmem %s9184_s15, 1024 }
  0x80   : > { %6701 = vrot.lane.b32.xlu1 %v8413_v63, %s8024_s28  ;;  %s9182_s28 = scalar_lea.hbm %s9250_s3, %s7303_s24  ;;  %p7928_p13 = scmp.ne.s32.totalorder %s9184_s15, %s7927_s4 }
  0x81   : > { %p7934_p2 = scmp.lt.s32.totalorder %s9184_s15, %s7932_s6  ;;  %p7935_p4 = scmp.lt.s32.totalorder %s7933_s7, %s7927_s4 }
  0x82   : > { %950 = vperm.xlu0 %7891, %v947_v27   ;;  %p7929_p0 = pnand %p7928_p13, %p8102_p3 }
  0x83   : > { %p7936_p5 = por %p7935_p4, %p7934_p2 }
  0x84   : > { %1784 = vperm.xlu1 %7892, %v947_v27   ;;  %p7930_p1 = pneg %p7929_p0 }
  0x86   : > { %3450 = vperm.xlu0 %7891, %v947_v27   ;;  %p7937_p6 = pnand %p7936_p5, %p7930_p1 }
  0x88   : > { %2617 = vperm.xlu1 %7892, %v947_v27  }
  0x8a   : > { %5116 = vperm.xlu0 %7891, %v947_v27  }
  0x8c   : > { %4283 = vperm.xlu1 %7892, %v947_v27  }
  0x8e   : > { %6782 = vperm.xlu0 %7891, %v947_v27  }
  0x90   : > { %5949 = vperm.xlu1 %7892, %v947_v27  }
  0x94   : > { %v206_v31 = vpop.permute.xlu0 %205 }
  0x95   : > { %7451 = vmatpush3.msk.msra.mxu0 %vm211_vm4, %v206_v31 }
  0x96   : > { %7453 = vmatmul.mubr.msk.f32.vlgmr.msra.gmra.mxu0 %vm207_vm5, %v8489_v29  ;;  %7460 = vmatprep.subr.mxu0 %v8021_v0  ;;  %v536_v32 = vpop.permute.xlu1 %535 }
  0x97   : > { %7462 = vmatprep.mubr.msk.f32.mxu0 %vm8022_vm0, %v8021_v0 }
  0x98   : > { %v362_v34 = vpop.permute.xlu0 %361 }
  0x99   : > { %7461 = vmatpush3.msk.msra.mxu0 %vm211_vm4, %v362_v34 }
  0x9a   : > { %7463 = vmatmul.mubr.msk.f32.vlgmr.msra.gmra.mxu0 %vm207_vm5, %v8500_v33  ;;  %7470 = vmatprep.subr.mxu0 %v8021_v0  ;;  %v616_v36 = vpop.permute.xlu1 %615 }
  0x9b   : > { %7471 = vmatpush3.msk.msra.mxu0 %vm211_vm4, %v536_v32  ;;  %7472 = vmatprep.mubr.msk.f32.mxu0 %vm8022_vm0, %v8021_v0 }
  0x9c   : > { %7476 = vmatpush3.msk.msra.mxu1 %vm211_vm4, %v616_v36  ;;  %7480 = vmatprep.subr.mxu0 %v8021_v0  ;;  %v790_v41 = vpop.permute.xlu0 %789 }
  0x9d   : > { %7478 = vmatmul.mubr.msk.f32.vlgmr.msra.gmra.mxu1 %vm207_vm5, %v8509_v39  ;;  %7485 = vmatprep.subr.mxu1 %v8021_v0 }
  0x9e   : > { %7473 = vmatmul.mubr.msk.f32.vlgmr.msra.gmra.mxu0 %vm207_vm5, %v8517_v40  ;;  %7486 = vmatpush3.msk.msra.mxu1 %vm211_vm4, %v790_v41  ;;  %v870_v45 = vpop.permute.xlu1 %869 }
  0x9f   : > { %7481 = vmatpush3.msk.msra.mxu0 %vm211_vm4, %v8187_v44  ;;  %7482 = vmatprep.mubr.msk.f32.mxu0 %vm8022_vm0, %v8021_v0  ;;  %v8556_v44 = vld [vmem:[%s9248_s1 + $0x40] sm:$0xff] }
  0xa0   : > { %7487 = vmatprep.mubr.msk.f32.mxu1 %vm8022_vm0, %v8021_v0  ;;  %7490 = vmatprep.subr.mxu0 %v8021_v0  ;;  %v1051_v48 = vpop.permute.xlu0 %1050 }
  0xa1   : > { %7488 = vmatmul.mubr.msk.f32.vlgmr.msra.gmra.mxu1 %vm207_vm5, %v8530_v28  ;;  %7495 = vmatprep.subr.mxu1 %v8021_v0 }
  0xa2   : > { %7483 = vmatmul.mubr.msk.f32.vlgmr.msra.gmra.mxu0 %vm207_vm5, %v8539_v47  ;;  %7496 = vmatpush3.msk.msra.mxu1 %vm211_vm4, %v1051_v48  ;;  %v1204_v49 = vpop.permute.xlu1 %1203 }
  0xa3   : > { %7491 = vmatpush3.msk.msra.mxu0 %vm211_vm4, %v870_v45  ;;  %7492 = vmatprep.mubr.msk.f32.mxu0 %vm8022_vm0, %v8021_v0 }
  0xa4   : > { %7497 = vmatprep.mubr.msk.f32.mxu1 %vm8022_vm0, %v8021_v0  ;;  %7500 = vmatprep.subr.mxu0 %v8021_v0  ;;  %v1374_v50 = vpop.permute.xlu0 %1373 }
  0xa5   : > { %7498 = vmatmul.mubr.msk.f32.vlgmr.msra.gmra.mxu1 %vm207_vm5, %v8489_v29  ;;  %7505 = vmatprep.subr.mxu1 %v8021_v0 }
  0xa6   : > { %7493 = vmatmul.mubr.msk.f32.vlgmr.msra.gmra.mxu0 %vm207_vm5, %v8556_v44  ;;  %7506 = vmatpush3.msk.msra.mxu1 %vm211_vm4, %v1204_v49  ;;  %v1453_v51 = vpop.permute.xlu1 %1452 }
  0xa7   : > { %7501 = vmatpush3.msk.msra.mxu0 %vm211_vm4, %v8203_v54  ;;  %7502 = vmatprep.mubr.msk.f32.mxu0 %vm8022_vm0, %v8021_v0 }
  0xa8   : > { %7507 = vmatprep.mubr.msk.f32.mxu1 %vm8022_vm0, %v8021_v0  ;;  %7510 = vmatprep.subr.mxu0 %v8021_v0  ;;  %v1625_v54 = vpop.permute.xlu0 %1624 }
  0xa9   : > { %7508 = vmatmul.mubr.msk.f32.vlgmr.msra.gmra.mxu1 %vm207_vm5, %v8500_v33  ;;  %7515 = vmatprep.subr.mxu1 %v8021_v0 }
  0xaa   : > { %7503 = vmatmul.mubr.msk.f32.vlgmr.msra.gmra.mxu0 %vm207_vm5, %v8152_v20  ;;  %7516 = vmatpush3.msk.msra.mxu1 %vm211_vm4, %v1374_v50 }
  0xab   : > { %7511 = vmatpush3.msk.msra.mxu0 %vm211_vm4, %v8216_v1  ;;  %7512 = vmatprep.mubr.msk.f32.mxu0 %vm8022_vm0, %v8021_v0  ;;  %v1704_v1 = vpop.permute.xlu1 %1703 }
  0xac   : > { %7517 = vmatprep.mubr.msk.f32.mxu1 %vm8022_vm0, %v8021_v0  ;;  %7520 = vmatprep.subr.mxu0 %v8021_v0 }
  0xad   : > { %7518 = vmatmul.mubr.msk.f32.vlgmr.msra.gmra.mxu1 %vm207_vm5, %v8517_v40  ;;  %7525 = vmatprep.subr.mxu1 %v8021_v0 }
  0xae   : > { %7513 = vmatmul.mubr.msk.f32.vlgmr.msra.gmra.mxu0 %vm207_vm5, %v8176_v38  ;;  %7526 = vmatpush3.msk.msra.mxu1 %vm211_vm4, %v8230_v12  ;;  %v1884_v12 = vpop.permute.xlu0 %1883 }
  0xaf   : > { %7521 = vmatpush3.msk.msra.mxu0 %vm211_vm4, %v1453_v51  ;;  %7522 = vmatprep.mubr.msk.f32.mxu0 %vm8022_vm0, %v8021_v0  ;;  %v2037_v53 = vpop.permute.xlu1 %2036 }
  0xb0   : > { %7527 = vmatprep.mubr.msk.f32.mxu1 %vm8022_vm0, %v8021_v0  ;;  %7530 = vmatprep.subr.mxu0 %v8021_v0 }
  0xb1   : > { %7528 = vmatmul.mubr.msk.f32.vlgmr.msra.gmra.mxu1 %vm207_vm5, %v8539_v47  ;;  %7535 = vmatprep.subr.mxu1 %v8021_v0 }
  0xb2   : > { %7523 = vmatmul.mubr.msk.f32.vlgmr.msra.gmra.mxu0 %vm207_vm5, %v8509_v39  ;;  %7536 = vmatpush3.msk.msra.mxu1 %vm211_vm4, %v1704_v1  ;;  %v2207_v46 = vpop.permute.xlu0 %2206 }
  0xb3   : > { %7531 = vmatpush3.msk.msra.mxu0 %vm211_vm4, %v1625_v54  ;;  %7532 = vmatprep.mubr.msk.f32.mxu0 %vm8022_vm0, %v8021_v0 }
  0xb4   : > { %7537 = vmatprep.mubr.msk.f32.mxu1 %vm8022_vm0, %v8021_v0  ;;  %7540 = vmatprep.subr.mxu0 %v8021_v0 }
  0xb5   : > { %7538 = vmatmul.mubr.msk.f32.vlgmr.msra.gmra.mxu1 %vm207_vm5, %v8556_v44  ;;  %7545 = vmatprep.subr.mxu1 %v8021_v0 }
  0xb6   : > { %7533 = vmatmul.mubr.msk.f32.vlgmr.msra.gmra.mxu0 %vm207_vm5, %v8530_v28  ;;  %7546 = vmatpush3.msk.msra.mxu1 %vm211_vm4, %v8245_v26  ;;  %v2286_v26 = vpop.permute.xlu1 %2285  ;;  %v2458_v56 = vpop.permute.xlu0 %2457 }
  0xb7   : > { %7541 = vmatpush3.msk.msra.mxu0 %vm211_vm4, %v1884_v12  ;;  %7542 = vmatprep.mubr.msk.f32.mxu0 %vm8022_vm0, %v8021_v0 }
  0xb8   : > { %7547 = vmatprep.mubr.msk.f32.mxu1 %vm8022_vm0, %v8021_v0  ;;  %7550 = vmatprep.subr.mxu0 %v8021_v0 }
  0xb9   : > { %7548 = vmatmul.mubr.msk.f32.vlgmr.msra.gmra.mxu1 %vm207_vm5, %v8152_v20  ;;  %7555 = vmatprep.subr.mxu1 %v8021_v0 }
  0xba   : > { %7543 = vmatmul.mubr.msk.f32.vlgmr.msra.gmra.mxu0 %vm207_vm5, %v8489_v29  ;;  %7556 = vmatpush3.msk.msra.mxu1 %vm211_vm4, %v8262_v42  ;;  %v2537_v42 = vpop.permute.xlu1 %2536  ;;  %v2717_v57 = vpop.permute.xlu0 %2716 }
  0xbb   : > { %7551 = vmatpush3.msk.msra.mxu0 %vm211_vm4, %v2037_v53  ;;  %7552 = vmatprep.mubr.msk.f32.mxu0 %vm8022_vm0, %v8021_v0 }
  0xbc   : > { %7557 = vmatprep.mubr.msk.f32.mxu1 %vm8022_vm0, %v8021_v0  ;;  %7560 = vmatprep.subr.mxu0 %v8021_v0 }
  0xbd   : > { %7558 = vmatmul.mubr.msk.f32.vlgmr.msra.gmra.mxu1 %vm207_vm5, %v8176_v38  ;;  %7565 = vmatprep.subr.mxu1 %v8021_v0 }
  0xbe   : > { %7553 = vmatmul.mubr.msk.f32.vlgmr.msra.gmra.mxu0 %vm207_vm5, %v8500_v33  ;;  %7566 = vmatpush3.msk.msra.mxu1 %vm211_vm4, %v2286_v26  ;;  %v3040_v58 = vpop.permute.xlu0 %3039 }
  0xbf   : > { %7561 = vmatpush3.msk.msra.mxu0 %vm211_vm4, %v2207_v46  ;;  %7562 = vmatprep.mubr.msk.f32.mxu0 %vm8022_vm0, %v8021_v0 }
  0xc0   : > { %7567 = vmatprep.mubr.msk.f32.mxu1 %vm8022_vm0, %v8021_v0  ;;  %7570 = vmatprep.subr.mxu0 %v8021_v0 }
  0xc1   : > { %7568 = vmatmul.mubr.msk.f32.vlgmr.msra.gmra.mxu1 %vm207_vm5, %v8509_v39  ;;  %7575 = vmatprep.subr.mxu1 %v8021_v0 }
  0xc2   : > { %7563 = vmatmul.mubr.msk.f32.vlgmr.msra.gmra.mxu0 %vm207_vm5, %v8517_v40  ;;  %7576 = vmatpush3.msk.msra.mxu1 %vm211_vm4, %v2458_v56 }
  0xc3   : > { %7571 = vmatpush3.msk.msra.mxu0 %vm211_vm4, %v8286_v61  ;;  %7572 = vmatprep.mubr.msk.f32.mxu0 %vm8022_vm0, %v8021_v0  ;;  %v2870_v61 = vpop.permute.xlu1 %2869 }
  0xc4   : > { %7577 = vmatprep.mubr.msk.f32.mxu1 %vm8022_vm0, %v8021_v0  ;;  %7580 = vmatprep.subr.mxu0 %v8021_v0 }
  0xc5   : > { %7578 = vmatmul.mubr.msk.f32.vlgmr.msra.gmra.mxu1 %vm207_vm5, %v8530_v28  ;;  %7585 = vmatprep.subr.mxu1 %v8021_v0 }
  0xc6   : > { %7573 = vmatmul.mubr.msk.f32.vlgmr.msra.gmra.mxu0 %vm207_vm5, %v8539_v47  ;;  %7586 = vmatpush3.msk.msra.mxu1 %vm211_vm4, %v2717_v57 }
  0xc7   : > { %7581 = vmatpush3.msk.msra.mxu0 %vm211_vm4, %v2537_v42  ;;  %7582 = vmatprep.mubr.msk.f32.mxu0 %vm8022_vm0, %v8021_v0  ;;  %v3119_v59 = vpop.permute.xlu1 %3118 }
  0xc8   : > { %7587 = vmatprep.mubr.msk.f32.mxu1 %vm8022_vm0, %v8021_v0  ;;  %7590 = vmatprep.subr.mxu0 %v8021_v0 }
  0xc9   : > { %7588 = vmatmul.mubr.msk.f32.vlgmr.msra.gmra.mxu1 %vm207_vm5, %v8489_v29  ;;  %7595 = vmatprep.subr.mxu1 %v8021_v0 }
  0xca   : > { %7583 = vmatmul.mubr.msk.f32.vlgmr.msra.gmra.mxu0 %vm207_vm5, %v8556_v44  ;;  %7596 = vmatpush3.msk.msra.mxu1 %vm211_vm4, %v2870_v61 }
  0xcb   : > { %7591 = vmatpush3.msk.msra.mxu0 %vm211_vm4, %v8291_v4  ;;  %7592 = vmatprep.mubr.msk.f32.mxu0 %vm8022_vm0, %v8021_v0  ;;  %v3291_v4 = vpop.permute.xlu0 %3290 }
  0xcc   : > { %7597 = vmatprep.mubr.msk.f32.mxu1 %vm8022_vm0, %v8021_v0  ;;  %7600 = vmatprep.subr.mxu0 %v8021_v0 }
  0xcd   : > { %7598 = vmatmul.mubr.msk.f32.vlgmr.msra.gmra.mxu1 %vm207_vm5, %v8500_v33  ;;  %7605 = vmatprep.subr.mxu1 %v8021_v0 }
  0xce   : > { %7593 = vmatmul.mubr.msk.f32.vlgmr.msra.gmra.mxu0 %vm207_vm5, %v8152_v20  ;;  %7606 = vmatpush3.msk.msra.mxu1 %vm211_vm4, %v3040_v58 }
  0xcf   : > { %7601 = vmatpush3.msk.msra.mxu0 %vm211_vm4, %v8335_v43  ;;  %7602 = vmatprep.mubr.msk.f32.mxu0 %vm8022_vm0, %v8021_v0  ;;  %v3370_v43 = vpop.permute.xlu1 %3369 }
  0xd0   : > { %7607 = vmatprep.mubr.msk.f32.mxu1 %vm8022_vm0, %v8021_v0  ;;  %7610 = vmatprep.subr.mxu0 %v8021_v0 }
  0xd1   : > { %7608 = vmatmul.mubr.msk.f32.vlgmr.msra.gmra.mxu1 %vm207_vm5, %v8517_v40  ;;  %7615 = vmatprep.subr.mxu1 %v8021_v0 }
  0xd2   : > { %7603 = vmatmul.mubr.msk.f32.vlgmr.msra.gmra.mxu0 %vm207_vm5, %v8176_v38  ;;  %7616 = vmatpush3.msk.msra.mxu1 %vm211_vm4, %v8382_v30  ;;  %v3550_v30 = vpop.permute.xlu0 %3549 }
  0xd3   : > { %7611 = vmatpush3.msk.msra.mxu0 %vm211_vm4, %v3119_v59  ;;  %7612 = vmatprep.mubr.msk.f32.mxu0 %vm8022_vm0, %v8021_v0  ;;  %v3703_v62 = vpop.permute.xlu1 %3702 }
  0xd4   : > { %7617 = vmatprep.mubr.msk.f32.mxu1 %vm8022_vm0, %v8021_v0  ;;  %7620 = vmatprep.subr.mxu0 %v8021_v0 }
  0xd5   : > { %7618 = vmatmul.mubr.msk.f32.vlgmr.msra.gmra.mxu1 %vm207_vm5, %v8539_v47  ;;  %7625 = vmatprep.subr.mxu1 %v8021_v0 }
  0xd6   : > { %7613 = vmatmul.mubr.msk.f32.vlgmr.msra.gmra.mxu0 %vm207_vm5, %v8509_v39  ;;  %7626 = vmatpush3.msk.msra.mxu1 %vm211_vm4, %v3370_v43  ;;  %v3873_v2 = vpop.permute.xlu0 %3872 }
  0xd7   : > { %7621 = vmatpush3.msk.msra.mxu0 %vm211_vm4, %v3291_v4  ;;  %7622 = vmatprep.mubr.msk.f32.mxu0 %vm8022_vm0, %v8021_v0 }
  0xd8   : > { %7627 = vmatprep.mubr.msk.f32.mxu1 %vm8022_vm0, %v8021_v0  ;;  %7630 = vmatprep.subr.mxu0 %v8021_v0 }
  0xd9   : > { %7628 = vmatmul.mubr.msk.f32.vlgmr.msra.gmra.mxu1 %vm207_vm5, %v8556_v44  ;;  %7635 = vmatprep.subr.mxu1 %v8021_v0 }
  0xda   : > { %7623 = vmatmul.mubr.msk.f32.vlgmr.msra.gmra.mxu0 %vm207_vm5, %v8530_v28  ;;  %7636 = vmatpush3.msk.msra.mxu1 %vm211_vm4, %v8410_v60  ;;  %v3952_v60 = vpop.permute.xlu1 %3951 }
  0xdb   : > { %7631 = vmatpush3.msk.msra.mxu0 %vm211_vm4, %v3550_v30  ;;  %7632 = vmatprep.mubr.msk.f32.mxu0 %vm8022_vm0, %v8021_v0 }
  0xdc   : > { %7637 = vmatprep.mubr.msk.f32.mxu1 %vm8022_vm0, %v8021_v0  ;;  %7640 = vmatprep.subr.mxu0 %v8021_v0 }
  0xdd   : > { %7638 = vmatmul.mubr.msk.f32.vlgmr.msra.gmra.mxu1 %vm207_vm5, %v8152_v20  ;;  %7645 = vmatprep.subr.mxu1 %v8021_v0  ;;  %v4124_v20 = vpop.permute.xlu0 %4123 }
  0xde   : > { %7633 = vmatmul.mubr.msk.f32.vlgmr.msra.gmra.mxu0 %vm207_vm5, %v8489_v29  ;;  %7646 = vmatpush3.msk.msra.mxu1 %vm211_vm4, %v8425_v11  ;;  %v4203_v6 = vpop.permute.xlu1 %4202 }
  0xdf   : > { %7641 = vmatpush3.msk.msra.mxu0 %vm211_vm4, %v3703_v62  ;;  %7642 = vmatprep.mubr.msk.f32.mxu0 %vm8022_vm0, %v8021_v0 }
  0xe0   : > { %7647 = vmatprep.mubr.msk.f32.mxu1 %vm8022_vm0, %v8021_v0  ;;  %7650 = vmatprep.subr.mxu0 %v8021_v0 }
  0xe1   : > { %7648 = vmatmul.mubr.msk.f32.vlgmr.msra.gmra.mxu1 %vm207_vm5, %v8176_v38  ;;  %7655 = vmatprep.subr.mxu1 %v8021_v0  ;;  %v4383_v8 = vpop.permute.xlu0 %4382 }
  0xe2   : > { %7643 = vmatmul.mubr.msk.f32.vlgmr.msra.gmra.mxu0 %vm207_vm5, %v8500_v33  ;;  %7656 = vmatpush3.msk.msra.mxu1 %vm211_vm4, %v3952_v60  ;;  %v4536_v11 = vpop.permute.xlu1 %4535 }
  0xe3   : > { %7651 = vmatpush3.msk.msra.mxu0 %vm211_vm4, %v3873_v2  ;;  %7652 = vmatprep.mubr.msk.f32.mxu0 %vm8022_vm0, %v8021_v0  ;;  %v8761_v3 = vpop.f32.mrf.mxu1 }
  0xe4   : > { %7657 = vmatprep.mubr.msk.f32.mxu1 %vm8022_vm0, %v8021_v0  ;;  %7660 = vmatprep.subr.mxu0 %v8021_v0 }
  0xe5   : > { %7658 = vmatmul.mubr.msk.f32.vlgmr.msra.gmra.mxu1 %vm207_vm5, %v8509_v39  ;;  %7665 = vmatprep.subr.mxu1 %v8021_v0  ;;  %v7459_v7 = vpop.f32.mrf.mxu1  ;;  %v4706_v13 = vpop.permute.xlu0 %4705 }
  0xe6   : > { %7653 = vmatmul.mubr.msk.f32.vlgmr.msra.gmra.mxu0 %vm207_vm5, %v8517_v40  ;;  %7666 = vmatpush3.msk.msra.mxu1 %vm211_vm4, %v4124_v20  ;;  %v4785_v14 = vpop.permute.xlu1 %4784 }
  0xe7   : > { %7661 = vmatpush3.msk.msra.mxu0 %vm211_vm4, %v8435_v18  ;;  %7662 = vmatprep.mubr.msk.f32.mxu0 %vm8022_vm0, %v8021_v0  ;;  %v8776_v9 = vpop.f32.mrf.mxu1  ;;  %v7926_v18 = vld [vmem:[%s9248_s1 + $0x18] sm:$0xff] }
  0xe8   : > { %7667 = vmatprep.mubr.msk.f32.mxu1 %vm8022_vm0, %v8021_v0  ;;  %7670 = vmatprep.subr.mxu0 %v8021_v0 }
  0xe9   : > { %7668 = vmatmul.mubr.msk.f32.vlgmr.msra.gmra.mxu1 %vm207_vm5, %v8530_v28  ;;  %7675 = vmatprep.subr.mxu1 %v8021_v0  ;;  %v7469_v10 = vpop.f32.mrf.mxu1  ;;  %v4957_v16 = vpop.permute.xlu0 %4956 }
  0xea   : > { %7663 = vmatmul.mubr.msk.f32.vlgmr.msra.gmra.mxu0 %vm207_vm5, %v8539_v47  ;;  %7676 = vmatpush3.msk.msra.mxu1 %vm211_vm4, %v4383_v8 }
  0xeb   : > { %7671 = vmatpush3.msk.msra.mxu0 %vm211_vm4, %v4203_v6  ;;  %7672 = vmatprep.mubr.msk.f32.mxu0 %vm8022_vm0, %v8021_v0 }
  0xec   : > { %7677 = vmatprep.mubr.msk.f32.mxu1 %vm8022_vm0, %v8021_v0  ;;  %7680 = vmatprep.subr.mxu0 %v8021_v0 }
  0xed   : > { %7678 = vmatmul.mubr.msk.f32.vlgmr.msra.gmra.mxu1 %vm207_vm5, %v8489_v29  ;;  %7685 = vmatprep.subr.mxu1 %v8021_v0 }
  0xee   : > { %7673 = vmatmul.mubr.msk.f32.vlgmr.msra.gmra.mxu0 %vm207_vm5, %v8556_v44  ;;  %7686 = vmatpush3.msk.msra.mxu1 %vm211_vm4, %v4536_v11 }
  0xef   : > { %7681 = vmatpush3.msk.msra.mxu0 %vm211_vm4, %v8443_v24  ;;  %7682 = vmatprep.mubr.msk.f32.mxu0 %vm8022_vm0, %v8021_v0 }
  0xf0   : > { %7687 = vmatprep.mubr.msk.f32.mxu1 %vm8022_vm0, %v8021_v0  ;;  %7690 = vmatprep.subr.mxu0 %v8021_v0 }
  0xf1   : > { %7688 = vmatmul.mubr.msk.f32.vlgmr.msra.gmra.mxu1 %vm207_vm5, %v8500_v33  ;;  %7695 = vmatprep.subr.mxu1 %v8021_v0 }
  0xf2   : > { %7683 = vmatmul.mubr.msk.f32.vlgmr.msra.gmra.mxu0 %vm207_vm5, %v8812_v15  ;;  %7696 = vmatpush3.msk.msra.mxu1 %vm211_vm4, %v4706_v13 }
  0xf3   : > { %7691 = vmatpush3.msk.msra.mxu0 %vm211_vm4, %v8310_v19  ;;  %7692 = vmatprep.mubr.msk.f32.mxu0 %vm8022_vm0, %v8021_v0  ;;  %v5036_v19 = vpop.permute.xlu1 %5035 }
  0xf4   : > { %7697 = vmatprep.mubr.msk.f32.mxu1 %vm8022_vm0, %v8021_v0  ;;  %7700 = vmatprep.subr.mxu0 %v8021_v0 }
  0xf5   : > { %7698 = vmatmul.mubr.msk.f32.vlgmr.msra.gmra.mxu1 %vm207_vm5, %v8517_v40  ;;  %7705 = vmatprep.subr.mxu1 %v8021_v0 }
  0xf6   : > { %7693 = vmatmul.mubr.msk.f32.vlgmr.msra.gmra.mxu0 %vm207_vm5, %v8176_v38  ;;  %7706 = vmatpush3.msk.msra.mxu1 %vm211_vm4, %v8327_v35  ;;  %v5216_v38 = vpop.permute.xlu0 %5215 }
  0xf7   : > { %7701 = vmatpush3.msk.msra.mxu0 %vm211_vm4, %v4785_v14  ;;  %7702 = vmatprep.mubr.msk.f32.mxu0 %vm8022_vm0, %v8021_v0  ;;  %v5369_v35 = vpop.permute.xlu1 %5368 }
  0xf8   : > { %7707 = vmatprep.mubr.msk.f32.mxu1 %vm8022_vm0, %v8021_v0  ;;  %7710 = vmatprep.subr.mxu0 %v8021_v0 }
  0xf9   : > { %7708 = vmatmul.mubr.msk.f32.vlgmr.msra.gmra.mxu1 %vm207_vm5, %v8539_v47  ;;  %7715 = vmatprep.subr.mxu1 %v8021_v0 }
  0xfa   : > { %7703 = vmatmul.mubr.msk.f32.vlgmr.msra.gmra.mxu0 %vm207_vm5, %v8509_v39  ;;  %7716 = vmatpush3.msk.msra.mxu1 %vm211_vm4, %v5036_v19  ;;  %v5539_v17 = vpop.permute.xlu0 %5538 }
  0xfb   : > { %7711 = vmatpush3.msk.msra.mxu0 %vm211_vm4, %v4957_v16  ;;  %7712 = vmatprep.mubr.msk.f32.mxu0 %vm8022_vm0, %v8021_v0 }
  0xfc   : > { %7717 = vmatprep.mubr.msk.f32.mxu1 %vm8022_vm0, %v8021_v0  ;;  %7720 = vmatprep.subr.mxu0 %v8021_v0 }
  0xfd   : > { %7718 = vmatmul.mubr.msk.f32.vlgmr.msra.gmra.mxu1 %vm207_vm5, %v8556_v44  ;;  %7725 = vmatprep.subr.mxu1 %v8021_v0 }
  0xfe   : > { %7713 = vmatmul.mubr.msk.f32.vlgmr.msra.gmra.mxu0 %vm207_vm5, %v8530_v28  ;;  %7726 = vmatpush3.msk.msra.mxu1 %vm211_vm4, %v8345_v52  ;;  %v5618_v52 = vpop.permute.xlu1 %5617 }
  0xff   : > { %7721 = vmatpush3.msk.msra.mxu0 %vm211_vm4, %v5216_v38  ;;  %7722 = vmatprep.mubr.msk.f32.mxu0 %vm8022_vm0, %v8021_v0 }
 0x100   : > { %7727 = vmatprep.mubr.msk.f32.mxu1 %vm8022_vm0, %v8021_v0  ;;  %7730 = vmatprep.subr.mxu0 %v8021_v0 }
 0x101   : > { %7728 = vmatmul.mubr.msk.f32.vlgmr.msra.gmra.mxu1 %vm207_vm5, %v8812_v15  ;;  %7735 = vmatprep.subr.mxu1 %v8021_v0 }
 0x102   : > { %7723 = vmatmul.mubr.msk.f32.vlgmr.msra.gmra.mxu0 %vm207_vm5, %v8489_v29  ;;  %7736 = vmatpush3.msk.msra.mxu1 %vm211_vm4, %v8359_v5  ;;  %v5790_v5 = vpop.permute.xlu0 %5789  ;;  %v5869_v21 = vpop.permute.xlu1 %5868 }
 0x103   : > { %7731 = vmatpush3.msk.msra.mxu0 %vm211_vm4, %v5369_v35  ;;  %7732 = vmatprep.mubr.msk.f32.mxu0 %vm8022_vm0, %v8021_v0 }
 0x104   : > { %7737 = vmatprep.mubr.msk.f32.mxu1 %vm8022_vm0, %v8021_v0  ;;  %7740 = vmatprep.subr.mxu0 %v8021_v0 }
 0x105   : > { %7738 = vmatmul.mubr.msk.f32.vlgmr.msra.gmra.mxu1 %vm207_vm5, %v7926_v18  ;;  %7745 = vmatprep.subr.mxu1 %v8021_v0 }
 0x106   : > { %7733 = vmatmul.mubr.msk.f32.vlgmr.msra.gmra.mxu0 %vm207_vm5, %v8500_v33  ;;  %7746 = vmatpush3.msk.msra.mxu1 %vm211_vm4, %v5618_v52  ;;  %v6049_v23 = vpop.permute.xlu0 %6048 }
 0x107   : > { %7741 = vmatpush3.msk.msra.mxu0 %vm211_vm4, %v5539_v17  ;;  %7742 = vmatprep.mubr.msk.f32.mxu0 %vm8022_vm0, %v8021_v0 }
 0x108   : > { %7747 = vmatprep.mubr.msk.f32.mxu1 %vm8022_vm0, %v8021_v0  ;;  %7750 = vmatprep.subr.mxu0 %v8021_v0 }
 0x109   : > { %7748 = vmatmul.mubr.msk.f32.vlgmr.msra.gmra.mxu1 %vm207_vm5, %v8509_v39  ;;  %7755 = vmatprep.subr.mxu1 %v8021_v0 }
 0x10a   : > { %7743 = vmatmul.mubr.msk.f32.vlgmr.msra.gmra.mxu0 %vm207_vm5, %v8517_v40  ;;  %7756 = vmatpush3.msk.msra.mxu1 %vm211_vm4, %v5790_v5  ;;  %v6372_v24 = vpop.permute.xlu0 %6371 }
 0x10b   : > { %7751 = vmatpush3.msk.msra.mxu0 %vm211_vm4, %v8374_v22  ;;  %7752 = vmatprep.mubr.msk.f32.mxu0 %vm8022_vm0, %v8021_v0  ;;  %v6202_v22 = vpop.permute.xlu1 %6201 }
 0x10c   : > { %7757 = vmatprep.mubr.msk.f32.mxu1 %vm8022_vm0, %v8021_v0  ;;  %7760 = vmatprep.subr.mxu0 %v8021_v0 }
 0x10d   : > { %7758 = vmatmul.mubr.msk.f32.vlgmr.msra.gmra.mxu1 %vm207_vm5, %v8530_v28  ;;  %7765 = vmatprep.subr.mxu1 %v8021_v0 }
 0x10e   : > { %7753 = vmatmul.mubr.msk.f32.vlgmr.msra.gmra.mxu0 %vm207_vm5, %v8539_v47  ;;  %7766 = vmatpush3.msk.msra.mxu1 %vm211_vm4, %v6049_v23 }
 0x10f   : > { %7761 = vmatpush3.msk.msra.mxu0 %vm211_vm4, %v5869_v21  ;;  %7762 = vmatprep.mubr.msk.f32.mxu0 %vm8022_vm0, %v8021_v0  ;;  %v6451_v25 = vpop.permute.xlu1 %6450 }
 0x110   : > { %7767 = vmatprep.mubr.msk.f32.mxu1 %vm8022_vm0, %v8021_v0  ;;  %7770 = vmatprep.subr.mxu0 %v8021_v0 }
 0x111   : > { %7768 = vmatmul.mubr.msk.f32.vlgmr.msra.gmra.mxu1 %vm207_vm5, %v8489_v29  ;;  %7775 = vmatprep.subr.mxu1 %v8021_v0 }
 0x112   : > { %7763 = vmatmul.mubr.msk.f32.vlgmr.msra.gmra.mxu0 %vm207_vm5, %v8556_v44  ;;  %7776 = vmatpush3.msk.msra.mxu1 %vm211_vm4, %v6202_v22 }
 0x113   : > { %7771 = vmatpush3.msk.msra.mxu0 %vm211_vm4, %v8389_v37  ;;  %7772 = vmatprep.mubr.msk.f32.mxu0 %vm8022_vm0, %v8021_v0  ;;  %v6702_v37 = vpop.permute.xlu1 %6701 }
 0x114   : > { %7777 = vmatprep.mubr.msk.f32.mxu1 %vm8022_vm0, %v8021_v0  ;;  %7780 = vmatprep.subr.mxu0 %v8021_v0 }
 0x115   : > { %7778 = vmatmul.mubr.msk.f32.vlgmr.msra.gmra.mxu1 %vm207_vm5, %v8500_v33  ;;  %7785 = vmatprep.subr.mxu1 %v8021_v0 }
 0x116   : > { %7773 = vmatmul.mubr.msk.f32.vlgmr.msra.gmra.mxu0 %vm207_vm5, %v8812_v15  ;;  %7786 = vmatpush3.msk.msra.mxu1 %vm211_vm4, %v6372_v24 }
 0x117   : > { %7781 = vmatpush3.msk.msra.mxu0 %vm211_vm4, %v8401_v55  ;;  %7782 = vmatprep.mubr.msk.f32.mxu0 %vm8022_vm0, %v8021_v0  ;;  %v6623_v55 = vpop.permute.xlu0 %6622  ;;  %v1785_v38 = vpop.permute.xlu1 %1784 }
 0x118   : > { %7787 = vmatprep.mubr.msk.f32.mxu1 %vm8022_vm0, %v8021_v0  ;;  %7790 = vmatprep.subr.mxu0 %v8021_v0 }
 0x119   : > { %7788 = vmatmul.mubr.msk.f32.vlgmr.msra.gmra.mxu1 %vm207_vm5, %v8517_v40  ;;  %7795 = vmatprep.subr.mxu1 %v8021_v0 }
 0x11a   : > { %7783 = vmatmul.mubr.msk.f32.vlgmr.msra.gmra.mxu0 %vm207_vm5, %v7926_v18  ;;  %7796 = vmatpush3.msk.msra.mxu1 %vm211_vm4, %v8413_v63 }
 0x11b   : > { %7791 = vmatpush3.msk.msra.mxu0 %vm211_vm4, %v6451_v25  ;;  %7792 = vmatprep.mubr.msk.f32.mxu0 %vm8022_vm0, %v8021_v0  ;;  %v951_v1 = vpop.permute.xlu0 %950 }
 0x11c   : > { %7797 = vmatprep.mubr.msk.f32.mxu1 %vm8022_vm0, %v8021_v0  ;;  %7800 = vmatprep.subr.mxu0 %v8021_v0 }
 0x11d   : > { %7798 = vmatmul.mubr.msk.f32.vlgmr.msra.gmra.mxu1 %vm207_vm5, %v8539_v47  ;;  %7805 = vmatprep.subr.mxu1 %v8021_v0 }
 0x11e   : > { %7793 = vmatmul.mubr.msk.f32.vlgmr.msra.gmra.mxu0 %vm207_vm5, %v8509_v39  ;;  %7806 = vmatpush3.msk.msra.mxu1 %vm211_vm4, %v6702_v37 }
 0x11f   : > { %7801 = vmatpush3.msk.msra.mxu0 %vm211_vm4, %v6623_v55  ;;  %7802 = vmatprep.mubr.msk.f32.mxu0 %vm8022_vm0, %v8021_v0 }
 0x120   : > { %7807 = vmatprep.mubr.msk.f32.mxu1 %vm8022_vm0, %v8021_v0 }
 0x121   : > { %7808 = vmatmul.mubr.msk.f32.vlgmr.msra.gmra.mxu1 %vm207_vm5, %v8556_v44 }
 0x122   : > { %7803 = vmatmul.mubr.msk.f32.vlgmr.msra.gmra.mxu0 %vm207_vm5, %v8530_v28 }
 0x156   : > { %v280_v63 = vpop.f32.mrf.mxu0 }
 0x157   : > { %v356_v29 = vadd.f32 %v8761_v3, %v280_v63 }
 0x158   : > { %v7454_v27 = vpop.f32.mrf.mxu0 }
 0x15a   : > { %v434_v31 = vpop.f32.mrf.mxu0 }
 0x15b   : > { %v438_v32 = vadd.f32 %v434_v31, %v356_v29 }
 0x15c   : > { %v7464_v33 = vpop.f32.mrf.mxu0 }
 0x15d   : > { %v532_v34 = vadd.f32 %v8776_v9, %v438_v32  ;;  %v688_v36 = vpop.f32.mrf.mxu1 }
 0x15e   : > { %v608_v39 = vpop.f32.mrf.mxu0 }
 0x15f   : > { %v612_v40 = vadd.f32 %v608_v39, %v532_v34  ;;  %v7479_v41 = vpop.f32.mrf.mxu1 }
 0x160   : > { %v7474_v0 = vpop.f32.mrf.mxu0 }
 0x161   : > { %v692_v45 = vadd.f32 %v688_v36, %v612_v40  ;;  %v862_v47 = vpop.f32.mrf.mxu1 }
 0x162   : > { %v782_v48 = vpop.f32.mrf.mxu0 }
 0x163   : > { %v786_v44 = vadd.f32 %v782_v48, %v692_v45  ;;  %v7489_v49 = vpop.f32.mrf.mxu1 }
 0x164   : > { %v7484_v28 = vpop.f32.mrf.mxu0 }
 0x165   : > { %v866_v50 = vadd.f32 %v862_v47, %v786_v44  ;;  %v1123_v51 = vpop.f32.mrf.mxu1 }
 0x166   : > { %v942_v54 = vpop.f32.mrf.mxu0 }
 0x167   : > { %v946_v12 = vadd.f32 %v942_v54, %v866_v50  ;;  %v7499_v53 = vpop.f32.mrf.mxu1 }
 0x168   : > { %v7494_v46 = vpop.f32.mrf.mxu0 }
 0x169   : > { %v8969_v26 = vadd.f32 %v951_v1, %v946_v12  ;;  %v1276_v56 = vpop.f32.mrf.mxu1  ;;  %v2618_v1 = vpop.permute.xlu1 %2617 }
 0x16a   : > { %v1198_v42 = vpop.f32.mrf.mxu0 }
 0x16b   : > { %v954_v57 = vmin.f32 %v8969_v26, 20.0  ;;  %v1199_v61 = vadd.f32 %v1198_v42, %v1123_v51  ;;  %v7509_v58 = vpop.f32.mrf.mxu1 }
 0x16c   : > { %v7504_v59 = vpop.f32.mrf.mxu0 }
 0x16d   : > { %v955_v4 = vmul.f32 1.442695, %v954_v57  ;;  %v1280_v43 = vadd.f32 %v1276_v56, %v1199_v61  ;;  %v1446_v30 = vpop.f32.mrf.mxu1  ;;  %v8026_v61 = vmov 1966171168   ;;  %v972_v59 = vlaneseq }
 0x16e   : > { %v1367_v62 = vpop.f32.mrf.mxu0  ;;  %v970_v58 = vunpack.c.l.s4 %v8026_v61 }
 0x16f   : > { %7893 = vpow2.f32 %v955_v4  ;;  %v1371_v2 = vadd.f32 %v1367_v62, %v1280_v43  ;;  %v7519_v60 = vpop.f32.mrf.mxu1 }
 0x170   : > { %v7514_v20 = vpop.f32.mrf.mxu0 }
 0x171   : > { %v1450_v3 = vadd.f32 %v1446_v30, %v1371_v2  ;;  %v1618_v6 = vpop.f32.mrf.mxu1 }
 0x172   : > { %v1525_v7 = vpop.f32.mrf.mxu0 }
 0x173   : > { %v1529_v8 = vadd.f32 %v1525_v7, %v1450_v3  ;;  %v7529_v9 = vpop.f32.mrf.mxu1 }
 0x174   : > { %v7524_v10 = vpop.f32.mrf.mxu0 }
 0x175   : > { %v1622_v11 = vadd.f32 %v1618_v6, %v1529_v8  ;;  %v1776_v13 = vpop.f32.mrf.mxu1  ;;  %v971_v10 = vunpack.c.0.s8 %v970_v58 }
 0x176   : > { %v1697_v14 = vpop.f32.mrf.mxu0 }
 0x177   : > { %v1701_v15 = vadd.f32 %v1697_v14, %v1622_v11  ;;  %v7539_v16 = vpop.f32.mrf.mxu1  ;;  %v973_v11 = vshrl.u32 %v972_v59, 7 }
 0x178   : > { %v7534_v19 = vpop.f32.mrf.mxu0 }
 0x179   : > { %v1780_v35 = vadd.f32 %v1776_v13, %v1701_v15  ;;  %v2031_v17 = vpop.f32.mrf.mxu1 }
 0x17a   : > { %v1956_v52 = vpop.f32.mrf.mxu0 }
 0x17b   : > { %v8972_v18 = vadd.f32 %v1785_v38, %v1780_v35  ;;  %v7549_v5 = vpop.f32.mrf.mxu1  ;;  %v2032_v25 = vadd.f32 %v2031_v17, %v1956_v52 }
 0x17c   : > { %v7894_v21 = vpop.eup %7893  ;;  %v7544_v23 = vpop.f32.mrf.mxu0 }
 0x17d   : > { %v957_v22 = vadd.f32 2.0, %v7894_v21  ;;  %v1788_v24 = vmin.f32 %v8972_v18, 20.0  ;;  %v2200_v37 = vpop.f32.mrf.mxu1  ;;  %v964_v23 = vadd.f32 1.0, %v8969_v26 }
 0x17e   : > { %v2109_v55 = vpop.f32.mrf.mxu0 }
 0x17f   : > { %v958_v63 = vmul.f32 %v7894_v21, %v957_v22  ;;  %v1789_v27 = vmul.f32 1.442695, %v1788_v24  ;;  %v2113_v29 = vadd.f32 %v2109_v55, %v2032_v25  ;;  %v7559_v31 = vpop.f32.mrf.mxu1  ;;  %v8979_v21 = vsub.s32 %v971_v10, %v973_v11 }
 0x180   : > { %v7554_v32 = vpop.f32.mrf.mxu0 }
 0x181   : > { %v959_v33 = vadd.f32 2.0, %v958_v63  ;;  %7895 = vpow2.f32 %v1789_v27  ;;  %v2204_v34 = vadd.f32 %v2200_v37, %v2113_v29  ;;  %v2358_v36 = vpop.f32.mrf.mxu1 }
 0x182   : > { %v2279_v39 = vpop.f32.mrf.mxu0 }
 0x183   : > { %7897 = vrcp.f32 %v959_v33  ;;  %v2283_v40 = vadd.f32 %v2279_v39, %v2204_v34  ;;  %v7569_v41 = vpop.f32.mrf.mxu1 }
 0x184   : > { %v7564_v0 = vpop.f32.mrf.mxu0 }
 0x185   : > { %v2362_v45 = vadd.f32 %v2358_v36, %v2283_v40  ;;  %v2530_v47 = vpop.f32.mrf.mxu1  ;;  %v3451_v0 = vpop.permute.xlu0 %3450 }
 0x186   : > { %v2451_v48 = vpop.f32.mrf.mxu0 }
 0x187   : > { %v2455_v44 = vadd.f32 %v2451_v48, %v2362_v45  ;;  %v7579_v49 = vpop.f32.mrf.mxu1 }
 0x188   : > { %v7574_v28 = vpop.f32.mrf.mxu0 }
 0x189   : > { %v2534_v50 = vadd.f32 %v2530_v47, %v2455_v44  ;;  %v2789_v51 = vpop.f32.mrf.mxu1 }
 0x18a   : > { %v2609_v54 = vpop.f32.mrf.mxu0 }
 0x18b   : > { %v2613_v12 = vadd.f32 %v2609_v54, %v2534_v50  ;;  %v7589_v53 = vpop.f32.mrf.mxu1 }
 0x18c   : > { %v7584_v46 = vpop.f32.mrf.mxu0 }
 0x18d   : > { %v8975_v56 = vadd.f32 %v2618_v1, %v2613_v12  ;;  %v2942_v42 = vpop.f32.mrf.mxu1 }
 0x18e   : > { %v7896_v57 = vpop.eup %7895  ;;  %v2864_v4 = vpop.f32.mrf.mxu0 }
 0x18f   : > { %v1791_v43 = vadd.f32 2.0, %v7896_v57  ;;  %v2621_v30 = vmin.f32 %v8975_v56, 20.0  ;;  %v2865_v62 = vadd.f32 %v2864_v4, %v2789_v51  ;;  %v7599_v2 = vpop.f32.mrf.mxu1 }
 0x190   : > { %v7898_v60 = vpop.eup %7897  ;;  %v7594_v20 = vpop.f32.mrf.mxu0 }
 0x191   : > { %v961_v3 = vmul.f32 %v7898_v60, %v959_v33  ;;  %v1792_v6 = vmul.f32 %v7896_v57, %v1791_v43  ;;  %v2622_v7 = vmul.f32 1.442695, %v2621_v30  ;;  %v2946_v8 = vadd.f32 %v2942_v42, %v2865_v62  ;;  %v3112_v9 = vpop.f32.mrf.mxu1 }
 0x192   : > { %v3033_v13 = vpop.f32.mrf.mxu0 }
 0x193   : > { %v962_v14 = vsub.f32 2.0, %v961_v3  ;;  %v1793_v15 = vadd.f32 2.0, %v1792_v6  ;;  %7899 = vpow2.f32 %v2622_v7  ;;  %v3037_v16 = vadd.f32 %v3033_v13, %v2946_v8  ;;  %v7609_v19 = vpop.f32.mrf.mxu1 }
 0x194   : > { %v7604_v38 = vpop.f32.mrf.mxu0 }
 0x195   : > { %v963_v35 = vmul.f32 %v7898_v60, %v962_v14  ;;  %7901 = vrcp.f32 %v1793_v15  ;;  %v3116_v17 = vadd.f32 %v3112_v9, %v3037_v16  ;;  %v3284_v52 = vpop.f32.mrf.mxu1 }
 0x196   : > { %v3191_v5 = vpop.f32.mrf.mxu0 }
 0x197   : > { %v965_v22 = vmul.f32 2.0, %v963_v35  ;;  %v3195_v24 = vadd.f32 %v3191_v5, %v3116_v17  ;;  %v7619_v25 = vpop.f32.mrf.mxu1 }
 0x198   : > { %v7614_v37 = vpop.f32.mrf.mxu0 }
 0x199   : > { %v966_v55 = vsub.f32 %v964_v23, %v965_v22  ;;  %v3288_v63 = vadd.f32 %v3284_v52, %v3195_v24  ;;  %v3442_v27 = vpop.f32.mrf.mxu1 }
 0x19a   : > { %v3363_v29 = vpop.f32.mrf.mxu0 }
 0x19b   : > { %v968_v31 = vcombine.high %v966_v55, %v966_v55  ;;  %v975_v32 = vrot.slane %v966_v55, %v8979_v21  ;;  %v3367_v33 = vadd.f32 %v3363_v29, %v3288_v63  ;;  %v7629_v34 = vpop.f32.mrf.mxu1 }
 0x19c   : > { %v7624_v36 = vpop.f32.mrf.mxu0 }
 0x19d   : > { %v982_v39 = vrot.slane %v968_v31, %v8979_v21  ;;  %v983_v26 = vcombine.high %v975_v32, %v975_v32  ;;  %v991_v40 = vrot.slane %v975_v32, %v8979_v21  ;;  %v3446_v41 = vadd.f32 %v3442_v27, %v3367_v33  ;;  %v3697_v45 = vpop.f32.mrf.mxu1  ;;  %v4284_v32 = vpop.permute.xlu1 %4283 }
 0x19e   : > { %v3622_v47 = vpop.f32.mrf.mxu0 }
 0x19f   : > { %v984_v48 = vcombine.high %v982_v39, %v982_v39  ;;  %v998_v44 = vrot.slane %v982_v39, %v8979_v21  ;;  %v1005_v49 = vrot.slane %v983_v26, %v8979_v21  ;;  %v1013_v28 = vcombine.high %v991_v40, %v991_v40  ;;  %1026 = vst.msk [vmem:[%s8989_s11] sm:$0x1] %vm1025_vm6, %v991_v40  ;;  %v7639_v50 = vpop.f32.mrf.mxu1 }
 0x1a0   : > { %v7900_v51 = vpop.eup %7899  ;;  %v8993_v54 = vadd.f32 %v3451_v0, %v3446_v41  ;;  %v7634_v1 = vpop.f32.mrf.mxu0  ;;  %v3698_v12 = vadd.f32 %v3697_v45, %v3622_v47 }
 0x1a1   : > { %v1012_v53 = vrot.slane %v984_v48, %v8979_v21  ;;  %v1014_v46 = vcombine.high %v998_v44, %v998_v44  ;;  %v1015_v42 = vcombine.high %v1005_v49, %v1005_v49  ;;  %1027 = vst.msk [vmem:[%s8989_s11 + $0x8] sm:$0x1] %vm1025_vm6, %v1005_v49  ;;  %1028 = vst.msk [vmem:[%s8989_s11 + $0x10] sm:$0x1] %vm1025_vm6, %v1013_v28  ;;  %v2624_v57 = vadd.f32 2.0, %v7900_v51  ;;  %v3866_v61 = vpop.f32.mrf.mxu1 }
 0x1a2   : > { %1030 = vst.msk [vmem:[%s8989_s11 + $0x20] sm:$0x1] %vm1025_vm6, %v998_v44  ;;  %v7902_v58 = vpop.eup %7901  ;;  %v3454_v59 = vmin.f32 %v8993_v54, 20.0  ;;  %v3775_v4 = vpop.f32.mrf.mxu0 }
 0x1a3   : > { %v1016_v43 = vcombine.high %v1012_v53, %v1012_v53  ;;  %1029 = vst.msk [vmem:[%s8989_s11 + $0x18] sm:$0x1] %vm1025_vm6, %v1015_v42  ;;  %1031 = vst.msk [vmem:[%s8989_s11 + $0x28] sm:$0x1] %vm1025_vm6, %v1012_v53  ;;  %v1795_v30 = vmul.f32 %v7902_v58, %v1793_v15  ;;  %v2625_v62 = vmul.f32 %v7900_v51, %v2624_v57  ;;  %v7649_v60 = vpop.f32.mrf.mxu1  ;;  %v1798_v15 = vadd.f32 1.0, %v8972_v18 }
 0x1a4   : > { %1032 = vst.msk [vmem:[%s8989_s11 + $0x30] sm:$0x1] %vm1025_vm6, %v1014_v46  ;;  %v3779_v2 = vadd.f32 %v3775_v4, %v3698_v12  ;;  %v3455_v20 = vmul.f32 1.442695, %v3454_v59  ;;  %v7644_v3 = vpop.f32.mrf.mxu0 }
 0x1a5   : > { %1033 = vst.msk [vmem:[%s8989_s11 + $0x38] sm:$0x1] %vm1025_vm6, %v1016_v43  ;;  %v1796_v6 = vsub.f32 2.0, %v1795_v30  ;;  %v2626_v7 = vadd.f32 2.0, %v2625_v62  ;;  %v4024_v9 = vpop.f32.mrf.mxu1 }
 0x1a6   : > { %v3870_v8 = vadd.f32 %v3866_v61, %v3779_v2  ;;  %7903 = vpow2.f32 %v3455_v20  ;;  %v3945_v10 = vpop.f32.mrf.mxu0 }
 0x1a7   : > { %v1797_v11 = vmul.f32 %v7902_v58, %v1796_v6  ;;  %7905 = vrcp.f32 %v2626_v7  ;;  %v7659_v14 = vpop.f32.mrf.mxu1 }
 0x1a8   : > { %v3949_v13 = vadd.f32 %v3945_v10, %v3870_v8  ;;  %v7654_v16 = vpop.f32.mrf.mxu0 }
 0x1a9   : > { %v1799_v19 = vmul.f32 2.0, %v1797_v11  ;;  %v4196_v35 = vpop.f32.mrf.mxu1 }
 0x1aa   : > { %v4028_v38 = vadd.f32 %v4024_v9, %v3949_v13  ;;  %v4117_v17 = vpop.f32.mrf.mxu0 }
 0x1ab   : > { %v1800_v52 = vsub.f32 %v1798_v15, %v1799_v19  ;;  %v7669_v23 = vpop.f32.mrf.mxu1 }
 0x1ac   : > { %v4121_v5 = vadd.f32 %v4117_v17, %v4028_v38  ;;  %v7664_v22 = vpop.f32.mrf.mxu0 }
 0x1ad   : > { %v1802_v24 = vcombine.high %v1800_v52, %v1800_v52  ;;  %v1809_v25 = vrot.slane %v1800_v52, %v8979_v21  ;;  %v4455_v55 = vpop.f32.mrf.mxu1 }
 0x1ae   : > { %v4200_v37 = vadd.f32 %v4196_v35, %v4121_v5  ;;  %v4275_v63 = vpop.f32.mrf.mxu0 }
 0x1af   : > { %v1816_v27 = vrot.slane %v1802_v24, %v8979_v21  ;;  %v1817_v29 = vcombine.high %v1809_v25, %v1809_v25  ;;  %v1825_v18 = vrot.slane %v1809_v25, %v8979_v21  ;;  %v7679_v33 = vpop.f32.mrf.mxu1  ;;  %v5117_v25 = vpop.permute.xlu0 %5116 }
 0x1b0   : > { %v4279_v31 = vadd.f32 %v4275_v63, %v4200_v37  ;;  %v7674_v34 = vpop.f32.mrf.mxu0 }
 0x1b1   : > { %v1818_v36 = vcombine.high %v1816_v27, %v1816_v27  ;;  %v1832_v39 = vrot.slane %v1816_v27, %v8979_v21  ;;  %v1839_v26 = vrot.slane %v1817_v29, %v8979_v21  ;;  %v1847_v40 = vcombine.high %v1825_v18, %v1825_v18  ;;  %1859 = vst.msk [vmem:[%s8989_s11 + $0x1] sm:$0x1] %vm1025_vm6, %v1825_v18  ;;  %v4608_v41 = vpop.f32.mrf.mxu1 }
 0x1b2   : > { %v9019_v0 = vadd.f32 %v4284_v32, %v4279_v31  ;;  %v4530_v45 = vpop.f32.mrf.mxu0 }
 0x1b3   : > { %v7904_v47 = vpop.eup %7903  ;;  %v1846_v48 = vrot.slane %v1818_v36, %v8979_v21  ;;  %v1848_v44 = vcombine.high %v1832_v39, %v1832_v39  ;;  %v1849_v49 = vcombine.high %v1839_v26, %v1839_v26  ;;  %1860 = vst.msk [vmem:[%s8989_s11 + $0x9] sm:$0x1] %vm1025_vm6, %v1839_v26  ;;  %1861 = vst.msk [vmem:[%s8989_s11 + $0x11] sm:$0x1] %vm1025_vm6, %v1847_v40  ;;  %v7689_v50 = vpop.f32.mrf.mxu1 }
 0x1b4   : > { %1863 = vst.msk [vmem:[%s8989_s11 + $0x21] sm:$0x1] %vm1025_vm6, %v1832_v39  ;;  %v4531_v28 = vadd.f32 %v4530_v45, %v4455_v55  ;;  %v7906_v51 = vpop.eup %7905  ;;  %v3457_v1 = vadd.f32 2.0, %v7904_v47  ;;  %v4287_v12 = vmin.f32 %v9019_v0, 20.0  ;;  %v7684_v53 = vpop.f32.mrf.mxu0 }
 0x1b5   : > { %v1850_v46 = vcombine.high %v1846_v48, %v1846_v48  ;;  %1862 = vst.msk [vmem:[%s8989_s11 + $0x19] sm:$0x1] %vm1025_vm6, %v1849_v49  ;;  %1864 = vst.msk [vmem:[%s8989_s11 + $0x29] sm:$0x1] %vm1025_vm6, %v1846_v48  ;;  %v2628_v42 = vmul.f32 %v7906_v51, %v2626_v7  ;;  %v4778_v61 = vpop.f32.mrf.mxu1  ;;  %v2631_v7 = vadd.f32 1.0, %v8975_v56 }
 0x1b6   : > { %1865 = vst.msk [vmem:[%s8989_s11 + $0x31] sm:$0x1] %vm1025_vm6, %v1848_v44  ;;  %v4612_v57 = vadd.f32 %v4608_v41, %v4531_v28  ;;  %v3458_v58 = vmul.f32 %v7904_v47, %v3457_v1  ;;  %v4288_v59 = vmul.f32 1.442695, %v4287_v12  ;;  %v4699_v4 = vpop.f32.mrf.mxu0 }
 0x1b7   : > { %1866 = vst.msk [vmem:[%s8989_s11 + $0x39] sm:$0x1] %vm1025_vm6, %v1850_v46  ;;  %v2629_v43 = vsub.f32 2.0, %v2628_v42  ;;  %v7699_v62 = vpop.f32.mrf.mxu1 }
 0x1b8   : > { %v4703_v30 = vadd.f32 %v4699_v4, %v4612_v57  ;;  %v3459_v2 = vadd.f32 2.0, %v3458_v58  ;;  %7907 = vpow2.f32 %v4288_v59  ;;  %v7694_v60 = vpop.f32.mrf.mxu0 }
 0x1b9   : > { %v2630_v20 = vmul.f32 %v7906_v51, %v2629_v43  ;;  %v4950_v6 = vpop.f32.mrf.mxu1 }
 0x1ba   : > { %v4782_v3 = vadd.f32 %v4778_v61, %v4703_v30  ;;  %7909 = vrcp.f32 %v3459_v2  ;;  %v4857_v8 = vpop.f32.mrf.mxu0 }
 0x1bb   : > { %v2632_v9 = vmul.f32 2.0, %v2630_v20  ;;  %v7709_v11 = vpop.f32.mrf.mxu1 }
 0x1bc   : > { %v4861_v10 = vadd.f32 %v4857_v8, %v4782_v3  ;;  %v7704_v13 = vpop.f32.mrf.mxu0 }
 0x1bd   : > { %v2633_v14 = vsub.f32 %v2631_v7, %v2632_v9  ;;  %v5108_v15 = vpop.f32.mrf.mxu1 }
 0x1be   : > { %v4954_v16 = vadd.f32 %v4950_v6, %v4861_v10  ;;  %v5029_v19 = vpop.f32.mrf.mxu0 }
 0x1bf   : > { %v2635_v38 = vcombine.high %v2633_v14, %v2633_v14  ;;  %v2642_v35 = vrot.slane %v2633_v14, %v8979_v21  ;;  %v7719_v52 = vpop.f32.mrf.mxu1 }
 0x1c0   : > { %v5033_v17 = vadd.f32 %v5029_v19, %v4954_v16  ;;  %v7714_v5 = vpop.f32.mrf.mxu0 }
 0x1c1   : > { %v2649_v23 = vrot.slane %v2635_v38, %v8979_v21  ;;  %v2650_v22 = vcombine.high %v2642_v35, %v2642_v35  ;;  %v2658_v56 = vrot.slane %v2642_v35, %v8979_v21  ;;  %v5363_v37 = vpop.f32.mrf.mxu1 }
 0x1c2   : > { %v5112_v24 = vadd.f32 %v5108_v15, %v5033_v17  ;;  %v5288_v55 = vpop.f32.mrf.mxu0  ;;  %v5950_v15 = vpop.permute.xlu1 %5949 }
 0x1c3   : > { %v2651_v63 = vcombine.high %v2649_v23, %v2649_v23  ;;  %v2665_v27 = vrot.slane %v2649_v23, %v8979_v21  ;;  %v2672_v29 = vrot.slane %v2650_v22, %v8979_v21  ;;  %v2680_v18 = vcombine.high %v2658_v56, %v2658_v56  ;;  %2692 = vst.msk [vmem:[%s8989_s11 + $0x2] sm:$0x1] %vm1025_vm6, %v2658_v56  ;;  %v7729_v31 = vpop.f32.mrf.mxu1 }
 0x1c4   : > { %v9045_v32 = vadd.f32 %v5117_v25, %v5112_v24  ;;  %v7724_v33 = vpop.f32.mrf.mxu0  ;;  %v5364_v40 = vadd.f32 %v5363_v37, %v5288_v55 }
 0x1c5   : > { %v7908_v34 = vpop.eup %7907  ;;  %v2679_v36 = vrot.slane %v2651_v63, %v8979_v21  ;;  %v2681_v39 = vcombine.high %v2665_v27, %v2665_v27  ;;  %v2682_v26 = vcombine.high %v2672_v29, %v2672_v29  ;;  %2693 = vst.msk [vmem:[%s8989_s11 + $0xa] sm:$0x1] %vm1025_vm6, %v2672_v29  ;;  %2694 = vst.msk [vmem:[%s8989_s11 + $0x12] sm:$0x1] %vm1025_vm6, %v2680_v18  ;;  %v5532_v41 = vpop.f32.mrf.mxu1 }
 0x1c6   : > { %2696 = vst.msk [vmem:[%s8989_s11 + $0x22] sm:$0x1] %vm1025_vm6, %v2665_v27  ;;  %v4290_v45 = vadd.f32 2.0, %v7908_v34  ;;  %v5120_v47 = vmin.f32 %v9045_v32, 20.0  ;;  %v5441_v48 = vpop.f32.mrf.mxu0 }
 0x1c7   : > { %v7910_v44 = vpop.eup %7909  ;;  %v2683_v49 = vcombine.high %v2679_v36, %v2679_v36  ;;  %2695 = vst.msk [vmem:[%s8989_s11 + $0x1a] sm:$0x1] %vm1025_vm6, %v2682_v26  ;;  %2697 = vst.msk [vmem:[%s8989_s11 + $0x2a] sm:$0x1] %vm1025_vm6, %v2679_v36  ;;  %v5445_v28 = vadd.f32 %v5441_v48, %v5364_v40  ;;  %v7739_v50 = vpop.f32.mrf.mxu1 }
 0x1c8   : > { %2698 = vst.msk [vmem:[%s8989_s11 + $0x32] sm:$0x1] %vm1025_vm6, %v2681_v39  ;;  %v3461_v51 = vmul.f32 %v7910_v44, %v3459_v2  ;;  %v4291_v1 = vmul.f32 %v7908_v34, %v4290_v45  ;;  %v5121_v12 = vmul.f32 1.442695, %v5120_v47  ;;  %v7734_v53 = vpop.f32.mrf.mxu0  ;;  %v3464_v2 = vadd.f32 1.0, %v8993_v54 }
 0x1c9   : > { %2699 = vst.msk [vmem:[%s8989_s11 + $0x3a] sm:$0x1] %vm1025_vm6, %v2683_v49  ;;  %v5536_v46 = vadd.f32 %v5532_v41, %v5445_v28  ;;  %v5690_v42 = vpop.f32.mrf.mxu1 }
 0x1ca   : > { %v3462_v57 = vsub.f32 2.0, %v3461_v51  ;;  %v4292_v61 = vadd.f32 2.0, %v4291_v1  ;;  %7911 = vpow2.f32 %v5121_v12  ;;  %v5611_v58 = vpop.f32.mrf.mxu0 }
 0x1cb   : > { %v5615_v59 = vadd.f32 %v5611_v58, %v5536_v46  ;;  %v7749_v4 = vpop.f32.mrf.mxu1 }
 0x1cc   : > { %v3463_v43 = vmul.f32 %v7910_v44, %v3462_v57  ;;  %7913 = vrcp.f32 %v4292_v61  ;;  %v7744_v30 = vpop.f32.mrf.mxu0 }
 0x1cd   : > { %v5694_v62 = vadd.f32 %v5690_v42, %v5615_v59  ;;  %v5862_v60 = vpop.f32.mrf.mxu1  ;;  %v4297_v59 = vadd.f32 1.0, %v9019_v0 }
 0x1ce   : > { %v3465_v20 = vmul.f32 2.0, %v3463_v43  ;;  %v5783_v3 = vpop.f32.mrf.mxu0 }
 0x1cf   : > { %v5787_v6 = vadd.f32 %v5783_v3, %v5694_v62  ;;  %v7759_v8 = vpop.f32.mrf.mxu1 }
 0x1d0   : > { %v3466_v7 = vsub.f32 %v3464_v2, %v3465_v20  ;;  %v7754_v9 = vpop.f32.mrf.mxu0 }
 0x1d1   : > { %v5866_v10 = vadd.f32 %v5862_v60, %v5787_v6  ;;  %v6121_v11 = vpop.f32.mrf.mxu1 }
 0x1d2   : > { %v3468_v13 = vcombine.high %v3466_v7, %v3466_v7  ;;  %v3475_v14 = vrot.slane %v3466_v7, %v8979_v21  ;;  %v5941_v16 = vpop.f32.mrf.mxu0 }
 0x1d3   : > { %v5945_v19 = vadd.f32 %v5941_v16, %v5866_v10  ;;  %v7769_v38 = vpop.f32.mrf.mxu1 }
 0x1d4   : > { %v3482_v35 = vrot.slane %v3468_v13, %v8979_v21  ;;  %v3483_v17 = vcombine.high %v3475_v14, %v3475_v14  ;;  %v3491_v54 = vrot.slane %v3475_v14, %v8979_v21  ;;  %v7764_v52 = vpop.f32.mrf.mxu0 }
 0x1d5   : > { %v9067_v5 = vadd.f32 %v5950_v15, %v5945_v19  ;;  %v6274_v23 = vpop.f32.mrf.mxu1 }
 0x1d6   : > { %v3484_v22 = vcombine.high %v3482_v35, %v3482_v35  ;;  %v3498_v56 = vrot.slane %v3482_v35, %v8979_v21  ;;  %v3505_v24 = vrot.slane %v3483_v17, %v8979_v21  ;;  %v3513_v25 = vcombine.high %v3491_v54, %v3491_v54  ;;  %3525 = vst.msk [vmem:[%s8989_s11 + $0x3] sm:$0x1] %vm1025_vm6, %v3491_v54  ;;  %v6196_v37 = vpop.f32.mrf.mxu0 }
 0x1d7   : > { %v7912_v55 = vpop.eup %7911  ;;  %v5953_v63 = vmin.f32 %v9067_v5, 20.0  ;;  %v6197_v27 = vadd.f32 %v6196_v37, %v6121_v11  ;;  %v7779_v29 = vpop.f32.mrf.mxu1 }
 0x1d8   : > { %v3512_v18 = vrot.slane %v3484_v22, %v8979_v21  ;;  %v3514_v31 = vcombine.high %v3498_v56, %v3498_v56  ;;  %v3515_v33 = vcombine.high %v3505_v24, %v3505_v24  ;;  %3526 = vst.msk [vmem:[%s8989_s11 + $0xb] sm:$0x1] %vm1025_vm6, %v3505_v24  ;;  %3527 = vst.msk [vmem:[%s8989_s11 + $0x13] sm:$0x1] %vm1025_vm6, %v3513_v25  ;;  %v5123_v34 = vadd.f32 2.0, %v7912_v55  ;;  %v7774_v36 = vpop.f32.mrf.mxu0  ;;  %v6783_v11 = vpop.permute.xlu0 %6782 }
 0x1d9   : > { %3529 = vst.msk [vmem:[%s8989_s11 + $0x23] sm:$0x1] %vm1025_vm6, %v3498_v56  ;;  %v7914_v39 = vpop.eup %7913  ;;  %v5954_v26 = vmul.f32 1.442695, %v5953_v63  ;;  %v6278_v40 = vadd.f32 %v6274_v23, %v6197_v27  ;;  %v6444_v41 = vpop.f32.mrf.mxu1  ;;  %v5130_v29 = vadd.f32 1.0, %v9045_v32 }
 0x1da   : > { %v3516_v45 = vcombine.high %v3512_v18, %v3512_v18  ;;  %3528 = vst.msk [vmem:[%s8989_s11 + $0x1b] sm:$0x1] %vm1025_vm6, %v3515_v33  ;;  %3530 = vst.msk [vmem:[%s8989_s11 + $0x2b] sm:$0x1] %vm1025_vm6, %v3512_v18  ;;  %v4294_v47 = vmul.f32 %v7914_v39, %v4292_v61  ;;  %v5124_v48 = vmul.f32 %v7912_v55, %v5123_v34  ;;  %v6365_v44 = vpop.f32.mrf.mxu0 }
 0x1db   : > { %3531 = vst.msk [vmem:[%s8989_s11 + $0x33] sm:$0x1] %vm1025_vm6, %v3514_v31  ;;  %7915 = vpow2.f32 %v5954_v26  ;;  %v6369_v49 = vadd.f32 %v6365_v44, %v6278_v40  ;;  %v7789_v28 = vpop.f32.mrf.mxu1 }
 0x1dc   : > { %3532 = vst.msk [vmem:[%s8989_s11 + $0x3b] sm:$0x1] %vm1025_vm6, %v3516_v45  ;;  %v4295_v50 = vsub.f32 2.0, %v4294_v47  ;;  %v5125_v51 = vadd.f32 2.0, %v5124_v48  ;;  %v7784_v1 = vpop.f32.mrf.mxu0 }
 0x1dd   : > { %v6448_v12 = vadd.f32 %v6444_v41, %v6369_v49  ;;  %v6616_v53 = vpop.f32.mrf.mxu1 }
 0x1de   : > { %v4296_v46 = vmul.f32 %v7914_v39, %v4295_v50  ;;  %7917 = vrcp.f32 %v5125_v51  ;;  %v6523_v42 = vpop.f32.mrf.mxu0 }
 0x1df   : > { %v6527_v57 = vadd.f32 %v6523_v42, %v6448_v12  ;;  %v7799_v58 = vpop.f32.mrf.mxu1 }
 0x1e0   : > { %v4298_v61 = vmul.f32 2.0, %v4296_v46  ;;  %v7794_v4 = vpop.f32.mrf.mxu0 }
 0x1e1   : > { %v6620_v43 = vadd.f32 %v6616_v53, %v6527_v57  ;;  %v6774_v30 = vpop.f32.mrf.mxu1  ;;  %v5963_v57 = vadd.f32 1.0, %v9067_v5 }
 0x1e2   : > { %v4299_v62 = vsub.f32 %v4297_v59, %v4298_v61  ;;  %v6695_v60 = vpop.f32.mrf.mxu0 }
 0x1e3   : > { %v6699_v2 = vadd.f32 %v6695_v60, %v6620_v43  ;;  %v7809_v20 = vpop.f32.mrf.mxu1 }
 0x1e4   : > { %v4301_v3 = vcombine.high %v4299_v62, %v4299_v62  ;;  %v4308_v6 = vrot.slane %v4299_v62, %v8979_v21  ;;  %v7804_v8 = vpop.f32.mrf.mxu0 }
 0x1e5   : > { %v6778_v7 = vadd.f32 %v6774_v30, %v6699_v2 }
 0x1e6   : > { %v4315_v9 = vrot.slane %v4301_v3, %v8979_v21  ;;  %v4316_v10 = vcombine.high %v4308_v6, %v4308_v6  ;;  %v4324_v0 = vrot.slane %v4308_v6, %v8979_v21 }
 0x1e7   : > { %v9093_v13 = vadd.f32 %v6783_v11, %v6778_v7 }
 0x1e8   : > { %v7916_v14 = vpop.eup %7915  ;;  %v4317_v16 = vcombine.high %v4315_v9, %v4315_v9  ;;  %v4331_v15 = vrot.slane %v4315_v9, %v8979_v21  ;;  %v4338_v19 = vrot.slane %v4316_v10, %v8979_v21  ;;  %v4346_v38 = vcombine.high %v4324_v0, %v4324_v0  ;;  %4358 = vst.msk [vmem:[%s8989_s11 + $0x4] sm:$0x1] %vm1025_vm6, %v4324_v0 }
 0x1e9   : > { %v5956_v35 = vadd.f32 2.0, %v7916_v14  ;;  %v6786_v17 = vmin.f32 %v9093_v13, 20.0 }
 0x1ea   : > { %v4345_v54 = vrot.slane %v4317_v16, %v8979_v21  ;;  %v4347_v52 = vcombine.high %v4331_v15, %v4331_v15  ;;  %v4348_v23 = vcombine.high %v4338_v19, %v4338_v19  ;;  %4359 = vst.msk [vmem:[%s8989_s11 + $0xc] sm:$0x1] %vm1025_vm6, %v4338_v19  ;;  %4360 = vst.msk [vmem:[%s8989_s11 + $0x14] sm:$0x1] %vm1025_vm6, %v4346_v38 }
 0x1eb   : > { %4362 = vst.msk [vmem:[%s8989_s11 + $0x24] sm:$0x1] %vm1025_vm6, %v4331_v15  ;;  %v7918_v22 = vpop.eup %7917  ;;  %v5957_v56 = vmul.f32 %v7916_v14, %v5956_v35  ;;  %v6787_v24 = vmul.f32 1.442695, %v6786_v17  ;;  %v6796_v14 = vadd.f32 1.0, %v9093_v13 }
 0x1ec   : > { %v4349_v25 = vcombine.high %v4345_v54, %v4345_v54  ;;  %4361 = vst.msk [vmem:[%s8989_s11 + $0x1c] sm:$0x1] %vm1025_vm6, %v4348_v23  ;;  %4363 = vst.msk [vmem:[%s8989_s11 + $0x2c] sm:$0x1] %vm1025_vm6, %v4345_v54  ;;  %v5127_v37 = vmul.f32 %v7918_v22, %v5125_v51 }
 0x1ed   : > { %4364 = vst.msk [vmem:[%s8989_s11 + $0x34] sm:$0x1] %vm1025_vm6, %v4347_v52  ;;  %v5958_v55 = vadd.f32 2.0, %v5957_v56  ;;  %7919 = vpow2.f32 %v6787_v24 }
 0x1ee   : > { %4365 = vst.msk [vmem:[%s8989_s11 + $0x3c] sm:$0x1] %vm1025_vm6, %v4349_v25  ;;  %v5128_v63 = vsub.f32 2.0, %v5127_v37 }
 0x1ef   : > { %7921 = vrcp.f32 %v5958_v55 }
 0x1f0   : > { %v5129_v27 = vmul.f32 %v7918_v22, %v5128_v63 }
 0x1f2   : > { %v5131_v18 = vmul.f32 2.0, %v5129_v27 }
 0x1f4   : > { %v5132_v31 = vsub.f32 %v5130_v29, %v5131_v18 }
 0x1f6   : > { %v5134_v33 = vcombine.high %v5132_v31, %v5132_v31  ;;  %v5141_v34 = vrot.slane %v5132_v31, %v8979_v21 }
 0x1f8   : > { %v5148_v36 = vrot.slane %v5134_v33, %v8979_v21  ;;  %v5149_v39 = vcombine.high %v5141_v34, %v5141_v34  ;;  %v5157_v26 = vrot.slane %v5141_v34, %v8979_v21 }
 0x1fa   : > { %v7920_v40 = vpop.eup %7919  ;;  %v5150_v41 = vcombine.high %v5148_v36, %v5148_v36  ;;  %v5164_v45 = vrot.slane %v5148_v36, %v8979_v21  ;;  %v5171_v32 = vrot.slane %v5149_v39, %v8979_v21  ;;  %v5179_v47 = vcombine.high %v5157_v26, %v5157_v26  ;;  %5191 = vst.msk [vmem:[%s8989_s11 + $0x5] sm:$0x1] %vm1025_vm6, %v5157_v26 }
 0x1fb   : > { %v6789_v48 = vadd.f32 2.0, %v7920_v40 }
 0x1fc   : > { %v7922_v44 = vpop.eup %7921  ;;  %v5178_v49 = vrot.slane %v5150_v41, %v8979_v21  ;;  %v5180_v28 = vcombine.high %v5164_v45, %v5164_v45  ;;  %v5181_v50 = vcombine.high %v5171_v32, %v5171_v32  ;;  %5192 = vst.msk [vmem:[%s8989_s11 + $0xd] sm:$0x1] %vm1025_vm6, %v5171_v32  ;;  %5193 = vst.msk [vmem:[%s8989_s11 + $0x15] sm:$0x1] %vm1025_vm6, %v5179_v47 }
 0x1fd   : > { %5195 = vst.msk [vmem:[%s8989_s11 + $0x25] sm:$0x1] %vm1025_vm6, %v5164_v45  ;;  %v5960_v51 = vmul.f32 %v7922_v44, %v5958_v55  ;;  %v6790_v1 = vmul.f32 %v7920_v40, %v6789_v48 }
 0x1fe   : > { %v5182_v12 = vcombine.high %v5178_v49, %v5178_v49  ;;  %5194 = vst.msk [vmem:[%s8989_s11 + $0x1d] sm:$0x1] %vm1025_vm6, %v5181_v50  ;;  %5196 = vst.msk [vmem:[%s8989_s11 + $0x2d] sm:$0x1] %vm1025_vm6, %v5178_v49 }
 0x1ff   : > { %5197 = vst.msk [vmem:[%s8989_s11 + $0x35] sm:$0x1] %vm1025_vm6, %v5180_v28  ;;  %v5961_v53 = vsub.f32 2.0, %v5960_v51  ;;  %v6791_v46 = vadd.f32 2.0, %v6790_v1 }
 0x200   : > { %5198 = vst.msk [vmem:[%s8989_s11 + $0x3d] sm:$0x1] %vm1025_vm6, %v5182_v12 }
 0x201   : > { %v5962_v42 = vmul.f32 %v7922_v44, %v5961_v53  ;;  %7923 = vrcp.f32 %v6791_v46 }
 0x203   : > { %v5964_v58 = vmul.f32 2.0, %v5962_v42 }
 0x205   : > { %v5965_v59 = vsub.f32 %v5963_v57, %v5964_v58 }
 0x207   : > { %v5967_v61 = vcombine.high %v5965_v59, %v5965_v59  ;;  %v5974_v4 = vrot.slane %v5965_v59, %v8979_v21 }
 0x209   : > { %v5981_v43 = vrot.slane %v5967_v61, %v8979_v21  ;;  %v5982_v30 = vcombine.high %v5974_v4, %v5974_v4  ;;  %v5990_v62 = vrot.slane %v5974_v4, %v8979_v21 }
 0x20b   : > { %v5983_v60 = vcombine.high %v5981_v43, %v5981_v43  ;;  %v5997_v2 = vrot.slane %v5981_v43, %v8979_v21  ;;  %v6004_v5 = vrot.slane %v5982_v30, %v8979_v21  ;;  %v6012_v20 = vcombine.high %v5990_v62, %v5990_v62  ;;  %6024 = vst.msk [vmem:[%s8989_s11 + $0x6] sm:$0x1] %vm1025_vm6, %v5990_v62 }
 0x20d   : > { %v6011_v3 = vrot.slane %v5983_v60, %v8979_v21  ;;  %v6013_v6 = vcombine.high %v5997_v2, %v5997_v2  ;;  %v6014_v8 = vcombine.high %v6004_v5, %v6004_v5  ;;  %6025 = vst.msk [vmem:[%s8989_s11 + $0xe] sm:$0x1] %vm1025_vm6, %v6004_v5  ;;  %6026 = vst.msk [vmem:[%s8989_s11 + $0x16] sm:$0x1] %vm1025_vm6, %v6012_v20 }
 0x20e   : > { %6028 = vst.msk [vmem:[%s8989_s11 + $0x26] sm:$0x1] %vm1025_vm6, %v5997_v2  ;;  %v7924_v7 = vpop.eup %7923 }
 0x20f   : > { %v6015_v9 = vcombine.high %v6011_v3, %v6011_v3  ;;  %6027 = vst.msk [vmem:[%s8989_s11 + $0x1e] sm:$0x1] %vm1025_vm6, %v6014_v8  ;;  %6029 = vst.msk [vmem:[%s8989_s11 + $0x2e] sm:$0x1] %vm1025_vm6, %v6011_v3  ;;  %v6793_v10 = vmul.f32 %v7924_v7, %v6791_v46 }
 0x210   : > { %6030 = vst.msk [vmem:[%s8989_s11 + $0x36] sm:$0x1] %vm1025_vm6, %v6013_v6 }
 0x211   : > { %6031 = vst.msk [vmem:[%s8989_s11 + $0x3e] sm:$0x1] %vm1025_vm6, %v6015_v9  ;;  %v6794_v0 = vsub.f32 2.0, %v6793_v10 }
 0x213   : > { %v6795_v11 = vmul.f32 %v7924_v7, %v6794_v0 }
 0x215   : > { %v6797_v16 = vmul.f32 2.0, %v6795_v11 }
 0x217   : > { %v6798_v15 = vsub.f32 %v6796_v14, %v6797_v16 }
 0x219   : > { %v6800_v19 = vcombine.high %v6798_v15, %v6798_v15  ;;  %v6807_v38 = vrot.slane %v6798_v15, %v8979_v21 }
 0x21b   : > { %v6814_v35 = vrot.slane %v6800_v19, %v8979_v21  ;;  %v6815_v17 = vcombine.high %v6807_v38, %v6807_v38  ;;  %v6823_v54 = vrot.slane %v6807_v38, %v8979_v21 }
 0x21d   : > { %v6816_v52 = vcombine.high %v6814_v35, %v6814_v35  ;;  %v6830_v13 = vrot.slane %v6814_v35, %v8979_v21  ;;  %v6837_v23 = vrot.slane %v6815_v17, %v8979_v21  ;;  %v6845_v22 = vcombine.high %v6823_v54, %v6823_v54  ;;  %6857 = vst.msk [vmem:[%s8989_s11 + $0x7] sm:$0x1] %vm1025_vm6, %v6823_v54 }
 0x21f   : > { %v6844_v56 = vrot.slane %v6816_v52, %v8979_v21  ;;  %v6846_v24 = vcombine.high %v6830_v13, %v6830_v13  ;;  %v6847_v25 = vcombine.high %v6837_v23, %v6837_v23  ;;  %6858 = vst.msk [vmem:[%s8989_s11 + $0xf] sm:$0x1] %vm1025_vm6, %v6837_v23  ;;  %6859 = vst.msk [vmem:[%s8989_s11 + $0x17] sm:$0x1] %vm1025_vm6, %v6845_v22 }
 0x220   : > { %6861 = vst.msk [vmem:[%s8989_s11 + $0x27] sm:$0x1] %vm1025_vm6, %v6830_v13 }
 0x221   : > { %v6848_v21 = vcombine.high %v6844_v56, %v6844_v56  ;;  %6860 = vst.msk [vmem:[%s8989_s11 + $0x1f] sm:$0x1] %vm1025_vm6, %v6847_v25  ;;  %6862 = vst.msk [vmem:[%s8989_s11 + $0x2f] sm:$0x1] %vm1025_vm6, %v6844_v56 }
 0x222   : > { %6863 = vst.msk [vmem:[%s8989_s11 + $0x37] sm:$0x1] %vm1025_vm6, %v6846_v24 }
 0x223   : > { %6864 = vst.msk [vmem:[%s8989_s11 + $0x3f] sm:$0x1] %vm1025_vm6, %v6848_v21 }
 0x224   : > { %7940 = shalt.err (!%p7937_p6)
}
 0x225   : > { %s7941_s8 = scalar_lea.hbm %s9182_s28, 1024  ;;  %s7945_s11 = scalar_lea.hbm %s9250_s3, 4096 }
 0x226   : > { %p7942_p7 = scmp.ne.s32.totalorder %s9182_s28, %s7941_s8  ;;  %p7946_p11 = scmp.lt.s32.totalorder %s9182_s28, %s9250_s3 }
 0x227   : > { %p7947_p12 = scmp.lt.s32.totalorder %s7945_s11, %s7941_s8 }
 0x228   : > { %p7943_p9 = pnand %p7942_p7, %p8102_p3 }
 0x229   : > { %p7948_p13 = por %p7947_p12, %p7946_p11 }
 0x22a   : > { %p7944_p10 = pneg %p7943_p9 }
 0x22c   : > { %p7949_p0 = pnand %p7948_p13, %p7944_p10 }
 0x22e   : > { %7952 = shalt.err (!%p7949_p0)
}
 0x22f   : > { %s8028_s24 = smov 128   ;;  %s8029_s16 = smov 256  }
 0x230   : > { %s8030_s27 = smov 8  }
 0x231   : > { %7811 = dma.vmem_to_hbm [thread:$0]  (%p8102_p3), %s9184_s15, 1024, %s9182_s28, %s9196_s29, %s8028_s24, %s8029_s16, %s8030_s27  }
 0x232 PF: > { %p7817_p1 = scmp.ge.s32.totalorder %s8019_s19, 2  ;;  %s6895_s4 = sand.u32 1, %s7991_s12  }
 0x233   : > { %s6896_s5 = scalar_lea.sflag [#allocation3], %s6895_s4 }
 0x234   : > { %p7814_p2 = pnand %p7817_p1, %p8111_p8 }
 0x236   : > { %p7815_p4 = pneg %p7814_p2 }
 0x238   : > { %7986 = dma.done.wait (%p7815_p4), %s6896_s5, 1024  }
 0x239   : > { %7988 = vsyncadd (%p7815_p4), %s6896_s5, 4294966272  ;;  %s16_s19 = sadd.s32 1, %s8019_s19   ;;  %s9253_s12 = smov %s7995_s13 }
 0x23a   : > { %p13_p5 = scmp.ge.s32.totalorder %s16_s19, 6   ;;  %s9254_s13 = smov %s7999_s14 }
 0x23b   : > { %s9255_s14 = smov %s8120_s30  ;;  %s9256_s15 = smov %s8011_s17 }
 0x23c   : > { %s9257_s16 = smov %s8015_s18  ;;  %s9258_s17 = smov %s9261_s22 }
 0x23d   : > { %s9259_s18 = smov %s9265_s23  ;;  %15 = sbr.rel (!%p13_p5) target bundleno = 5 (0x5), region = 85 }
 0x242   :  { %6901 = vsyncpa [#allocation3], 1 }
 0x243   :  { %6903 = vsyncpa [#allocation3 + $0x1], 1 }

</bundles_post_ra>
